<compile_context>
chip_gen: v7x
topology: tpu7x:2x2x1
jax: 0.10.0
libtpu: 0.0.40
codegen_flags: <defaults>
</compile_context>

<pallas_src>
import functools

import jax
import jax.numpy as jnp
from jax import lax
from jax.experimental import pallas as pl
from jax.experimental.pallas import tpu as pltpu


def _res2net_kernel(scale, width, b_blk, T, C,
                    x_ref, w1_ref, b1_ref, bn1s_ref, bn1b_ref,
                    w3_ref, b3_ref, bn3s_ref, bn3b_ref,
                    wse1_ref, bse1_ref, bnses_ref, bnseb_ref,
                    wse2_ref, bse2_ref, o_ref):
    BT = b_blk * T
    cdt = w1_ref.dtype               # matmul operand dtype (f32, or bf16 when enabled)

    x3 = x_ref[...]                  # (b_blk, T, C)
    x = x3.reshape(BT, C)            # fold batch into the matmul M dim (T % 8 == 0)

    def conv_relu_bn1(h):
        # 1x1 conv == channel matmul (f32 accumulate) -> ReLU -> folded BN.
        h = jnp.dot(h.astype(cdt), w1_ref[...],
                    preferred_element_type=jnp.float32) + b1_ref[...]
        return jnp.maximum(h, 0.0) * bn1s_ref[...] + bn1b_ref[...]

    h = conv_relu_bn1(x)             # (BT, width*scale)

    # Per-sample boundary masks, hoisted out of the scale loop (JAX does not CSE the
    # iota/compare).  They zero the k=3 halo at t = -1 / t = T for every sample in the
    # folded block, so the time shifts below never leak across batch elements.
    t_idx = lax.broadcasted_iota(jnp.int32, (BT, width), 0) % T
    not_first = t_idx != 0
    not_last = t_idx != (T - 1)
    zpad = jnp.zeros((8, width), jnp.float32)   # sublane-aligned halo pad rows

    # Fusing the three k=3 taps into one K=3*width matmul only pays off when the
    # channel concat is lane-aligned; otherwise keep three small dots.
    fuse_k3 = (width % 128 == 0)

    outs = []
    mini = None
    for i in range(scale - 1):
        chunk = h[:, i * width:(i + 1) * width]   # sliced lazily inside the loop
        mini = chunk if i == 0 else mini + chunk
        # kernel_size=3, padding=1 conv over time as shifted matmuls.  Aligned 8-row
        # zero pads + offset slices implement the +/-1 time shift; masks fix the
        # interior per-sample boundaries.
        padded = jnp.concatenate([zpad, mini, zpad], axis=0)    # (BT+16, width)
        prev = jnp.where(not_first, padded[7:7 + BT, :], 0.0)   # t-1 tap
        nxt = jnp.where(not_last, padded[9:9 + BT, :], 0.0)     # t+1 tap
        if fuse_k3:
            taps = jnp.concatenate([prev, mini, nxt], axis=1).astype(cdt)
            acc = jnp.dot(taps, w3_ref[i].reshape(3 * width, width),
                          preferred_element_type=jnp.float32)
        else:
            acc = jnp.dot(prev.astype(cdt), w3_ref[i, 0],
                          preferred_element_type=jnp.float32)
            acc = acc + jnp.dot(mini.astype(cdt), w3_ref[i, 1],
                                preferred_element_type=jnp.float32)
            acc = acc + jnp.dot(nxt.astype(cdt), w3_ref[i, 2],
                                preferred_element_type=jnp.float32)
        acc = acc + b3_ref[i]
        mini = jnp.maximum(acc, 0.0) * bn3s_ref[i] + bn3b_ref[i]
        outs.append(mini)
    outs.append(h[:, (scale - 1) * width:])
    out = jnp.concatenate(outs, axis=1)           # (BT, width*scale)

    # forward() reuses convrelubn1 here (convrelubn2 is never called).
    out = conv_relu_bn1(out)                      # (BT, C)

    # SE block: per-sample mean over time -> 1x1 -> ReLU -> BN -> 1x1 -> sigmoid.
    out3 = out.reshape(b_blk, T, C)
    s = jnp.mean(out3, axis=1)                    # (b_blk, C): SE matmul M = b_blk
    z = jnp.dot(s.astype(cdt), wse1_ref[...],
                preferred_element_type=jnp.float32) + bse1_ref[...]
    z = jnp.maximum(z, 0.0) * bnses_ref[...] + bnseb_ref[...]
    g = jax.nn.sigmoid(jnp.dot(z.astype(cdt), wse2_ref[...],
                               preferred_element_type=jnp.float32) + bse2_ref[...])

    # SE gate + residual add (residual kept in f32).
    o_ref[...] = (out3 * g[:, None, :] + x3).astype(o_ref.dtype)


def res2net_block(x_btc, params, *, scale, width, b_blk=None,
                  compute_dtype=jnp.float32):
    B, T, C = x_btc.shape
    assert C == width * scale, "forward() requires in_dim == out_dim == width*scale"

    # Pick a batch fold that divides B; keep the (b_blk*T, C) fold a layout-preserving
    # reshape (T multiple of the 8-sublane tile) or fall back to one sample per step.
    if b_blk is None:
        b_blk = min(B, 8)
    b_blk = max(1, min(b_blk, B))
    while B % b_blk:
        b_blk -= 1
    if T % 8 != 0:
        b_blk = 1

    # Optionally move MXU operands to bf16 (halves weight VMEM/HBM traffic, ~2x MXU
    # throughput on v6e/v7x); biases, BN scale/bias and the residual stay f32.
    p = dict(params)
    for name in ("w1", "w3", "wse1", "wse2"):
        p[name] = p[name].astype(compute_dtype)

    in_arrays = [
        x_btc,
        p["w1"], p["b1"], p["bn1_s"], p["bn1_b"],
        p["w3"], p["b3"], p["bn3_s"], p["bn3_b"],
        p["wse1"], p["bse1"], p["bnse_s"], p["bnse_b"],
        p["wse2"], p["bse2"],
    ]

    def full_spec(a):
        nd = a.ndim
        # Grid-invariant weights: constant index_map, so the pipeline keeps the
        # resident copy instead of re-fetching each step.
        # TODO(synk): at production sizes single-buffer these (pl.Buffered(1) / scratch).
        return pl.BlockSpec(a.shape, lambda b, _nd=nd: (0,) * _nd)

    in_specs = [pl.BlockSpec((b_blk, T, C), lambda b: (b, 0, 0))]
    in_specs += [full_spec(a) for a in in_arrays[1:]]

    kernel = functools.partial(_res2net_kernel, scale, width, b_blk, T, C)

    return pl.pallas_call(
        kernel,
        out_shape=jax.ShapeDtypeStruct((B, T, C), x_btc.dtype),
        grid=(B // b_blk,),
        in_specs=in_specs,
        out_specs=pl.BlockSpec((b_blk, T, C), lambda b: (b, 0, 0)),
        compiler_params=pltpu.CompilerParams(
            # batch blocks are independent -> shard across both TCs on v7x;
            # neutral on single-TC v5e/v6e.
            dimension_semantics=("parallel",),
            vmem_limit_bytes=32 * 1024 * 1024,
        ),
    )(*in_arrays)


def _fold_bn(gamma, beta, mean, var, eps=1e-5):
    scale = gamma / jnp.sqrt(var + eps)
    return scale, beta - mean * scale


def init_params(key, *, in_dim, out_dim, scale, se_bottleneck, kernel_size=3):
    width = out_dim // scale
    ks = jax.random.split(key, 16)
    f32 = jnp.float32

    def bn_params(k, n):
        k1, k2, k3, k4 = jax.random.split(k, 4)
        gamma = jax.random.uniform(k1, (n,), f32, 0.5, 1.5)
        beta = 0.1 * jax.random.normal(k2, (n,), f32)
        mean = 0.1 * jax.random.normal(k3, (n,), f32)
        var = jax.random.uniform(k4, (n,), f32, 0.5, 1.5)
        return _fold_bn(gamma, beta, mean, var)

    # convrelubn1: Conv1d(in_dim, width*scale, k=1) + BN(width*scale)
    w1 = 0.2 * jax.random.normal(ks[0], (in_dim, width * scale), f32)
    b1 = 0.1 * jax.random.normal(ks[1], (1, width * scale), f32)
    bn1_s, bn1_b = bn_params(ks[2], width * scale)

    # res2 convs: (scale-1) x Conv1d(width, width, k=3, pad=1) + BN(width)
    w3 = 0.2 * jax.random.normal(ks[3], (scale - 1, kernel_size, width, width), f32)
    b3 = 0.1 * jax.random.normal(ks[4], (scale - 1, 1, width), f32)
    bn3_s, bn3_b = [], []
    for i in range(scale - 1):
        s_i, b_i = bn_params(jax.random.fold_in(ks[5], i), width)
        bn3_s.append(s_i)
        bn3_b.append(b_i)
    bn3_s = jnp.stack(bn3_s)[:, None, :]              # (scale-1, 1, width)
    bn3_b = jnp.stack(bn3_b)[:, None, :]

    # SE block
    wse1 = 0.2 * jax.random.normal(ks[6], (out_dim, se_bottleneck), f32)
    bse1 = 0.1 * jax.random.normal(ks[7], (1, se_bottleneck), f32)
    bnse_s, bnse_b = bn_params(ks[8], se_bottleneck)
    wse2 = 0.2 * jax.random.normal(ks[9], (se_bottleneck, out_dim), f32)
    bse2 = 0.1 * jax.random.normal(ks[10], (1, out_dim), f32)

    return dict(
        w1=w1, b1=b1, bn1_s=bn1_s[None, :], bn1_b=bn1_b[None, :],
        w3=w3, b3=b3, bn3_s=bn3_s, bn3_b=bn3_b,
        wse1=wse1, bse1=bse1, bnse_s=bnse_s[None, :], bnse_b=bnse_b[None, :],
        wse2=wse2, bse2=bse2,
    ), width


def reference(x_btc, p, *, scale, width):
    """Pure-JAX reference, same (B, T, C) layout, f32 throughout."""
    B, T, C = x_btc.shape

    def crbn1(h):
        h = h @ p["w1"] + p["b1"]
        return jnp.maximum(h, 0.0) * p["bn1_s"] + p["bn1_b"]

    h = crbn1(x_btc)
    outs = []
    mini = None
    for i in range(scale - 1):
        chunk = h[..., i * width:(i + 1) * width]
        mini = chunk if i == 0 else mini + chunk
        prev = jnp.pad(mini, ((0, 0), (1, 0), (0, 0)))[:, :T, :]
        nxt = jnp.pad(mini, ((0, 0), (0, 1), (0, 0)))[:, 1:, :]
        acc = (prev @ p["w3"][i, 0] + mini @ p["w3"][i, 1] + nxt @ p["w3"][i, 2]
               + p["b3"][i])
        mini = jnp.maximum(acc, 0.0) * p["bn3_s"][i] + p["bn3_b"][i]
        outs.append(mini)
    outs.append(h[..., (scale - 1) * width:])
    out = jnp.concatenate(outs, axis=-1)
    out = crbn1(out)
    s = jnp.mean(out, axis=1, keepdims=True)
    z = jnp.maximum(s @ p["wse1"] + p["bse1"], 0.0) * p["bnse_s"] + p["bnse_b"]
    g = jax.nn.sigmoid(z @ p["wse2"] + p["bse2"])
    return out * g + x_btc


if __name__ == "__main__":
    # Make the XLA reference matmuls full f32 so the comparison is meaningful.
    jax.config.update("jax_default_matmul_precision", "highest")

    # Small but lane-dense config: C = 128 keeps the output store unmasked,
    # forward() requires in_dim == out_dim.
    B, T = 4, 16
    in_dim = out_dim = 128
    scale, se_bottleneck = 4, 32

    key = jax.random.PRNGKey(0)
    kx, kp = jax.random.split(key)
    params, width = init_params(kp, in_dim=in_dim, out_dim=out_dim,
                                scale=scale, se_bottleneck=se_bottleneck)

    # PyTorch-style input (B, C, T), moved to the kernel's (B, T, C) layout.
    x_nct = jax.random.normal(kx, (B, in_dim, T), jnp.float32)
    x_btc = jnp.transpose(x_nct, (0, 2, 1))

    # f32 path: 2 samples folded per grid step -> grid of 2, exercises both the
    # intra-block per-sample masks and multiple grid steps.
    out = res2net_block(x_btc, params, scale=scale, width=width, b_blk=2)
    out = jax.block_until_ready(out)

    ref = reference(x_btc, params, scale=scale, width=width)
    assert out.shape == (B, T, out_dim)
    assert jnp.allclose(out, ref, rtol=5e-3, atol=5e-3), \
        float(jnp.max(jnp.abs(out - ref)))

    # bf16 MXU path (f32 accumulate): smoke test + loose sanity check vs f32 ref.
    out_bf16 = res2net_block(x_btc, params, scale=scale, width=width, b_blk=2,
                             compute_dtype=jnp.bfloat16)
    out_bf16 = jax.block_until_ready(out_bf16)
    assert bool(jnp.all(jnp.isfinite(out_bf16)))
    rel = float(jnp.max(jnp.abs(out_bf16 - ref)) / jnp.max(jnp.abs(ref)))
    assert rel < 0.08, rel

    print("KERNEL_OK")
</pallas_src>

<mosaic_0001>
module attributes {stable_mosaic.version = 11 : i64} {
  func.func @_res2net_kernel(%arg0: i32, %arg1: memref<2x16x128xf32, #tpu.memory_space<vmem>>, %arg2: memref<128x128xf32, #tpu.memory_space<vmem>>, %arg3: memref<1x128xf32, #tpu.memory_space<vmem>>, %arg4: memref<1x128xf32, #tpu.memory_space<vmem>>, %arg5: memref<1x128xf32, #tpu.memory_space<vmem>>, %arg6: memref<3x3x32x32xf32, #tpu.memory_space<vmem>>, %arg7: memref<3x1x32xf32, #tpu.memory_space<vmem>>, %arg8: memref<3x1x32xf32, #tpu.memory_space<vmem>>, %arg9: memref<3x1x32xf32, #tpu.memory_space<vmem>>, %arg10: memref<128x32xf32, #tpu.memory_space<vmem>>, %arg11: memref<1x32xf32, #tpu.memory_space<vmem>>, %arg12: memref<1x32xf32, #tpu.memory_space<vmem>>, %arg13: memref<1x32xf32, #tpu.memory_space<vmem>>, %arg14: memref<32x128xf32, #tpu.memory_space<vmem>>, %arg15: memref<1x128xf32, #tpu.memory_space<vmem>>, %arg16: memref<2x16x128xf32, #tpu.memory_space<vmem>>) attributes {dimension_semantics = [#tpu.dimension_semantics<parallel>], iteration_bounds = array<i64: 2>, scalar_prefetch = 0 : i64, scratch_operands = 0 : i64, tpu.core_type = #tpu.core_type<tc>, window_params = [{transform_indices = @transform_0, window_bounds = array<i64: 2, 16, 128>}, {pipeline_mode = #tpu.pipeline_mode<synchronous>, transform_indices = @transform_1, window_bounds = array<i64: 128, 128>}, {pipeline_mode = #tpu.pipeline_mode<synchronous>, transform_indices = @transform_2, window_bounds = array<i64: 1, 128>}, {pipeline_mode = #tpu.pipeline_mode<synchronous>, transform_indices = @transform_3, window_bounds = array<i64: 1, 128>}, {pipeline_mode = #tpu.pipeline_mode<synchronous>, transform_indices = @transform_4, window_bounds = array<i64: 1, 128>}, {pipeline_mode = #tpu.pipeline_mode<synchronous>, transform_indices = @transform_5, window_bounds = array<i64: 3, 3, 32, 32>}, {pipeline_mode = #tpu.pipeline_mode<synchronous>, transform_indices = @transform_6, window_bounds = array<i64: 3, 1, 32>}, {pipeline_mode = #tpu.pipeline_mode<synchronous>, transform_indices = @transform_7, window_bounds = array<i64: 3, 1, 32>}, {pipeline_mode = #tpu.pipeline_mode<synchronous>, transform_indices = @transform_8, window_bounds = array<i64: 3, 1, 32>}, {pipeline_mode = #tpu.pipeline_mode<synchronous>, transform_indices = @transform_9, window_bounds = array<i64: 128, 32>}, {pipeline_mode = #tpu.pipeline_mode<synchronous>, transform_indices = @transform_10, window_bounds = array<i64: 1, 32>}, {pipeline_mode = #tpu.pipeline_mode<synchronous>, transform_indices = @transform_11, window_bounds = array<i64: 1, 32>}, {pipeline_mode = #tpu.pipeline_mode<synchronous>, transform_indices = @transform_12, window_bounds = array<i64: 1, 32>}, {pipeline_mode = #tpu.pipeline_mode<synchronous>, transform_indices = @transform_13, window_bounds = array<i64: 32, 128>}, {pipeline_mode = #tpu.pipeline_mode<synchronous>, transform_indices = @transform_14, window_bounds = array<i64: 1, 128>}, {transform_indices = @transform_15, window_bounds = array<i64: 2, 16, 128>}]} {
    %c0 = arith.constant 0 : index
    %c0_0 = arith.constant 0 : index
    %c0_1 = arith.constant 0 : index
    %0 = vector.load %arg1[%c0, %c0_0, %c0_1] : memref<2x16x128xf32, #tpu.memory_space<vmem>>, vector<2x16x128xf32>
    %1 = vector.shape_cast %0 : vector<2x16x128xf32> to vector<32x128xf32>
    %c0_2 = arith.constant 0 : index
    %c0_3 = arith.constant 0 : index
    %2 = vector.load %arg2[%c0_2, %c0_3] : memref<128x128xf32, #tpu.memory_space<vmem>>, vector<128x128xf32>
    %cst = arith.constant dense<0.000000e+00> : vector<32x128xf32>
    %3 = tpu.matmul %1, %2, %cst {dimension_numbers = #tpu.dot_dimension_numbers<[1], [0], [0], [1], [0, 0, 1, 1], [], []>, precision = #tpu.contract_precision<fp32>} : vector<32x128xf32>, vector<128x128xf32>, vector<32x128xf32> -> vector<32x128xf32>
    %c0_4 = arith.constant 0 : index
    %c0_5 = arith.constant 0 : index
    %4 = vector.load %arg3[%c0_4, %c0_5] : memref<1x128xf32, #tpu.memory_space<vmem>>, vector<1x128xf32>
    %5 = vector.broadcast %4 : vector<1x128xf32> to vector<32x128xf32>
    %6 = arith.addf %3, %5 : vector<32x128xf32>
    %cst_6 = arith.constant 0.000000e+00 : f32
    %7 = vector.broadcast %cst_6 : f32 to vector<32x128xf32>
    %8 = arith.maximumf %6, %7 : vector<32x128xf32>
    %c0_7 = arith.constant 0 : index
    %c0_8 = arith.constant 0 : index
    %9 = vector.load %arg4[%c0_7, %c0_8] : memref<1x128xf32, #tpu.memory_space<vmem>>, vector<1x128xf32>
    %10 = vector.broadcast %9 : vector<1x128xf32> to vector<32x128xf32>
    %11 = arith.mulf %8, %10 : vector<32x128xf32>
    %c0_9 = arith.constant 0 : index
    %c0_10 = arith.constant 0 : index
    %12 = vector.load %arg5[%c0_9, %c0_10] : memref<1x128xf32, #tpu.memory_space<vmem>>, vector<1x128xf32>
    %13 = vector.broadcast %12 : vector<1x128xf32> to vector<32x128xf32>
    %14 = arith.addf %11, %13 : vector<32x128xf32>
    %15 = tpu.iota {dimensions = array<i32: 0>} : vector<32x32xi32>
    %c16_i32 = arith.constant 16 : i32
    %c0_i32 = arith.constant 0 : i32
    %16 = arith.cmpi eq, %c16_i32, %c0_i32 : i32
    %c1_i32 = arith.constant 1 : i32
    %17 = arith.select %16, %c1_i32, %c16_i32 : i32
    %18 = vector.broadcast %17 : i32 to vector<32x32xi32>
    %19 = arith.remsi %15, %18 : vector<32x32xi32>
    %c0_i32_11 = arith.constant 0 : i32
    %20 = vector.broadcast %c0_i32_11 : i32 to vector<32x32xi32>
    %21 = arith.cmpi ne, %19, %20 : vector<32x32xi32>
    %c0_i32_12 = arith.constant 0 : i32
    %22 = vector.broadcast %c0_i32_12 : i32 to vector<32x32xi32>
    %23 = arith.cmpi slt, %19, %22 : vector<32x32xi32>
    %c0_i32_13 = arith.constant 0 : i32
    %24 = arith.cmpi slt, %17, %c0_i32_13 : i32
    %25 = vector.broadcast %24 : i1 to vector<32x32xi1>
    %26 = vector.broadcast %25 : vector<32x32xi1> to vector<32x32xi1>
    %27 = arith.xori %23, %26 : vector<32x32xi1>
    %28 = arith.andi %27, %21 : vector<32x32xi1>
    %29 = vector.broadcast %17 : i32 to vector<32x32xi32>
    %30 = arith.addi %19, %29 : vector<32x32xi32>
    %31 = arith.select %28, %30, %19 : vector<32x32xi1>, vector<32x32xi32>
    %c0_i32_14 = arith.constant 0 : i32
    %32 = vector.broadcast %c0_i32_14 : i32 to vector<32x32xi32>
    %33 = arith.cmpi ne, %31, %32 : vector<32x32xi32>
    %c15_i32 = arith.constant 15 : i32
    %34 = vector.broadcast %c15_i32 : i32 to vector<32x32xi32>
    %35 = arith.cmpi ne, %31, %34 : vector<32x32xi32>
    %cst_15 = arith.constant 0.000000e+00 : f32
    %36 = vector.broadcast %cst_15 : f32 to vector<8x32xf32>
    %37 = vector.extract_strided_slice %14 {offsets = [0, 0], sizes = [32, 32], strides = [1, 1]} : vector<32x128xf32> to vector<32x32xf32>
    %38 = tpu.concatenate %36, %37, %36 in 0 : vector<8x32xf32>, vector<32x32xf32>, vector<8x32xf32> -> vector<48x32xf32>
    %39 = vector.extract_strided_slice %38 {offsets = [7, 0], sizes = [32, 32], strides = [1, 1]} : vector<48x32xf32> to vector<32x32xf32>
    %cst_16 = arith.constant 0.000000e+00 : f32
    %40 = vector.broadcast %cst_16 : f32 to vector<32x32xf32>
    %41 = arith.select %33, %39, %40 : vector<32x32xi1>, vector<32x32xf32>
    %42 = vector.extract_strided_slice %38 {offsets = [9, 0], sizes = [32, 32], strides = [1, 1]} : vector<48x32xf32> to vector<32x32xf32>
    %cst_17 = arith.constant 0.000000e+00 : f32
    %43 = vector.broadcast %cst_17 : f32 to vector<32x32xf32>
    %44 = arith.select %35, %42, %43 : vector<32x32xi1>, vector<32x32xf32>
    %c0_18 = arith.constant 0 : index
    %c0_19 = arith.constant 0 : index
    %c0_20 = arith.constant 0 : index
    %c0_21 = arith.constant 0 : index
    %45 = vector.load %arg6[%c0_18, %c0_19, %c0_20, %c0_21] : memref<3x3x32x32xf32, #tpu.memory_space<vmem>>, vector<1x1x32x32xf32>
    %46 = vector.shape_cast %45 : vector<1x1x32x32xf32> to vector<32x32xf32>
    %cst_22 = arith.constant dense<0.000000e+00> : vector<32x32xf32>
    %47 = tpu.matmul %41, %46, %cst_22 {dimension_numbers = #tpu.dot_dimension_numbers<[1], [0], [0], [1], [0, 0, 1, 1], [], []>, precision = #tpu.contract_precision<fp32>} : vector<32x32xf32>, vector<32x32xf32>, vector<32x32xf32> -> vector<32x32xf32>
    %c0_23 = arith.constant 0 : index
    %c1 = arith.constant 1 : index
    %c0_24 = arith.constant 0 : index
    %c0_25 = arith.constant 0 : index
    %48 = vector.load %arg6[%c0_23, %c1, %c0_24, %c0_25] : memref<3x3x32x32xf32, #tpu.memory_space<vmem>>, vector<1x1x32x32xf32>
    %49 = vector.shape_cast %48 : vector<1x1x32x32xf32> to vector<32x32xf32>
    %cst_26 = arith.constant dense<0.000000e+00> : vector<32x32xf32>
    %50 = tpu.matmul %37, %49, %cst_26 {dimension_numbers = #tpu.dot_dimension_numbers<[1], [0], [0], [1], [0, 0, 1, 1], [], []>, precision = #tpu.contract_precision<fp32>} : vector<32x32xf32>, vector<32x32xf32>, vector<32x32xf32> -> vector<32x32xf32>
    %51 = arith.addf %47, %50 : vector<32x32xf32>
    %c0_27 = arith.constant 0 : index
    %c2 = arith.constant 2 : index
    %c0_28 = arith.constant 0 : index
    %c0_29 = arith.constant 0 : index
    %52 = vector.load %arg6[%c0_27, %c2, %c0_28, %c0_29] : memref<3x3x32x32xf32, #tpu.memory_space<vmem>>, vector<1x1x32x32xf32>
    %53 = vector.shape_cast %52 : vector<1x1x32x32xf32> to vector<32x32xf32>
    %cst_30 = arith.constant dense<0.000000e+00> : vector<32x32xf32>
    %54 = tpu.matmul %44, %53, %cst_30 {dimension_numbers = #tpu.dot_dimension_numbers<[1], [0], [0], [1], [0, 0, 1, 1], [], []>, precision = #tpu.contract_precision<fp32>} : vector<32x32xf32>, vector<32x32xf32>, vector<32x32xf32> -> vector<32x32xf32>
    %55 = arith.addf %51, %54 : vector<32x32xf32>
    %c0_31 = arith.constant 0 : index
    %c0_32 = arith.constant 0 : index
    %c0_33 = arith.constant 0 : index
    %56 = vector.load %arg7[%c0_31, %c0_32, %c0_33] : memref<3x1x32xf32, #tpu.memory_space<vmem>>, vector<1x1x32xf32>
    %57 = vector.shape_cast %56 : vector<1x1x32xf32> to vector<1x32xf32>
    %58 = vector.broadcast %57 : vector<1x32xf32> to vector<32x32xf32>
    %59 = arith.addf %55, %58 : vector<32x32xf32>
    %cst_34 = arith.constant 0.000000e+00 : f32
    %60 = vector.broadcast %cst_34 : f32 to vector<32x32xf32>
    %61 = arith.maximumf %59, %60 : vector<32x32xf32>
    %c0_35 = arith.constant 0 : index
    %c0_36 = arith.constant 0 : index
    %c0_37 = arith.constant 0 : index
    %62 = vector.load %arg8[%c0_35, %c0_36, %c0_37] : memref<3x1x32xf32, #tpu.memory_space<vmem>>, vector<1x1x32xf32>
    %63 = vector.shape_cast %62 : vector<1x1x32xf32> to vector<1x32xf32>
    %64 = vector.broadcast %63 : vector<1x32xf32> to vector<32x32xf32>
    %65 = arith.mulf %61, %64 : vector<32x32xf32>
    %c0_38 = arith.constant 0 : index
    %c0_39 = arith.constant 0 : index
    %c0_40 = arith.constant 0 : index
    %66 = vector.load %arg9[%c0_38, %c0_39, %c0_40] : memref<3x1x32xf32, #tpu.memory_space<vmem>>, vector<1x1x32xf32>
    %67 = vector.shape_cast %66 : vector<1x1x32xf32> to vector<1x32xf32>
    %68 = vector.broadcast %67 : vector<1x32xf32> to vector<32x32xf32>
    %69 = arith.addf %65, %68 : vector<32x32xf32>
    %70 = vector.extract_strided_slice %14 {offsets = [0, 32], sizes = [32, 32], strides = [1, 1]} : vector<32x128xf32> to vector<32x32xf32>
    %71 = arith.addf %69, %70 : vector<32x32xf32>
    %72 = tpu.concatenate %36, %71, %36 in 0 : vector<8x32xf32>, vector<32x32xf32>, vector<8x32xf32> -> vector<48x32xf32>
    %73 = vector.extract_strided_slice %72 {offsets = [7, 0], sizes = [32, 32], strides = [1, 1]} : vector<48x32xf32> to vector<32x32xf32>
    %cst_41 = arith.constant 0.000000e+00 : f32
    %74 = vector.broadcast %cst_41 : f32 to vector<32x32xf32>
    %75 = arith.select %33, %73, %74 : vector<32x32xi1>, vector<32x32xf32>
    %76 = vector.extract_strided_slice %72 {offsets = [9, 0], sizes = [32, 32], strides = [1, 1]} : vector<48x32xf32> to vector<32x32xf32>
    %cst_42 = arith.constant 0.000000e+00 : f32
    %77 = vector.broadcast %cst_42 : f32 to vector<32x32xf32>
    %78 = arith.select %35, %76, %77 : vector<32x32xi1>, vector<32x32xf32>
    %c1_43 = arith.constant 1 : index
    %c0_44 = arith.constant 0 : index
    %c0_45 = arith.constant 0 : index
    %c0_46 = arith.constant 0 : index
    %79 = vector.load %arg6[%c1_43, %c0_44, %c0_45, %c0_46] : memref<3x3x32x32xf32, #tpu.memory_space<vmem>>, vector<1x1x32x32xf32>
    %80 = vector.shape_cast %79 : vector<1x1x32x32xf32> to vector<32x32xf32>
    %cst_47 = arith.constant dense<0.000000e+00> : vector<32x32xf32>
    %81 = tpu.matmul %75, %80, %cst_47 {dimension_numbers = #tpu.dot_dimension_numbers<[1], [0], [0], [1], [0, 0, 1, 1], [], []>, precision = #tpu.contract_precision<fp32>} : vector<32x32xf32>, vector<32x32xf32>, vector<32x32xf32> -> vector<32x32xf32>
    %c1_48 = arith.constant 1 : index
    %c1_49 = arith.constant 1 : index
    %c0_50 = arith.constant 0 : index
    %c0_51 = arith.constant 0 : index
    %82 = vector.load %arg6[%c1_48, %c1_49, %c0_50, %c0_51] : memref<3x3x32x32xf32, #tpu.memory_space<vmem>>, vector<1x1x32x32xf32>
    %83 = vector.shape_cast %82 : vector<1x1x32x32xf32> to vector<32x32xf32>
    %cst_52 = arith.constant dense<0.000000e+00> : vector<32x32xf32>
    %84 = tpu.matmul %71, %83, %cst_52 {dimension_numbers = #tpu.dot_dimension_numbers<[1], [0], [0], [1], [0, 0, 1, 1], [], []>, precision = #tpu.contract_precision<fp32>} : vector<32x32xf32>, vector<32x32xf32>, vector<32x32xf32> -> vector<32x32xf32>
    %85 = arith.addf %81, %84 : vector<32x32xf32>
    %c1_53 = arith.constant 1 : index
    %c2_54 = arith.constant 2 : index
    %c0_55 = arith.constant 0 : index
    %c0_56 = arith.constant 0 : index
    %86 = vector.load %arg6[%c1_53, %c2_54, %c0_55, %c0_56] : memref<3x3x32x32xf32, #tpu.memory_space<vmem>>, vector<1x1x32x32xf32>
    %87 = vector.shape_cast %86 : vector<1x1x32x32xf32> to vector<32x32xf32>
    %cst_57 = arith.constant dense<0.000000e+00> : vector<32x32xf32>
    %88 = tpu.matmul %78, %87, %cst_57 {dimension_numbers = #tpu.dot_dimension_numbers<[1], [0], [0], [1], [0, 0, 1, 1], [], []>, precision = #tpu.contract_precision<fp32>} : vector<32x32xf32>, vector<32x32xf32>, vector<32x32xf32> -> vector<32x32xf32>
    %89 = arith.addf %85, %88 : vector<32x32xf32>
    %c1_58 = arith.constant 1 : index
    %c0_59 = arith.constant 0 : index
    %c0_60 = arith.constant 0 : index
    %90 = vector.load %arg7[%c1_58, %c0_59, %c0_60] : memref<3x1x32xf32, #tpu.memory_space<vmem>>, vector<1x1x32xf32>
    %91 = vector.shape_cast %90 : vector<1x1x32xf32> to vector<1x32xf32>
    %92 = vector.broadcast %91 : vector<1x32xf32> to vector<32x32xf32>
    %93 = arith.addf %89, %92 : vector<32x32xf32>
    %cst_61 = arith.constant 0.000000e+00 : f32
    %94 = vector.broadcast %cst_61 : f32 to vector<32x32xf32>
    %95 = arith.maximumf %93, %94 : vector<32x32xf32>
    %c1_62 = arith.constant 1 : index
    %c0_63 = arith.constant 0 : index
    %c0_64 = arith.constant 0 : index
    %96 = vector.load %arg8[%c1_62, %c0_63, %c0_64] : memref<3x1x32xf32, #tpu.memory_space<vmem>>, vector<1x1x32xf32>
    %97 = vector.shape_cast %96 : vector<1x1x32xf32> to vector<1x32xf32>
    %98 = vector.broadcast %97 : vector<1x32xf32> to vector<32x32xf32>
    %99 = arith.mulf %95, %98 : vector<32x32xf32>
    %c1_65 = arith.constant 1 : index
    %c0_66 = arith.constant 0 : index
    %c0_67 = arith.constant 0 : index
    %100 = vector.load %arg9[%c1_65, %c0_66, %c0_67] : memref<3x1x32xf32, #tpu.memory_space<vmem>>, vector<1x1x32xf32>
    %101 = vector.shape_cast %100 : vector<1x1x32xf32> to vector<1x32xf32>
    %102 = vector.broadcast %101 : vector<1x32xf32> to vector<32x32xf32>
    %103 = arith.addf %99, %102 : vector<32x32xf32>
    %104 = vector.extract_strided_slice %14 {offsets = [0, 64], sizes = [32, 32], strides = [1, 1]} : vector<32x128xf32> to vector<32x32xf32>
    %105 = arith.addf %103, %104 : vector<32x32xf32>
    %106 = tpu.concatenate %36, %105, %36 in 0 : vector<8x32xf32>, vector<32x32xf32>, vector<8x32xf32> -> vector<48x32xf32>
    %107 = vector.extract_strided_slice %106 {offsets = [7, 0], sizes = [32, 32], strides = [1, 1]} : vector<48x32xf32> to vector<32x32xf32>
    %cst_68 = arith.constant 0.000000e+00 : f32
    %108 = vector.broadcast %cst_68 : f32 to vector<32x32xf32>
    %109 = arith.select %33, %107, %108 : vector<32x32xi1>, vector<32x32xf32>
    %110 = vector.extract_strided_slice %106 {offsets = [9, 0], sizes = [32, 32], strides = [1, 1]} : vector<48x32xf32> to vector<32x32xf32>
    %cst_69 = arith.constant 0.000000e+00 : f32
    %111 = vector.broadcast %cst_69 : f32 to vector<32x32xf32>
    %112 = arith.select %35, %110, %111 : vector<32x32xi1>, vector<32x32xf32>
    %c2_70 = arith.constant 2 : index
    %c0_71 = arith.constant 0 : index
    %c0_72 = arith.constant 0 : index
    %c0_73 = arith.constant 0 : index
    %113 = vector.load %arg6[%c2_70, %c0_71, %c0_72, %c0_73] : memref<3x3x32x32xf32, #tpu.memory_space<vmem>>, vector<1x1x32x32xf32>
    %114 = vector.shape_cast %113 : vector<1x1x32x32xf32> to vector<32x32xf32>
    %cst_74 = arith.constant dense<0.000000e+00> : vector<32x32xf32>
    %115 = tpu.matmul %109, %114, %cst_74 {dimension_numbers = #tpu.dot_dimension_numbers<[1], [0], [0], [1], [0, 0, 1, 1], [], []>, precision = #tpu.contract_precision<fp32>} : vector<32x32xf32>, vector<32x32xf32>, vector<32x32xf32> -> vector<32x32xf32>
    %c2_75 = arith.constant 2 : index
    %c1_76 = arith.constant 1 : index
    %c0_77 = arith.constant 0 : index
    %c0_78 = arith.constant 0 : index
    %116 = vector.load %arg6[%c2_75, %c1_76, %c0_77, %c0_78] : memref<3x3x32x32xf32, #tpu.memory_space<vmem>>, vector<1x1x32x32xf32>
    %117 = vector.shape_cast %116 : vector<1x1x32x32xf32> to vector<32x32xf32>
    %cst_79 = arith.constant dense<0.000000e+00> : vector<32x32xf32>
    %118 = tpu.matmul %105, %117, %cst_79 {dimension_numbers = #tpu.dot_dimension_numbers<[1], [0], [0], [1], [0, 0, 1, 1], [], []>, precision = #tpu.contract_precision<fp32>} : vector<32x32xf32>, vector<32x32xf32>, vector<32x32xf32> -> vector<32x32xf32>
    %119 = arith.addf %115, %118 : vector<32x32xf32>
    %c2_80 = arith.constant 2 : index
    %c2_81 = arith.constant 2 : index
    %c0_82 = arith.constant 0 : index
    %c0_83 = arith.constant 0 : index
    %120 = vector.load %arg6[%c2_80, %c2_81, %c0_82, %c0_83] : memref<3x3x32x32xf32, #tpu.memory_space<vmem>>, vector<1x1x32x32xf32>
    %121 = vector.shape_cast %120 : vector<1x1x32x32xf32> to vector<32x32xf32>
    %cst_84 = arith.constant dense<0.000000e+00> : vector<32x32xf32>
    %122 = tpu.matmul %112, %121, %cst_84 {dimension_numbers = #tpu.dot_dimension_numbers<[1], [0], [0], [1], [0, 0, 1, 1], [], []>, precision = #tpu.contract_precision<fp32>} : vector<32x32xf32>, vector<32x32xf32>, vector<32x32xf32> -> vector<32x32xf32>
    %123 = arith.addf %119, %122 : vector<32x32xf32>
    %c2_85 = arith.constant 2 : index
    %c0_86 = arith.constant 0 : index
    %c0_87 = arith.constant 0 : index
    %124 = vector.load %arg7[%c2_85, %c0_86, %c0_87] : memref<3x1x32xf32, #tpu.memory_space<vmem>>, vector<1x1x32xf32>
    %125 = vector.shape_cast %124 : vector<1x1x32xf32> to vector<1x32xf32>
    %126 = vector.broadcast %125 : vector<1x32xf32> to vector<32x32xf32>
    %127 = arith.addf %123, %126 : vector<32x32xf32>
    %cst_88 = arith.constant 0.000000e+00 : f32
    %128 = vector.broadcast %cst_88 : f32 to vector<32x32xf32>
    %129 = arith.maximumf %127, %128 : vector<32x32xf32>
    %c2_89 = arith.constant 2 : index
    %c0_90 = arith.constant 0 : index
    %c0_91 = arith.constant 0 : index
    %130 = vector.load %arg8[%c2_89, %c0_90, %c0_91] : memref<3x1x32xf32, #tpu.memory_space<vmem>>, vector<1x1x32xf32>
    %131 = vector.shape_cast %130 : vector<1x1x32xf32> to vector<1x32xf32>
    %132 = vector.broadcast %131 : vector<1x32xf32> to vector<32x32xf32>
    %133 = arith.mulf %129, %132 : vector<32x32xf32>
    %c2_92 = arith.constant 2 : index
    %c0_93 = arith.constant 0 : index
    %c0_94 = arith.constant 0 : index
    %134 = vector.load %arg9[%c2_92, %c0_93, %c0_94] : memref<3x1x32xf32, #tpu.memory_space<vmem>>, vector<1x1x32xf32>
    %135 = vector.shape_cast %134 : vector<1x1x32xf32> to vector<1x32xf32>
    %136 = vector.broadcast %135 : vector<1x32xf32> to vector<32x32xf32>
    %137 = arith.addf %133, %136 : vector<32x32xf32>
    %138 = vector.extract_strided_slice %14 {offsets = [0, 96], sizes = [32, 32], strides = [1, 1]} : vector<32x128xf32> to vector<32x32xf32>
    %139 = tpu.concatenate %69, %103, %137, %138 in 1 : vector<32x32xf32>, vector<32x32xf32>, vector<32x32xf32>, vector<32x32xf32> -> vector<32x128xf32>
    %c0_95 = arith.constant 0 : index
    %c0_96 = arith.constant 0 : index
    %140 = vector.load %arg2[%c0_95, %c0_96] : memref<128x128xf32, #tpu.memory_space<vmem>>, vector<128x128xf32>
    %cst_97 = arith.constant dense<0.000000e+00> : vector<32x128xf32>
    %141 = tpu.matmul %139, %140, %cst_97 {dimension_numbers = #tpu.dot_dimension_numbers<[1], [0], [0], [1], [0, 0, 1, 1], [], []>, precision = #tpu.contract_precision<fp32>} : vector<32x128xf32>, vector<128x128xf32>, vector<32x128xf32> -> vector<32x128xf32>
    %c0_98 = arith.constant 0 : index
    %c0_99 = arith.constant 0 : index
    %142 = vector.load %arg3[%c0_98, %c0_99] : memref<1x128xf32, #tpu.memory_space<vmem>>, vector<1x128xf32>
    %143 = vector.broadcast %142 : vector<1x128xf32> to vector<32x128xf32>
    %144 = arith.addf %141, %143 : vector<32x128xf32>
    %cst_100 = arith.constant 0.000000e+00 : f32
    %145 = vector.broadcast %cst_100 : f32 to vector<32x128xf32>
    %146 = arith.maximumf %144, %145 : vector<32x128xf32>
    %c0_101 = arith.constant 0 : index
    %c0_102 = arith.constant 0 : index
    %147 = vector.load %arg4[%c0_101, %c0_102] : memref<1x128xf32, #tpu.memory_space<vmem>>, vector<1x128xf32>
    %148 = vector.broadcast %147 : vector<1x128xf32> to vector<32x128xf32>
    %149 = arith.mulf %146, %148 : vector<32x128xf32>
    %c0_103 = arith.constant 0 : index
    %c0_104 = arith.constant 0 : index
    %150 = vector.load %arg5[%c0_103, %c0_104] : memref<1x128xf32, #tpu.memory_space<vmem>>, vector<1x128xf32>
    %151 = vector.broadcast %150 : vector<1x128xf32> to vector<32x128xf32>
    %152 = arith.addf %149, %151 : vector<32x128xf32>
    %153 = vector.shape_cast %152 : vector<32x128xf32> to vector<2x16x128xf32>
    %cst_105 = arith.constant dense<0.000000e+00> : vector<2x128xf32>
    %154 = vector.multi_reduction <add>, %153, %cst_105 [1] : vector<2x16x128xf32> to vector<2x128xf32>
    %cst_106 = arith.constant 1.600000e+01 : f32
    %155 = vector.broadcast %cst_106 : f32 to vector<2x128xf32>
    %156 = arith.divf %154, %155 : vector<2x128xf32>
    %c0_107 = arith.constant 0 : index
    %c0_108 = arith.constant 0 : index
    %157 = vector.load %arg10[%c0_107, %c0_108] : memref<128x32xf32, #tpu.memory_space<vmem>>, vector<128x32xf32>
    %cst_109 = arith.constant dense<0.000000e+00> : vector<2x32xf32>
    %158 = tpu.matmul %156, %157, %cst_109 {dimension_numbers = #tpu.dot_dimension_numbers<[1], [0], [0], [1], [0, 0, 1, 1], [], []>, precision = #tpu.contract_precision<fp32>} : vector<2x128xf32>, vector<128x32xf32>, vector<2x32xf32> -> vector<2x32xf32>
    %c0_110 = arith.constant 0 : index
    %c0_111 = arith.constant 0 : index
    %159 = vector.load %arg11[%c0_110, %c0_111] : memref<1x32xf32, #tpu.memory_space<vmem>>, vector<1x32xf32>
    %160 = vector.broadcast %159 : vector<1x32xf32> to vector<2x32xf32>
    %161 = arith.addf %158, %160 : vector<2x32xf32>
    %cst_112 = arith.constant 0.000000e+00 : f32
    %162 = vector.broadcast %cst_112 : f32 to vector<2x32xf32>
    %163 = arith.maximumf %161, %162 : vector<2x32xf32>
    %c0_113 = arith.constant 0 : index
    %c0_114 = arith.constant 0 : index
    %164 = vector.load %arg12[%c0_113, %c0_114] : memref<1x32xf32, #tpu.memory_space<vmem>>, vector<1x32xf32>
    %165 = vector.broadcast %164 : vector<1x32xf32> to vector<2x32xf32>
    %166 = arith.mulf %163, %165 : vector<2x32xf32>
    %c0_115 = arith.constant 0 : index
    %c0_116 = arith.constant 0 : index
    %167 = vector.load %arg13[%c0_115, %c0_116] : memref<1x32xf32, #tpu.memory_space<vmem>>, vector<1x32xf32>
    %168 = vector.broadcast %167 : vector<1x32xf32> to vector<2x32xf32>
    %169 = arith.addf %166, %168 : vector<2x32xf32>
    %c0_117 = arith.constant 0 : index
    %c0_118 = arith.constant 0 : index
    %170 = vector.load %arg14[%c0_117, %c0_118] : memref<32x128xf32, #tpu.memory_space<vmem>>, vector<32x128xf32>
    %cst_119 = arith.constant dense<0.000000e+00> : vector<2x128xf32>
    %171 = tpu.matmul %169, %170, %cst_119 {dimension_numbers = #tpu.dot_dimension_numbers<[1], [0], [0], [1], [0, 0, 1, 1], [], []>, precision = #tpu.contract_precision<fp32>} : vector<2x32xf32>, vector<32x128xf32>, vector<2x128xf32> -> vector<2x128xf32>
    %c0_120 = arith.constant 0 : index
    %c0_121 = arith.constant 0 : index
    %172 = vector.load %arg15[%c0_120, %c0_121] : memref<1x128xf32, #tpu.memory_space<vmem>>, vector<1x128xf32>
    %173 = vector.broadcast %172 : vector<1x128xf32> to vector<2x128xf32>
    %174 = arith.addf %171, %173 : vector<2x128xf32>
    %175 = arith.negf %174 : vector<2x128xf32>
    %176 = math.exp %175 : vector<2x128xf32>
    %cst_122 = arith.constant 1.000000e+00 : f32
    %177 = vector.broadcast %cst_122 : f32 to vector<2x128xf32>
    %178 = arith.addf %177, %176 : vector<2x128xf32>
    %179 = arith.divf %177, %178 : vector<2x128xf32>
    %180 = vector.shape_cast %179 : vector<2x128xf32> to vector<2x1x128xf32>
    %181 = vector.broadcast %180 : vector<2x1x128xf32> to vector<2x16x128xf32>
    %182 = arith.mulf %153, %181 : vector<2x16x128xf32>
    %183 = arith.addf %182, %0 : vector<2x16x128xf32>
    %c0_123 = arith.constant 0 : index
    %c0_124 = arith.constant 0 : index
    %c0_125 = arith.constant 0 : index
    %184 = vector.load %arg16[%c0_123, %c0_124, %c0_125] : memref<2x16x128xf32, #tpu.memory_space<vmem>>, vector<2x16x128xf32>
    tpu.vector_store %arg16[%c0_123, %c0_124, %c0_125], %183 {strides = array<i32>} : memref<2x16x128xf32, #tpu.memory_space<vmem>>, vector<2x16x128xf32>,
    return
  }
  func.func @transform_0(%arg0: i32) -> (i32, i32, i32) {
    %c0_i32 = arith.constant 0 : i32
    %c0_i32_0 = arith.constant 0 : i32
    %c0_i32_1 = arith.constant 0 : i32
    return %arg0, %c0_i32, %c0_i32_0 : i32, i32, i32
  }
  func.func @transform_1(%arg0: i32) -> (i32, i32) {
    %c0_i32 = arith.constant 0 : i32
    %c0_i32_0 = arith.constant 0 : i32
    %c0_i32_1 = arith.constant 0 : i32
    return %c0_i32, %c0_i32_0 : i32, i32
  }
  func.func @transform_2(%arg0: i32) -> (i32, i32) {
    %c0_i32 = arith.constant 0 : i32
    %c0_i32_0 = arith.constant 0 : i32
    %c0_i32_1 = arith.constant 0 : i32
    return %c0_i32, %c0_i32_0 : i32, i32
  }
  func.func @transform_3(%arg0: i32) -> (i32, i32) {
    %c0_i32 = arith.constant 0 : i32
    %c0_i32_0 = arith.constant 0 : i32
    %c0_i32_1 = arith.constant 0 : i32
    return %c0_i32, %c0_i32_0 : i32, i32
  }
  func.func @transform_4(%arg0: i32) -> (i32, i32) {
    %c0_i32 = arith.constant 0 : i32
    %c0_i32_0 = arith.constant 0 : i32
    %c0_i32_1 = arith.constant 0 : i32
    return %c0_i32, %c0_i32_0 : i32, i32
  }
  func.func @transform_5(%arg0: i32) -> (i32, i32, i32, i32) {
    %c0_i32 = arith.constant 0 : i32
    %c0_i32_0 = arith.constant 0 : i32
    %c0_i32_1 = arith.constant 0 : i32
    %c0_i32_2 = arith.constant 0 : i32
    %c0_i32_3 = arith.constant 0 : i32
    return %c0_i32, %c0_i32_0, %c0_i32_1, %c0_i32_2 : i32, i32, i32, i32
  }
  func.func @transform_6(%arg0: i32) -> (i32, i32, i32) {
    %c0_i32 = arith.constant 0 : i32
    %c0_i32_0 = arith.constant 0 : i32
    %c0_i32_1 = arith.constant 0 : i32
    %c0_i32_2 = arith.constant 0 : i32
    return %c0_i32, %c0_i32_0, %c0_i32_1 : i32, i32, i32
  }
  func.func @transform_7(%arg0: i32) -> (i32, i32, i32) {
    %c0_i32 = arith.constant 0 : i32
    %c0_i32_0 = arith.constant 0 : i32
    %c0_i32_1 = arith.constant 0 : i32
    %c0_i32_2 = arith.constant 0 : i32
    return %c0_i32, %c0_i32_0, %c0_i32_1 : i32, i32, i32
  }
  func.func @transform_8(%arg0: i32) -> (i32, i32, i32) {
    %c0_i32 = arith.constant 0 : i32
    %c0_i32_0 = arith.constant 0 : i32
    %c0_i32_1 = arith.constant 0 : i32
    %c0_i32_2 = arith.constant 0 : i32
    return %c0_i32, %c0_i32_0, %c0_i32_1 : i32, i32, i32
  }
  func.func @transform_9(%arg0: i32) -> (i32, i32) {
    %c0_i32 = arith.constant 0 : i32
    %c0_i32_0 = arith.constant 0 : i32
    %c0_i32_1 = arith.constant 0 : i32
    return %c0_i32, %c0_i32_0 : i32, i32
  }
  func.func @transform_10(%arg0: i32) -> (i32, i32) {
    %c0_i32 = arith.constant 0 : i32
    %c0_i32_0 = arith.constant 0 : i32
    %c0_i32_1 = arith.constant 0 : i32
    return %c0_i32, %c0_i32_0 : i32, i32
  }
  func.func @transform_11(%arg0: i32) -> (i32, i32) {
    %c0_i32 = arith.constant 0 : i32
    %c0_i32_0 = arith.constant 0 : i32
    %c0_i32_1 = arith.constant 0 : i32
    return %c0_i32, %c0_i32_0 : i32, i32
  }
  func.func @transform_12(%arg0: i32) -> (i32, i32) {
    %c0_i32 = arith.constant 0 : i32
    %c0_i32_0 = arith.constant 0 : i32
    %c0_i32_1 = arith.constant 0 : i32
    return %c0_i32, %c0_i32_0 : i32, i32
  }
  func.func @transform_13(%arg0: i32) -> (i32, i32) {
    %c0_i32 = arith.constant 0 : i32
    %c0_i32_0 = arith.constant 0 : i32
    %c0_i32_1 = arith.constant 0 : i32
    return %c0_i32, %c0_i32_0 : i32, i32
  }
  func.func @transform_14(%arg0: i32) -> (i32, i32) {
    %c0_i32 = arith.constant 0 : i32
    %c0_i32_0 = arith.constant 0 : i32
    %c0_i32_1 = arith.constant 0 : i32
    return %c0_i32, %c0_i32_0 : i32, i32
  }
  func.func @transform_15(%arg0: i32) -> (i32, i32, i32) {
    %c0_i32 = arith.constant 0 : i32
    %c0_i32_0 = arith.constant 0 : i32
    %c0_i32_1 = arith.constant 0 : i32
    return %arg0, %c0_i32, %c0_i32_0 : i32, i32, i32
  }
}

</mosaic_0001>

<bundles_post_ra>
// kernel: tpu_custom_call.1
= control target key start
LH: loop header
LB: loop body
LE: loop exit
PB: predicated region body
PF: predicated region fallthrough
CT: control target
= control target key end

     0   :  { %s16107_s0 = inlined_call_operand.hbm [shape: f32[4,16,128], index: 0, kind: input, shape index: {}]   ;;  %s16108_s1 = inlined_call_operand.vmem [shape: f32[128,128], index: 1, kind: input, shape index: {}]   ;;  %s16109_s2 = inlined_call_operand.vmem [shape: f32[1,128], index: 2, kind: input, shape index: {}]   ;;  %s16110_s3 = inlined_call_operand.vmem [shape: f32[1,128], index: 3, kind: input, shape index: {}]   ;;  %s16111_s4 = inlined_call_operand.hbm [shape: f32[1,128], index: 4, kind: input, shape index: {}]   ;;  %s16112_s5 = inlined_call_operand.hbm [shape: f32[3,3,32,32], index: 5, kind: input, shape index: {}]   ;;  %s16113_s6 = inlined_call_operand.hbm [shape: f32[3,1,32], index: 6, kind: input, shape index: {}]   ;;  %s16114_s7 = inlined_call_operand.hbm [shape: f32[3,1,32], index: 7, kind: input, shape index: {}]   ;;  %s16115_s8 = inlined_call_operand.hbm [shape: f32[3,1,32], index: 8, kind: input, shape index: {}]   ;;  %s16116_s9 = inlined_call_operand.vmem [shape: f32[128,32], index: 9, kind: input, shape index: {}]   ;;  %s16117_s10 = inlined_call_operand.vmem [shape: f32[1,32], index: 10, kind: input, shape index: {}]   ;;  %s16118_s11 = inlined_call_operand.vmem [shape: f32[1,32], index: 11, kind: input, shape index: {}]   ;;  %s16119_s12 = inlined_call_operand.vmem [shape: f32[1,32], index: 12, kind: input, shape index: {}]   ;;  %s16120_s13 = inlined_call_operand.vmem [shape: f32[32,128], index: 13, kind: input, shape index: {}]   ;;  %s16121_s14 = inlined_call_operand.vmem [shape: f32[1,128], index: 14, kind: input, shape index: {}]   ;;  %s16122_s15 = inlined_call_operand.hbm [shape: f32[4,16,128], index: 15, kind: output, shape index: {}]  }
   0x1   :  { %16221 = sst [smem:[#allocation44_spill]] %s16111_s4 }
   0x2   :  { %16222 = sst [smem:[#allocation45_spill]] %s16113_s6 }
   0x3   :  { %16223 = sst [smem:[#allocation46_spill]] %s16116_s9 }
   0x4   :  { %16224 = sst [smem:[#allocation47_spill]] %s16117_s10 }
   0x5   :  { %16225 = sst [smem:[#allocation48_spill]] %s16118_s11 }
   0x6   :  { %16226 = sst [smem:[#allocation49_spill]] %s16119_s12 }
   0x7   :  { %16227 = sst [smem:[#allocation50_spill]] %s16120_s13 }
   0x8   :  { %16228 = sst [smem:[#allocation51_spill]] %s16121_s14 }
   0x9   :  { %16229 = sst [smem:[#allocation52_spill]] %s16122_s15 }
   0xa   :  { %20 = vsyncpa [#allocation3], 0 }
   0xb   :  { %22 = vsyncpa [#allocation3 + $0x1], 0 }
   0xc   :  { %23 = vsyncpa [#allocation6], 0 }
   0xd   :  { %24 = vsyncpa [#allocation9], 0 }
   0xe   :  { %25 = vsyncpa [#allocation12], 0 }
   0xf   :  { %26 = vsyncpa [#allocation4], 0 }
  0x10   :  { %28 = vsyncpa [#allocation4 + $0x1], 0  ;;  %s13709_s18 = smov 0   ;;  %s13711_s19 = smov 0  }
  0x11   :  { %s13713_s20 = smov 0   ;;  %s13715_s21 = smov 0  }
  0x12 LB: > { %s13609_s22 = smov [#allocation5]   ;;  %s13730_s24 = sadd.s32 4294967295, %s13607_s21   ;;  %s13607_s21 = sphi %s13715_s21, %s16366_s21   ;;  %s13603_s20 = sphi %s13713_s20, %s16365_s20   ;;  %s13599_s19 = sphi %s13711_s19, %s16364_s19   ;;  %s13595_s18 = sphi %s13709_s18, %s16363_s18  }
  0x13   : > { %s407_s23 = sshll.u32 %s13609_s22, 4  ;;  %p9630_p0 = scmp.ge.s32.totalorder %s13607_s21, 1  ;;  %s13735_s23 = int_to_ptr.vmem [resolvable:$true] %s407_s23 }
  0x14   : > { %p16130_p1 = scmp.eq.s32.totalorder %s13730_s24, 0  ;;  %p385_p2 = scmp.lt.s32.totalorder %s13607_s21, 3 }
  0x15   : > { %s13610_s26 = smov [#allocation8]   ;;  %s13611_s29 = smov [#allocation7]  }
  0x16   : > { %p13737_p3 = pnand %p9630_p0, %p385_p2  ;;  %s430_s27 = sshll.u32 %s13610_s26, 4  ;;  %s13744_s27 = int_to_ptr.vmem [resolvable:$true] %s430_s27 }
  0x17   : > { %s417_s30 = sshll.u32 %s13611_s29, 4  ;;  %s16232_s4 = sld [smem:[#allocation44_spill]]  ;;  %s13752_s30 = int_to_ptr.vmem [resolvable:$true] %s417_s30 }
  0x18   : > { %s16230_s25 = scalar_select %p13737_p3, 1, 0 }
  0x19   : > { %p13262_p5 = pneg %p13737_p3 }
  0x1b   : > { %p13748_p6 = pnand %p13262_p5, %p16130_p1 }
  0x1d   : > { %s13359_s22 = scalar_lea.hbm %s16232_s4, 16  ;;  %p13762_p8 = pneg %p13748_p6 }
  0x1e   : > { %p13360_p7 = scmp.ne.s32.totalorder %s16232_s4, %s13359_s22  ;;  %p13366_p11 = scmp.lt.u32.totalorder %s13359_s22, %s16232_s4 }
  0x20   : > { %p13362_p9 = pnand %p13762_p8, %p13360_p7 }
  0x22   : > { %p13363_p10 = pneg %p13362_p9 }
  0x24   : > { %p13368_p12 = pnand %p13366_p11, %p13363_p10 }
  0x26   : > { %13371 = shalt.err (!%p13368_p12)
}
  0x27   : > { %s13372_s14 = scalar_lea.vmem %s13735_s23, 16  ;;  %s13379_s15 = scalar_lea.vmem %s13735_s23, 32 }
  0x28   : > { %p13373_p13 = scmp.ne.s32.totalorder %s13735_s23, %s13372_s14  ;;  %p13380_p5 = scmp.lt.s32.totalorder %s13735_s23, %s13735_s23 }
  0x29   : > { %p13381_p7 = scmp.lt.s32.totalorder %s13379_s15, %s13372_s14 }
  0x2a   : > { %p13375_p0 = pnand %p13373_p13, %p13762_p8 }
  0x2b   : > { %p13382_p9 = por %p13381_p7, %p13380_p5 }
  0x2c   : > { %p13376_p2 = pneg %p13375_p0 }
  0x2e   : > { %p13383_p4 = pnand %p13382_p9, %p13376_p2 }
  0x30   : > { %13386 = shalt.err (!%p13383_p4)
}
  0x31   : > { %13265 = dma.hbm_to_vmem [thread:$0]  (!%p13748_p6), %s16232_s4, 16, %s13735_s23, [#allocation6]  }
  0x32   : > { %s16234_s6 = sld [smem:[#allocation45_spill]] }
  0x38   : > { %s13387_s29 = scalar_lea.hbm %s16234_s6, 48 }
  0x39   : > { %p13388_p10 = scmp.ne.s32.totalorder %s16234_s6, %s13387_s29  ;;  %p13394_p4 = scmp.lt.u32.totalorder %s13387_s29, %s16234_s6 }
  0x3b   : > { %p13390_p11 = pnand %p13388_p10, %p13762_p8 }
  0x3d   : > { %p13391_p12 = pneg %p13390_p11 }
  0x3f   : > { %p13396_p13 = pnand %p13394_p4, %p13391_p12 }
  0x41   : > { %13399 = shalt.err (!%p13396_p13)
}
  0x42   : > { %s13400_s23 = scalar_lea.vmem %s13744_s27, 48  ;;  %s13407_s10 = scalar_lea.vmem %s13744_s27, 64 }
  0x43   : > { %p13401_p0 = scmp.ne.s32.totalorder %s13744_s27, %s13400_s23  ;;  %p13408_p7 = scmp.lt.s32.totalorder %s13744_s27, %s13744_s27 }
  0x44   : > { %p13409_p9 = scmp.lt.s32.totalorder %s13407_s10, %s13400_s23 }
  0x45   : > { %p13403_p2 = pnand %p13401_p0, %p13762_p8 }
  0x46   : > { %p13410_p10 = por %p13409_p9, %p13408_p7 }
  0x47   : > { %p13404_p5 = pneg %p13403_p2 }
  0x49   : > { %p13411_p11 = pnand %p13410_p10, %p13404_p5 }
  0x4b   : > { %13414 = shalt.err (!%p13411_p11)
}
  0x4c   : > { %s16124_s11 = smov 16   ;;  %s16126_s12 = smov 1  }
  0x4d   : > { %13271 = dma.hbm_to_vmem [thread:$0]  (!%p13748_p6), %s16234_s6, 48, %s13744_s27, [#allocation9], %s16124_s11, %s16124_s11, %s16126_s12  }
  0x4e   : > { %s13415_s14 = scalar_lea.hbm %s16112_s5, 4608 }
  0x4f   : > { %p13416_p12 = scmp.ne.s32.totalorder %s16112_s5, %s13415_s14  ;;  %p13422_p0 = scmp.lt.u32.totalorder %s13415_s14, %s16112_s5 }
  0x51   : > { %p13418_p4 = pnand %p13416_p12, %p13762_p8 }
  0x53   : > { %p13419_p13 = pneg %p13418_p4 }
  0x55   : > { %p13424_p2 = pnand %p13422_p0, %p13419_p13 }
  0x57   : > { %13427 = shalt.err (!%p13424_p2)
}
  0x58   : > { %s13428_s27 = scalar_lea.vmem %s13752_s30, 4608  ;;  %p13436_p10 = scmp.lt.s32.totalorder %s13752_s30, %s13752_s30 }
  0x59   : > { %p13429_p5 = scmp.ne.s32.totalorder %s13752_s30, %s13428_s27  ;;  %p13437_p11 = scmp.lt.s32.totalorder %s13428_s27, %s13428_s27 }
  0x5b   : > { %p13431_p7 = pnand %p13429_p5, %p13762_p8  ;;  %p13438_p12 = por %p13437_p11, %p13436_p10 }
  0x5d   : > { %p13432_p9 = pneg %p13431_p7 }
  0x5f   : > { %p13439_p4 = pnand %p13438_p12, %p13432_p9 }
  0x61   : > { %13442 = shalt.err (!%p13439_p4)
}
  0x62   : > { %s13614_s16 = smov 128   ;;  %s13615_s4 = smov 8  }
  0x63   : > { %13268 = dma.hbm_to_vmem [thread:$0]  (!%p13748_p6), %s16112_s5, 4608, %s13752_s30, [#allocation6], %s13614_s16, %s13614_s16, %s13615_s4  }
  0x64   : > { %s13616_s29 = smov [#allocation10]   ;;  %s13617_s15 = smov [#allocation11]  }
  0x65   : > { %s443_s14 = sshll.u32 %s13616_s29, 4  ;;  %s456_s23 = sshll.u32 %s13617_s15, 4  ;;  %s444_s14 = int_to_ptr.vmem [resolvable:$true] %s443_s14  ;;  %s457_s23 = int_to_ptr.vmem [resolvable:$true] %s456_s23 }
  0x66   : > { %s13443_s11 = scalar_lea.hbm %s16114_s7, 48 }
  0x67   : > { %p13444_p13 = scmp.ne.s32.totalorder %s16114_s7, %s13443_s11  ;;  %p13450_p5 = scmp.lt.u32.totalorder %s13443_s11, %s16114_s7 }
  0x69   : > { %p13446_p0 = pnand %p13444_p13, %p13762_p8 }
  0x6b   : > { %p13447_p2 = pneg %p13446_p0 }
  0x6d   : > { %p13452_p7 = pnand %p13450_p5, %p13447_p2 }
  0x6f   : > { %13455 = shalt.err (!%p13452_p7)
}
  0x70   : > { %s13456_s30 = scalar_lea.vmem %s444_s14, 48  ;;  %s13463_s17 = scalar_lea.vmem %s444_s14, 64 }
  0x71   : > { %p13457_p9 = scmp.ne.s32.totalorder %s444_s14, %s13456_s30  ;;  %p13464_p12 = scmp.lt.s32.totalorder %s444_s14, %s444_s14 }
  0x72   : > { %p13465_p4 = scmp.lt.s32.totalorder %s13463_s17, %s13456_s30 }
  0x73   : > { %p13459_p10 = pnand %p13457_p9, %p13762_p8 }
  0x74   : > { %p13466_p1 = por %p13465_p4, %p13464_p12 }
  0x75   : > { %p13460_p11 = pneg %p13459_p10 }
  0x77   : > { %p13467_p3 = pnand %p13466_p1, %p13460_p11 }
  0x79   : > { %13470 = shalt.err (!%p13467_p3)
}
  0x7a   : > { %s16235_s6 = smov 1   ;;  %s16236_s12 = smov 16  }
  0x7b   : > { %13274 = dma.hbm_to_vmem [thread:$0]  (!%p13748_p6), %s16114_s7, 48, %s444_s14, [#allocation9], %s16236_s12, %s16236_s12, %s16235_s6  }
  0x7c   : > { %s13471_s29 = scalar_lea.hbm %s16115_s8, 48 }
  0x7d   : > { %p13472_p1 = scmp.ne.s32.totalorder %s16115_s8, %s13471_s29  ;;  %p13478_p0 = scmp.lt.u32.totalorder %s13471_s29, %s16115_s8 }
  0x7f   : > { %p13474_p3 = pnand %p13472_p1, %p13762_p8 }
  0x81   : > { %p13475_p13 = pneg %p13474_p3 }
  0x83   : > { %p13480_p2 = pnand %p13478_p0, %p13475_p13 }
  0x85   : > { %13483 = shalt.err (!%p13480_p2)
}
  0x86   : > { %s13484_s17 = scalar_lea.vmem %s457_s23, 48  ;;  %s13491_s14 = scalar_lea.vmem %s457_s23, 64 }
  0x87   : > { %p13485_p5 = scmp.ne.s32.totalorder %s457_s23, %s13484_s17  ;;  %p13492_p10 = scmp.lt.s32.totalorder %s457_s23, %s457_s23 }
  0x88   : > { %p13493_p11 = scmp.lt.s32.totalorder %s13491_s14, %s13484_s17 }
  0x89   : > { %p13487_p7 = pnand %p13485_p5, %p13762_p8 }
  0x8a   : > { %p13494_p12 = por %p13493_p11, %p13492_p10 }
  0x8b   : > { %p13488_p9 = pneg %p13487_p7 }
  0x8d   : > { %p13495_p4 = pnand %p13494_p12, %p13488_p9 }
  0x8f   : > { %13498 = shalt.err (!%p13495_p4)
}
  0x90   : > { %13277 = dma.hbm_to_vmem [thread:$0]  (!%p13748_p6), %s16115_s8, 48, %s457_s23, [#allocation12], %s16236_s12, %s16236_s12, %s16235_s6  }
  0x91   : > { %s9629_s28 = sadd.s32 4294967294, %s13607_s21   ;;  %s13881_s26 = sadd.s32 1, %s13607_s21  }
  0x92   : > { %s41_s11 = sadd.s32 1, %s13603_s20  ;;  %s38_s22 = ssub.s32 %s13607_s21, %s13881_s26 }
  0x93   : > { %p48_p8 = scmp.ne.s32.totalorder %s13603_s20, %s13599_s19  ;;  %p39_p1 = scmp.eq.s32.totalorder %s38_s22, 0 }
  0x94   : > { %p49_p3 = scmp.eq.s32.totalorder %s13607_s21, 0  ;;  %p54_p13 = scmp.ne.s32.totalorder %s13599_s19, %s13595_s18 }
  0x95   : > { %p372_p0 = scmp.eq.s32.totalorder %s13730_s24, 1  ;;  %p16237_p5 = scmp.eq.s32.totalorder %s13730_s24, 0 }
  0x96   : > { %s13893_s29 = scalar_select %p39_p1, %s13603_s20, %s41_s11  }
  0x97   : > { %p50_p2 = por %p49_p3, %p48_p8  ;;  %p13897_p7 = por %p16237_p5, %p54_p13 }
  0x98   : > { %p13901_p6 = por %p372_p0, %p48_p8  ;;  %p378_p9 = scmp.eq.s32.totalorder %s9629_s28, 1 }
  0x99   : > { %p13291_p10 = scmp.lt.s32.totalorder %s13607_s21, 2  ;;  %s488_s6 = sand.u32 1, %s13603_s20  }
  0x9a   : > { %s16239_s23 = scalar_select %p13901_p6, 1, 0 }
  0x9b   : > { %p13907_p11 = por %p378_p9, %p54_p13  ;;  %s9637_s10 = sshll.u32 %s488_s6, 5 }
  0x9c   : > { %s9673_s27 = sshll.u32 %s13607_s21, 9  ;;  %s492_s9 = scalar_lea.vmem [#allocation2], %s9637_s10 }
  0x9d   : > { %s16240_s12 = scalar_select %p13907_p11, 1, 0 }
  0x9e   : > { %s13915_s14 = scalar_lea.hbm %s16107_s0, %s9673_s27  ;;  %s500_s13 = sshll.u32 %s492_s9, 4  ;;  %s13921_s13 = int_to_ptr.vmem [resolvable:$true] %s500_s13 }
  0x9f   : > { %p13917_p12 = pnand %p13291_p10, %p50_p2  ;;  %s13923_s11 = scalar_lea.sflag [#allocation3], %s488_s6 }
  0xa0   : > { %s13499_s22 = scalar_lea.hbm %s13915_s14, 512  ;;  %s13504_s30 = scalar_lea.hbm %s16107_s0, 1024 }
  0xa1   : > { %p13500_p4 = scmp.ne.s32.totalorder %s13915_s14, %s13499_s22  ;;  %p13501_p8 = pneg %p13917_p12 }
  0xa2   : > { %p13505_p13 = scmp.lt.u32.totalorder %s13915_s14, %s16107_s0  ;;  %p13506_p0 = scmp.lt.u32.totalorder %s13504_s30, %s13499_s22 }
  0xa3   : > { %p13502_p1 = pnand %p13501_p8, %p13500_p4  ;;  %p13508_p5 = scmp.lt.u32.totalorder %s13499_s22, %s13915_s14 }
  0xa4   : > { %p13507_p2 = por %p13506_p0, %p13505_p13 }
  0xa5   : > { %p13503_p3 = pneg %p13502_p1 }
  0xa6   : > { %p13509_p9 = por %p13508_p5, %p13507_p2 }
  0xa8   : > { %p13510_p10 = pnand %p13509_p9, %p13503_p3 }
  0xaa   : > { %13513 = shalt.err (!%p13510_p10)
}
  0xab   : > { %s13514_s6 = scalar_lea.vmem %s13921_s13, 512  ;;  %s13618_s10 = smov [#allocation2]  }
  0xac   : > { %p13515_p4 = scmp.ne.s32.totalorder %s13921_s13, %s13514_s6  ;;  %s13519_s27 = sshll.u32 %s13618_s10, 4  ;;  %s13520_s27 = int_to_ptr.vmem [resolvable:$false] %s13519_s27 }
  0xad   : > { %s13521_s17 = scalar_lea.vmem %s13520_s27, 1024  ;;  %p13522_p6 = scmp.lt.s32.totalorder %s13921_s13, %s13520_s27 }
  0xae   : > { %p13517_p1 = pnand %p13515_p4, %p13501_p8  ;;  %p13523_p13 = scmp.lt.s32.totalorder %s13521_s17, %s13514_s6 }
  0xb0   : > { %p13518_p11 = pneg %p13517_p1  ;;  %p13524_p0 = por %p13523_p13, %p13522_p6 }
  0xb2   : > { %p13525_p2 = pnand %p13524_p0, %p13518_p11 }
  0xb4   : > { %13528 = shalt.err (!%p13525_p2)
}
  0xb5   : > { %13281 = dma.hbm_to_vmem [thread:$0]  (!%p13917_p12), %s13915_s14, 512, %s13921_s13, %s13923_s11, %s13614_s16, %s13614_s16, %s13615_s4  }
  0xb6   : > { %p16242_p8 = scmp.ne.s32.totalorder %s16230_s25, 0 }
  0xb8   : > { %512 = sbr.rel (%p16242_p8) target bundleno = 2973 (0xb9d), region = 80 }
  0xbf   : > { %s13957_s22 = sand.u32 1, %s13599_s19  }
  0xc0   : > { %s9642_s30 = sshll.u32 %s13957_s22, 5  ;;  %s515_s9 = scalar_lea.sflag [#allocation3], %s13957_s22 }
  0xc1   : > { %s13963_s28 = scalar_lea.vmem [#allocation2], %s9642_s30 }
  0xc2   : > { %13574 = dma.done.wait (%p13897_p7), %s515_s9, 512  }
  0xc3   : > { %13576 = vsyncadd (%p13897_p7), %s515_s9, 4294966784  ;;  %p16243_p6 = scmp.eq.s32.totalorder %s13730_s24, 0 }
  0xc5   : > { %13578 = dma.done.wait (%p16243_p6), [#allocation6], 4624   ;;  %p16244_p11 = pmov %p16243_p6 }
  0xc6   : > { %p16245_p12 = pmov %p16243_p6 }
  0xc7   : > { %13580 = vsyncadd (%p16244_p11), [#allocation6], 4294962672 }
  0xc8   : > { %13582 = dma.done.wait (%p16245_p12), [#allocation9], 96   ;;  %p16246_p3 = pmov %p16243_p6 }
  0xca   : > { %13584 = vsyncadd (%p16246_p3), [#allocation9], 4294967200  ;;  %p16247_p5 = pmov %p16246_p3 }
  0xcb   : > { %p16248_p9 = pmov %p16246_p3 }
  0xcc   : > { %13586 = dma.done.wait (%p16247_p5), [#allocation12], 48  }
  0xcd   : > { %13588 = vsyncadd (%p16248_p9), [#allocation12], 4294967248  ;;  %v591_v0 = vld [vmem:[%s16108_s1] sm:$0xff]  ;;  %v592_v1 = vld [vmem:[%s16108_s1 + $0x8] sm:$0xff]  ;;  %vm1521_vm0 = vcmask 261120   ;;  %s13619_s25 = smov 96  }
  0xce   : > { %v593_v2 = vld [vmem:[%s16108_s1 + $0x10] sm:$0xff]  ;;  %v615_v3 = vand.u32 4294901760, %v591_v0  ;;  %v618_v4 = vand.u32 4294901760, %v592_v1  ;;  %v594_v5 = vld [vmem:[%s16108_s1 + $0x18] sm:$0xff]  ;;  %v595_v7 = vld [vmem:[%s16108_s1 + $0x20] sm:$0xff]  ;;  %s13620_s16 = smov 64  }
  0xcf   : > { %v621_v6 = vand.u32 4294901760, %v593_v2  ;;  %v596_v8 = vld [vmem:[%s16108_s1 + $0x28] sm:$0xff]  ;;  %v624_v9 = vand.u32 4294901760, %v594_v5  ;;  %v627_v11 = vand.u32 4294901760, %v595_v7  ;;  %v14006_v14 = vld [vmem:[%s16108_s1 + $0x30] sm:$0xff]  ;;  %v14011_v15 = vld [vmem:[%s16108_s1 + $0x38] sm:$0xff] }
  0xd0   : > { %v13999_v10 = vpack.c.bf16 %v618_v4, %v615_v3  ;;  %v630_v12 = vand.u32 4294901760, %v596_v8  ;;  %v587_v16 = vld [vmem:[%s13963_s28] sm:$0xff]  ;;  %v633_v19 = vand.u32 4294901760, %v14006_v14  ;;  %v636_v20 = vand.u32 4294901760, %v14011_v15  ;;  %v14031_v22 = vld [vmem:[%s16108_s1 + $0x48] sm:$0xff]  ;;  %v601_v31 = vld [vmem:[%s16108_s1 + $0x50] sm:$0xff] }
  0xd1   : > { %v14001_v13 = vpack.c.bf16 %v624_v9, %v621_v6  ;;  %v14016_v17 = vand.u32 4294901760, %v587_v16  ;;  %v14026_v21 = vld [vmem:[%s16108_s1 + $0x40] sm:$0xff]  ;;  %v588_v24 = vld [vmem:[%s13963_s28 + $0x8] sm:$0xff]  ;;  %v14039_v26 = vsub.f32 %v591_v0, %v615_v3  ;;  %v14041_v27 = vsub.f32 %v592_v1, %v618_v4  ;;  %v602_v32 = vld [vmem:[%s16108_s1 + $0x58] sm:$0xff]  ;;  %s13622_s4 = smov 32   ;;  %s16333_s13 = sld [smem:[#allocation46_spill]] }
  0xd2   : > { %11969 = vmatprep.subr.bf16.mxu0 %v13999_v10  ;;  %v14019_v18 = vpack.c.bf16 %v630_v12, %v627_v11  ;;  %v14048_v28 = vpack.c.bf16 %v636_v20, %v633_v19  ;;  %v639_v29 = vand.u32 4294901760, %v14026_v21  ;;  %v642_v30 = vand.u32 4294901760, %v14031_v22  ;;  %v603_v37 = vld [vmem:[%s16108_s1 + $0x60] sm:$0xff]  ;;  %v604_v43 = vld [vmem:[%s16108_s1 + $0x68] sm:$0xff]  ;;  %v605_v44 = vld [vmem:[%s16108_s1 + $0x70] sm:$0xff]  ;;  %s16353_s27 = sld [smem:[#allocation50_spill]] }
  0xd3   : > { %11971 = vmatpush3.bf16.msra.mxu0 %v13999_v10  ;;  %v14034_v23 = vsub.f32 %v587_v16, %v14016_v17  ;;  %v14061_v34 = vand.u32 4294901760, %v588_v24  ;;  %v14063_v35 = vsub.f32 %v593_v2, %v621_v6  ;;  %v645_v36 = vand.u32 4294901760, %v601_v31  ;;  %v606_v47 = vld [vmem:[%s16108_s1 + $0x78] sm:$0xff]  ;;  %v589_v63 = vld [vmem:[%s13963_s28 + $0x10] sm:$0xff]  ;;  %s16354_s6 = sld [smem:[#allocation47_spill]]  ;;  %s16355_s9 = sld [smem:[#allocation48_spill]] }
  0xd4   : > { %11973 = vmatprep.subr.bf16.mxu0 %v14001_v13  ;;  %v738_v39 = vand.u32 4294901760, %v14039_v26  ;;  %v745_v40 = vand.u32 4294901760, %v14041_v27  ;;  %v14072_v41 = vpack.c.bf16 %v642_v30, %v639_v29  ;;  %v648_v42 = vand.u32 4294901760, %v602_v32  ;;  %s16357_s11 = sld [smem:[#allocation51_spill]]  ;;  %s584_s10 = scalar_lea.vmem [#allocation13], %s9642_s30 }
  0xd5   : > { %v16135_v25 = vand.u32 4294901760, %v14034_v23  ;;  %v14080_v45 = vsub.f32 %v594_v5, %v624_v9  ;;  %v14082_v46 = vsub.f32 %v595_v7, %v627_v11  ;;  %v14088_v48 = vsub.f32 %v588_v24, %v14061_v34  ;;  %v590_v7 = vld [vmem:[%s13963_s28 + $0x18] sm:$0xff]  ;;  %s9508_s17 = sshll.u32 %s584_s10, 4  ;;  %p16360_p10 = scmp.ne.s32.totalorder %s16239_s23, 0  ;;  %s16061_s17 = int_to_ptr.vmem [resolvable:$true] %s9508_s17 }
  0xd6   : > { %16249 = vst [vmem:[#allocation19_spill] sm:$0xff] %v14072_v41  ;;  %v752_v49 = vand.u32 4294901760, %v14063_v35  ;;  %v14091_v50 = vsub.f32 %v596_v8, %v630_v12  ;;  %v651_v51 = vand.u32 4294901760, %v603_v37  ;;  %v654_v52 = vand.u32 4294901760, %v604_v43  ;;  %s13529_s30 = scalar_lea.vmem %s16061_s17, 512  ;;  %s13626_s15 = smov [#allocation13]  }
  0xd7   : > { %11975 = vmatpush3.bf16.msra.mxu0 %v14001_v13  ;;  %v698_v33 = vsub.f32 %v14034_v23, %v16135_v25  ;;  %v657_v53 = vand.u32 4294901760, %v605_v44  ;;  %v739_v54 = vsub.f32 %v14039_v26, %v738_v39  ;;  %v746_v55 = vsub.f32 %v14041_v27, %v745_v40  ;;  %p13530_p7 = scmp.ne.s32.totalorder %s16061_s17, %s13529_s30  ;;  %s13533_s14 = sshll.u32 %s13626_s15, 4  ;;  %s13534_s14 = int_to_ptr.vmem [resolvable:$false] %s13533_s14 }
  0xd8   : > { %11977 = vmatprep.subr.bf16.mxu0 %v14019_v18  ;;  %v14101_v56 = vpack.c.bf16 %v648_v42, %v645_v36  ;;  %v660_v57 = vand.u32 4294901760, %v606_v47  ;;  %v759_v58 = vand.u32 4294901760, %v14080_v45  ;;  %v766_v59 = vand.u32 4294901760, %v14082_v46  ;;  %p13536_p13 = scmp.lt.s32.totalorder %s16061_s17, %s13534_s14 }
  0xd9   : > { %v699_v38 = vand.u32 4294901760, %v698_v33  ;;  %v16134_v60 = vand.u32 4294901760, %v14088_v48  ;;  %v14109_v61 = vsub.f32 %v14063_v35, %v752_v49  ;;  %v773_v62 = vand.u32 4294901760, %v14091_v50  ;;  %p13531_p4 = pnand %p13530_p7, %p16360_p10 }
  0xda   : > { %16250 = vst [vmem:[#allocation20_spill] sm:$0xff] %v14101_v56  ;;  %v14114_v0 = vpack.c.bf16 %v654_v52, %v651_v51  ;;  %v740_v1 = vand.u32 4294901760, %v739_v54  ;;  %v747_v2 = vand.u32 4294901760, %v746_v55  ;;  %v14117_v3 = vpack.c.bf16 %v660_v57, %v657_v53 }
  0xdb   : > { %11979 = vmatpush3.bf16.msra.mxu0 %v14019_v18  ;;  %10512 = vmatprep.mubr.f32.mxu0 %v699_v38  ;;  %v760_v4 = vsub.f32 %v14080_v45, %v759_v58  ;;  %v767_v5 = vsub.f32 %v14082_v46, %v766_v59  ;;  %v14121_v6 = vand.u32 4294901760, %v589_v63  ;;  %v708_v8 = vsub.f32 %v14088_v48, %v16134_v60  ;;  %p13532_p1 = pneg %p13531_p4 }
  0xdc   : > { %11981 = vmatprep.subr.bf16.mxu0 %v14048_v28  ;;  %16251 = vst [vmem:[#allocation21_spill] sm:$0xff] %v14114_v0  ;;  %16252 = vst [vmem:[#allocation22_spill] sm:$0xff] %v14117_v3  ;;  %v754_v9 = vand.u32 4294901760, %v14109_v61  ;;  %v774_v11 = vsub.f32 %v14091_v50, %v773_v62  ;;  %v14132_v12 = vsub.f32 %v14006_v14, %v633_v19  ;;  %v14155_v55 = vand.u32 4294901760, %v590_v7 }
  0xdd   : > { %v14137_v16 = vsub.f32 %v14011_v15, %v636_v20  ;;  %v14140_v24 = vsub.f32 %v14026_v21, %v639_v29  ;;  %v14143_v33 = vsub.f32 %v14031_v22, %v642_v30  ;;  %v14146_v38 = vsub.f32 %v589_v63, %v14121_v6 }
  0xde   : > { %v14149_v54 = vpack.c.bf16 %v747_v2, %v740_v1  ;;  %v14151_v14 = vsub.f32 %v601_v31, %v645_v36  ;;  %v14153_v19 = vsub.f32 %v602_v32, %v648_v42  ;;  %v14158_v15 = vsub.f32 %v603_v37, %v651_v51 }
  0xdf   : > { %11983 = vmatpush3.bf16.msra.mxu0 %v14048_v28  ;;  %v14160_v20 = vsub.f32 %v604_v43, %v654_v52  ;;  %v16133_v21 = vand.u32 4294901760, %v14146_v38  ;;  %v14163_v22 = vsub.f32 %v605_v44, %v657_v53  ;;  %v709_v29 = vand.u32 4294901760, %v708_v8 }
  0xe0   : > { %11985 = vmatprep.subr.bf16.mxu0 %v14072_v41  ;;  %v761_v30 = vand.u32 4294901760, %v760_v4  ;;  %v14165_v61 = vsub.f32 %v606_v47, %v660_v57  ;;  %v14168_v31 = vsub.f32 %v590_v7, %v14155_v55  ;;  %v780_v32 = vand.u32 4294901760, %v14132_v12 }
  0xe1   : > { %v787_v36 = vand.u32 4294901760, %v14137_v16  ;;  %v794_v37 = vand.u32 4294901760, %v14140_v24  ;;  %v801_v42 = vand.u32 4294901760, %v14143_v33  ;;  %v808_v43 = vand.u32 4294901760, %v14151_v14 }
  0xe2   : > { %v815_v44 = vand.u32 4294901760, %v14153_v19  ;;  %v718_v47 = vsub.f32 %v14146_v38, %v16133_v21  ;;  %v16136_v51 = vand.u32 4294901760, %v14168_v31  ;;  %v822_v52 = vand.u32 4294901760, %v14158_v15 }
  0xe3   : > { %11987 = vmatpush3.bf16.msra.mxu0 %v14072_v41  ;;  %v829_v53 = vand.u32 4294901760, %v14160_v20  ;;  %v836_v57 = vand.u32 4294901760, %v14163_v22  ;;  %v14189_v63 = vpack.c.bf16 %v745_v40, %v738_v39  ;;  %v843_v1 = vand.u32 4294901760, %v14165_v61 }
  0xe4   : > { %11989 = vmatprep.subr.bf16.mxu0 %v14101_v56  ;;  %v14194_v2 = vpack.c.bf16 %v759_v58, %v752_v49  ;;  %v14196_v4 = vpack.c.bf16 %v773_v62, %v766_v59  ;;  %v14198_v7 = vpack.c.bf16 %v787_v36, %v780_v32  ;;  %v728_v8 = vsub.f32 %v14168_v31, %v16136_v51 }
  0xe5   : > { %16253 = vst [vmem:[#allocation23_spill] sm:$0xff] %v14189_v63  ;;  %v14203_v21 = vpack.c.bf16 %v801_v42, %v794_v37  ;;  %v14205_v60 = vpack.c.bf16 %v815_v44, %v808_v43  ;;  %v14207_v39 = vpack.c.bf16 %v829_v53, %v822_v52  ;;  %v768_v40 = vand.u32 4294901760, %v767_v5 }
  0xe6   : > { %16254 = vst [vmem:[#allocation24_spill] sm:$0xff] %v14194_v2  ;;  %16255 = vst [vmem:[#allocation25_spill] sm:$0xff] %v14196_v4  ;;  %v775_v25 = vand.u32 4294901760, %v774_v11  ;;  %v719_v49 = vand.u32 4294901760, %v718_v47  ;;  %v14210_v58 = vpack.c.bf16 %v843_v1, %v836_v57  ;;  %v14213_v59 = vpack.c.bf16 %v761_v30, %v754_v9 }
  0xe7   : > { %11991 = vmatpush3.bf16.msra.mxu0 %v14101_v56  ;;  %16256 = vst [vmem:[#allocation26_spill] sm:$0xff] %v14198_v7  ;;  %16257 = vst [vmem:[#allocation27_spill] sm:$0xff] %v14203_v21  ;;  %v781_v62 = vsub.f32 %v14132_v12, %v780_v32  ;;  %v788_v51 = vsub.f32 %v14137_v16, %v787_v36  ;;  %v729_v21 = vand.u32 4294901760, %v728_v8  ;;  %vm1476_vm1 = vcmask 1040384  }
  0xe8   : > { %11993 = vmatprep.subr.bf16.mxu0 %v14114_v0  ;;  %16258 = vst [vmem:[#allocation28_spill] sm:$0xff] %v14205_v60  ;;  %16259 = vst [vmem:[#allocation29_spill] sm:$0xff] %v14207_v39  ;;  %v14218_v39 = vpack.c.bf16 %v775_v25, %v768_v40  ;;  %v795_v47 = vsub.f32 %v14140_v24, %v794_v37  ;;  %v802_v9 = vsub.f32 %v14143_v33, %v801_v42  ;;  %vm1494_vm4 = vcmask 1046528  }
  0xe9   : > { %16260 = vst [vmem:[#allocation30_spill] sm:$0xff] %v14210_v58  ;;  %v782_v5 = vand.u32 4294901760, %v781_v62  ;;  %v789_v11 = vand.u32 4294901760, %v788_v51  ;;  %v809_v30 = vsub.f32 %v14151_v14, %v808_v43  ;;  %v816_v36 = vsub.f32 %v14153_v19, %v815_v44 }
  0xea   : > { %v803_v32 = vand.u32 4294901760, %v802_v9  ;;  %v823_v37 = vsub.f32 %v14158_v15, %v822_v52  ;;  %v830_v51 = vsub.f32 %v14160_v20, %v829_v53  ;;  %v844_v52 = vsub.f32 %v14165_v61, %v843_v1 }
  0xeb   : > { %11995 = vmatpush3.bf16.msra.mxu0 %v14114_v0  ;;  %v14227_v25 = vpack.c.bf16 %v789_v11, %v782_v5  ;;  %v810_v42 = vand.u32 4294901760, %v809_v30  ;;  %v817_v43 = vand.u32 4294901760, %v816_v36  ;;  %v14260_v1 = vpack.c.bf16 %v14080_v45, %v14063_v35 }
  0xec   : > { %11997 = vmatprep.subr.bf16.mxu0 %v14117_v3  ;;  %v824_v8 = vand.u32 4294901760, %v823_v37  ;;  %v831_v44 = vand.u32 4294901760, %v830_v51  ;;  %v845_v53 = vand.u32 4294901760, %v844_v52  ;;  %v14282_v35 = vpack.c.bf16 %v14143_v33, %v14140_v24 }
  0xed   : > { %v14238_v40 = vpack.c.bf16 %v817_v43, %v810_v42  ;;  %16266 = vst [vmem:[#allocation36_spill] sm:$0xff] %v14260_v1  ;;  %v14288_v45 = vpack.c.bf16 %v14153_v19, %v14151_v14  ;;  %v16276_v24 = vand.u32 4294901760, %v14168_v31  ;;  %vm7448_vm7 = vcmask 523264  }
  0xee   : > { %v14244_v62 = vpack.c.bf16 %v831_v44, %v824_v8  ;;  %16269 = vst [vmem:[#allocation39_spill] sm:$0xff] %v14282_v35  ;;  %vm7453_vm8 = vcmask 785408   ;;  %vm13624_vm9 = vmmov 0   ;;  %vm8282_vm10 = vcmask 1041409  }
  0xef   : > { %11999 = vmatpush3.bf16.msra.mxu0 %v14117_v3  ;;  %16262 = vst [vmem:[#allocation32_spill] sm:$0xff] %v14238_v40  ;;  %16270 = vst [vmem:[#allocation40_spill] sm:$0xff] %v14288_v45  ;;  %v16278_v33 = vld [vmem:[#allocation29_spill] sm:$0xff] }
  0xf0   : > { %12001 = vmatprep.subr.bf16.mxu0 %v14149_v54  ;;  %16263 = vst [vmem:[#allocation33_spill] sm:$0xff] %v14244_v62 }
  0xf2   : > { %10513 = vmatmul.mubr.f32.vlgmr.msra.gmra.mrb[0].mxu0 %v709_v29  ;;  %v796_v29 = vand.u32 4294901760, %v795_v47 }
  0xf3   : > { %12003 = vmatpush3.bf16.msra.mxu0 %v14149_v54  ;;  %10515 = vmatprep.mubr.f32.mxu0 %v719_v49  ;;  %v837_v49 = vsub.f32 %v14163_v22, %v836_v57  ;;  %v14254_v57 = vpack.c.bf16 %v14041_v27, %v14039_v26  ;;  %v14268_v26 = vpack.c.bf16 %v14091_v50, %v14082_v46 }
  0xf4   : > { %12005 = vmatprep.subr.bf16.mxu0 %v14213_v59  ;;  %v14276_v27 = vpack.c.bf16 %v14137_v16, %v14132_v12  ;;  %v14294_v46 = vpack.c.bf16 %v14160_v20, %v14158_v15  ;;  %v14300_v50 = vpack.c.bf16 %v14165_v61, %v14163_v22  ;;  %v16273_v12 = vand.u32 4294901760, %v14034_v23  ;;  %v1519_v61 = vld [vmem:[#allocation7 + $0x30] sm:$0xff] }
  0xf5   : > { %v838_v5 = vand.u32 4294901760, %v837_v49  ;;  %16265 = vst [vmem:[#allocation35_spill] sm:$0xff] %v14254_v57  ;;  %16267 = vst [vmem:[#allocation37_spill] sm:$0xff] %v14268_v26  ;;  %v16275_v16 = vand.u32 4294901760, %v14146_v38  ;;  %v1537_v47 = vand.u32 4294901760, %v1519_v61 }
  0xf6   : > { %10516 = vmatmul.mubr.f32.gmra.mrb[2].mxu0 %v729_v21  ;;  %v14233_v21 = vpack.c.bf16 %v803_v32, %v796_v29  ;;  %16268 = vst [vmem:[#allocation38_spill] sm:$0xff] %v14276_v27  ;;  %16271 = vst [vmem:[#allocation41_spill] sm:$0xff] %v14294_v46 }
  0xf7   : > { %12007 = vmatpush3.bf16.msra.mxu0 %v14213_v59  ;;  %10550 = vmatprep.mubr.f32.mxu0 %v14016_v17  ;;  %v14248_v11 = vpack.c.bf16 %v845_v53, %v838_v5  ;;  %16272 = vst [vmem:[#allocation42_spill] sm:$0xff] %v14300_v50  ;;  %v1655_v32 = vsub.f32 %v1519_v61, %v1537_v47  ;;  %v9650_v61 = vld [vmem:[%s16110_s3] ss:$0 sm:$0xff] }
  0xf8   : > { %12009 = vmatprep.subr.bf16.mxu0 %v14218_v39  ;;  %16261 = vst [vmem:[#allocation31_spill] sm:$0xff] %v14233_v21 }
  0xf9   : > { %16264 = vst [vmem:[#allocation34_spill] sm:$0xff] %v14248_v11  ;;  %v1656_v43 = vand.u32 4294901760, %v1655_v32 }
  0xfb   : > { %12011 = vmatpush3.bf16.msra.mxu0 %v14218_v39  ;;  %v1657_v44 = vsub.f32 %v1655_v32, %v1656_v43 }
  0xfc   : > { %12013 = vmatprep.subr.bf16.mxu0 %v14227_v25 }
  0xfd   : > { %v1658_v52 = vand.u32 4294901760, %v1657_v44 }
  0xff   : > { %12015 = vmatpush3.bf16.msra.mxu0 %v14227_v25 }
 0x100   : > { %12017 = vmatprep.subr.bf16.mxu0 %v14233_v21 }
 0x103   : > { %12019 = vmatpush3.bf16.msra.mxu0 %v14233_v21 }
 0x104   : > { %12021 = vmatprep.subr.bf16.mxu0 %v14238_v40 }
 0x107   : > { %12023 = vmatpush3.bf16.msra.mxu0 %v14238_v40 }
 0x108   : > { %12025 = vmatprep.subr.bf16.mxu0 %v14244_v62 }
 0x10b   : > { %12027 = vmatpush3.bf16.msra.mxu0 %v14244_v62 }
 0x10c   : > { %12029 = vmatprep.subr.bf16.mxu0 %v14248_v11 }
 0x10f   : > { %12031 = vmatpush3.bf16.msra.mxu0 %v14248_v11 }
 0x110   : > { %12033 = vmatprep.subr.bf16.mxu0 %v14254_v57 }
 0x112   : > { %10551 = vmatmul.mubr.f32.vlgmr.msra.gmra.mrb[0].mxu0 %v14061_v34 }
 0x113   : > { %12035 = vmatpush3.bf16.msra.mxu0 %v14254_v57  ;;  %10553 = vmatprep.mubr.f32.mxu0 %v14121_v6 }
 0x114   : > { %12037 = vmatprep.subr.bf16.mxu0 %v14260_v1 }
 0x116   : > { %10554 = vmatmul.mubr.f32.gmra.mrb[2].mxu0 %v14155_v55 }
 0x117   : > { %12039 = vmatpush3.bf16.msra.mxu0 %v14260_v1  ;;  %10588 = vmatprep.mubr.f32.mxu0 %v14034_v23  ;;  %v16274_v23 = vand.u32 4294901760, %v14088_v48 }
 0x118   : > { %12041 = vmatprep.subr.bf16.mxu0 %v14268_v26 }
 0x11b   : > { %12043 = vmatpush3.bf16.msra.mxu0 %v14268_v26 }
 0x11c   : > { %12045 = vmatprep.subr.bf16.mxu0 %v14276_v27 }
 0x11f   : > { %12047 = vmatpush3.bf16.msra.mxu0 %v14276_v27 }
 0x120   : > { %12049 = vmatprep.subr.bf16.mxu0 %v14282_v35 }
 0x123   : > { %12051 = vmatpush3.bf16.msra.mxu0 %v14282_v35 }
 0x124   : > { %12053 = vmatprep.subr.bf16.mxu0 %v14288_v45 }
 0x127   : > { %12055 = vmatpush3.bf16.msra.mxu0 %v14288_v45 }
 0x128   : > { %12057 = vmatprep.subr.bf16.mxu0 %v14294_v46 }
 0x12b   : > { %12059 = vmatpush3.bf16.msra.mxu0 %v14294_v46 }
 0x12c   : > { %12061 = vmatprep.subr.bf16.mxu0 %v14300_v50 }
 0x12f   : > { %12063 = vmatpush3.bf16.msra.mxu0 %v14300_v50 }
 0x130   : > { %12065 = vmatprep.subr.bf16.mxu0 %v13999_v10 }
 0x132   : > { %10589 = vmatmul.mubr.f32.vlgmr.msra.gmra.mrb[0].mxu0 %v14088_v48  ;;  %v16277_v48 = vld [vmem:[#allocation27_spill] sm:$0xff] }
 0x133   : > { %12067 = vmatpush3.bf16.msra.mxu0 %v13999_v10  ;;  %10591 = vmatprep.mubr.f32.mxu0 %v14146_v38  ;;  %v1518_v38 = vld [vmem:[#allocation7 + $0x28] sm:$0xff] }
 0x134   : > { %12069 = vmatprep.subr.bf16.mxu0 %v14001_v13  ;;  %v1534_v19 = vand.u32 4294901760, %v1518_v38 }
 0x136   : > { %10592 = vmatmul.mubr.f32.gmra.mrb[2].mxu0 %v14168_v31  ;;  %v1648_v22 = vsub.f32 %v1518_v38, %v1534_v19  ;;  %v1520_v31 = vld [vmem:[#allocation7 + $0x38] sm:$0xff] }
 0x137   : > { %12071 = vmatpush3.bf16.msra.mxu0 %v14001_v13  ;;  %10626 = vmatprep.mubr.f32.mxu0 %v16273_v12  ;;  %v1540_v9 = vand.u32 4294901760, %v1520_v31 }
 0x138   : > { %12073 = vmatprep.subr.bf16.mxu0 %v14019_v18 }
 0x139   : > { %v1662_v36 = vsub.f32 %v1520_v31, %v1540_v9 }
 0x13b   : > { %12075 = vmatpush3.bf16.msra.mxu0 %v14019_v18  ;;  %v1663_v51 = vand.u32 4294901760, %v1662_v36 }
 0x13c   : > { %12077 = vmatprep.subr.bf16.mxu0 %v14048_v28 }
 0x13d   : > { %v1664_v49 = vsub.f32 %v1662_v36, %v1663_v51 }
 0x13f   : > { %12079 = vmatpush3.bf16.msra.mxu0 %v14048_v28  ;;  %v1665_v5 = vand.u32 4294901760, %v1664_v49 }
 0x140   : > { %12081 = vmatprep.subr.bf16.mxu0 %v14072_v41 }
 0x141   : > { %v14383_v53 = vpack.c.bf16 %v1665_v5, %v1658_v52 }
 0x143   : > { %12083 = vmatpush3.bf16.msra.mxu0 %v14072_v41 }
 0x144   : > { %12085 = vmatprep.subr.bf16.mxu0 %v14101_v56 }
 0x147   : > { %12087 = vmatpush3.bf16.msra.mxu0 %v14101_v56 }
 0x148   : > { %12089 = vmatprep.subr.bf16.mxu0 %v14114_v0 }
 0x14b   : > { %12091 = vmatpush3.bf16.msra.mxu0 %v14114_v0 }
 0x14c   : > { %12093 = vmatprep.subr.bf16.mxu0 %v14117_v3 }
 0x14f   : > { %12095 = vmatpush3.bf16.msra.mxu0 %v14117_v3 }
 0x150   : > { %12097 = vmatprep.subr.bf16.mxu0 %v14189_v63 }
 0x152   : > { %10627 = vmatmul.mubr.f32.vlgmr.msra.gmra.mrb[0].mxu0 %v16274_v23  ;;  %v14387_v23 = vpack.c.bf16 %v1662_v36, %v1655_v32 }
 0x153   : > { %12099 = vmatpush3.bf16.msra.mxu0 %v14189_v63  ;;  %10629 = vmatprep.mubr.f32.mxu0 %v16275_v16 }
 0x154   : > { %12101 = vmatprep.subr.bf16.mxu0 %v14194_v2 }
 0x156   : > { %10630 = vmatmul.mubr.f32.gmra.mrb[2].mxu0 %v16276_v24  ;;  %v14391_v24 = vpack.c.bf16 %v1663_v51, %v1656_v43 }
 0x157   : > { %12103 = vmatpush3.bf16.msra.mxu0 %v14194_v2  ;;  %10664 = vmatprep.mubr.f32.mxu0 %v14016_v17  ;;  %v2774_v2 = vld [vmem:[#allocation7 + $0x58] sm:$0xff] }
 0x158   : > { %12105 = vmatprep.subr.bf16.mxu0 %v14196_v4 }
 0x15b   : > { %12107 = vmatpush3.bf16.msra.mxu0 %v14196_v4 }
 0x15c   : > { %12109 = vmatprep.subr.bf16.mxu0 %v14198_v7 }
 0x15f   : > { %12111 = vmatpush3.bf16.msra.mxu0 %v14198_v7 }
 0x160   : > { %12113 = vmatprep.subr.bf16.mxu0 %v16277_v48 }
 0x163   : > { %12115 = vmatpush3.bf16.msra.mxu0 %v16277_v48 }
 0x164   : > { %12117 = vmatprep.subr.bf16.mxu0 %v14205_v60 }
 0x167   : > { %12119 = vmatpush3.bf16.msra.mxu0 %v14205_v60 }
 0x168   : > { %12121 = vmatprep.subr.bf16.mxu0 %v16278_v33 }
 0x16b   : > { %12123 = vmatpush3.bf16.msra.mxu0 %v16278_v33 }
 0x16c   : > { %12125 = vmatprep.subr.bf16.mxu0 %v14210_v58 }
 0x16f   : > { %12127 = vmatpush3.bf16.msra.mxu0 %v14210_v58  ;;  %v1515_v58 = vld [vmem:[#allocation7 + $0x18] sm:$0xff] }
 0x170   : > { %12129 = vmatprep.subr.bf16.mxu0 %v13999_v10 }
 0x172   : > { %10665 = vmatmul.mubr.f32.vlgmr.msra.gmra.mrb[0].mxu0 %v14061_v34 }
 0x173   : > { %12131 = vmatpush3.bf16.msra.mxu0 %v13999_v10  ;;  %10667 = vmatprep.mubr.f32.mxu0 %v14121_v6 }
 0x174   : > { %12133 = vmatprep.subr.bf16.mxu0 %v14001_v13 }
 0x176   : > { %10668 = vmatmul.mubr.f32.gmra.mrb[2].mxu0 %v14155_v55 }
 0x177   : > { %12135 = vmatpush3.bf16.msra.mxu0 %v14001_v13  ;;  %10702 = vmatprep.mubr.f32.mxu0 %v14016_v17  ;;  %v1517_v17 = vld [vmem:[#allocation7 + $0x20] sm:$0xff] }
 0x178   : > { %12137 = vmatprep.subr.bf16.mxu0 %v14019_v18  ;;  %v1531_v14 = vand.u32 4294901760, %v1517_v17 }
 0x17a   : > { %v14372_v15 = vpack.c.bf16 %v1534_v19, %v1531_v14  ;;  %v1641_v20 = vsub.f32 %v1517_v17, %v1531_v14  ;;  %v9649_v17 = vld [vmem:[%s16109_s2] ss:$0 sm:$0xff] }
 0x17b   : > { %12139 = vmatpush3.bf16.msra.mxu0 %v14019_v18 }
 0x17c   : > { %12141 = vmatprep.subr.bf16.mxu0 %v14048_v28  ;;  %12161 = vmatprep.subr.bf16.mxu1 %v14372_v15  ;;  %v1642_v30 = vand.u32 4294901760, %v1641_v20  ;;  %v14385_v12 = vpack.c.bf16 %v1648_v22, %v1641_v20 }
 0x17d   : > { %12163 = vmatpush3.bf16.msra.mxu1 %v14372_v15 }
 0x17f   : > { %12143 = vmatpush3.bf16.msra.mxu0 %v14048_v28 }
 0x180   : > { %12145 = vmatprep.subr.bf16.mxu0 %v14072_v41 }
 0x183   : > { %12147 = vmatpush3.bf16.msra.mxu0 %v14072_v41 }
 0x184   : > { %12149 = vmatprep.subr.bf16.mxu0 %v14101_v56 }
 0x187   : > { %12151 = vmatpush3.bf16.msra.mxu0 %v14101_v56 }
 0x188   : > { %12153 = vmatprep.subr.bf16.mxu0 %v14114_v0 }
 0x18b   : > { %12155 = vmatpush3.bf16.msra.mxu0 %v14114_v0 }
 0x18c   : > { %12157 = vmatprep.subr.bf16.mxu0 %v14117_v3 }
 0x18f   : > { %12159 = vmatpush3.bf16.msra.mxu0 %v14117_v3 }
 0x192   : > { %10703 = vmatmul.mubr.f32.vlgmr.msra.gmra.mrb[0].mxu0 %v14061_v34  ;;  %v1649_v34 = vand.u32 4294901760, %v1648_v22 }
 0x193   : > { %10705 = vmatprep.mubr.f32.mxu0 %v14121_v6  ;;  %v14376_v6 = vpack.c.bf16 %v1540_v9, %v1537_v47 }
 0x194   : > { %v1650_v29 = vsub.f32 %v1648_v22, %v1649_v34  ;;  %v14389_v16 = vpack.c.bf16 %v1649_v34, %v1642_v30  ;;  %v9651_v22 = vld [vmem:[#allocation5] ss:$0 sm:$0xff] }
 0x195   : > { %12165 = vmatprep.subr.bf16.mxu1 %v14376_v6 }
 0x196   : > { %10706 = vmatmul.mubr.f32.gmra.mrb[2].mxu0 %v14155_v55  ;;  %v1643_v55 = vsub.f32 %v1641_v20, %v1642_v30  ;;  %v1651_v42 = vand.u32 4294901760, %v1650_v29  ;;  %12167 = vmatpush3.bf16.msra.mxu1 %v14376_v6 }
 0x198   : > { %v1644_v37 = vand.u32 4294901760, %v1643_v55 }
 0x19a   : > { %v14380_v8 = vpack.c.bf16 %v1651_v42, %v1644_v37 }
 0x19c   : > { %12169 = vmatprep.subr.bf16.mxu1 %v14380_v8 }
 0x265   : > { %v10704_v38 = vpop.f32.mrb[0].mxu0 }
 0x266   : > { %v12964_v14 = vadd.f32 %v10704_v38, %v9649_v17  ;;  %v1362_v19 = vpop.f32.mrb[1].mxu0 }
 0x267   : > { %v12965_v31 = vadd.f32 %v9649_v17, %v1362_v19 }
 0x268   : > { %v1385_v20 = vmax.f32 %v12964_v14, 0.0 }
 0x269   : > { %v1384_v47 = vmax.f32 %v12965_v31, 0.0  ;;  %v10707_v9 = vpop.f32.mrb[2].mxu0 }
 0x26a   : > { %v1396_v30 = vmul.f32 %v9650_v61, %v1385_v20  ;;  %v12966_v34 = vadd.f32 %v10707_v9, %v9649_v17  ;;  %v1374_v55 = vpop.f32.mrb[3].mxu0 }
 0x26b   : > { %v1395_v29 = vmul.f32 %v9650_v61, %v1384_v47  ;;  %v12967_v32 = vadd.f32 %v9649_v17, %v1374_v55 }
 0x26c   : > { %v14399_v36 = vadd.f32 %v9651_v22, %v1396_v30  ;;  %v1387_v37 = vmax.f32 %v12966_v34, 0.0 }
 0x26d   : > { %v14401_v42 = vadd.f32 %v9651_v22, %v1395_v29  ;;  %v1386_v43 = vmax.f32 %v12967_v32, 0.0 }
 0x26e   : > { %v1398_v51 = vmul.f32 %v9650_v61, %v1387_v37  ;;  %v1524_v44 = vsel %vm1521_vm0, %v14399_v36, 0 }
 0x26f   : > { %v1397_v49 = vmul.f32 %v9650_v61, %v1386_v43  ;;  %3442 = vrot.lane.b32.xlu0 %v14401_v42, %s13619_s25  ;;  %v1522_v52 = vsel %vm1521_vm0, %v14401_v42, 0  ;;  %v14408_v5 = vand.u32 4294901760, %v1524_v44 }
 0x270   : > { %v14410_v17 = vadd.f32 %v9651_v22, %v1398_v51  ;;  %v14412_v38 = vand.u32 4294901760, %v1522_v52 }
 0x271   : > { %v14414_v14 = vadd.f32 %v9651_v22, %v1397_v49  ;;  %v14417_v19 = vsub.f32 %v1524_v44, %v14408_v5 }
 0x272   : > { %v14420_v31 = vsub.f32 %v1522_v52, %v14412_v38  ;;  %v1528_v61 = vsel %vm1521_vm0, %v14410_v17, 0  ;;  %v1484_v48 = vrot.slane %v14410_v17, 7 }
 0x273   : > { %3446 = vrot.lane.b32.xlu1 %v14414_v14, %s13619_s25  ;;  %3444 = vrot.lane.b32.xlu0 %v14399_v36, %s13619_s25  ;;  %v16142_v20 = vand.u32 4294901760, %v14417_v19  ;;  %v1526_v47 = vsel %vm1521_vm0, %v14414_v14, 0  ;;  %v14429_v22 = vand.u32 4294901760, %v1528_v61  ;;  %v16284_v33 = vand.u32 4294901760, %v14417_v19 }
 0x274   : > { %v1601_v9 = vand.u32 4294901760, %v14420_v31  ;;  %v14432_v30 = vand.u32 4294901760, %v1526_v47 }
 0x275   : > { %v14435_v34 = vsub.f32 %v1528_v61, %v14429_v22  ;;  %v1612_v29 = vsub.f32 %v14417_v19, %v16142_v20  ;;  %v1514_v20 = vld [vmem:[#allocation7 + $0x10] sm:$0xff] }
 0x276   : > { %v1602_v55 = vsub.f32 %v14420_v31, %v1601_v9  ;;  %v14442_v32 = vsub.f32 %v1526_v47, %v14432_v30 }
 0x277   : > { %3448 = vrot.lane.b32.xlu1 %v14410_v17, %s13619_s25  ;;  %5427 = vrot.lane.b32.xlu0 %v14401_v42, %s13620_s16  ;;  %v16141_v37 = vand.u32 4294901760, %v14435_v34  ;;  %v1613_v44 = vand.u32 4294901760, %v1612_v29  ;;  %v16139_v29 = vmov 0.0  }
 0x278   : > { %v1603_v43 = vand.u32 4294901760, %v1602_v55  ;;  %v1621_v51 = vand.u32 4294901760, %v14442_v32  ;;  %v1410_v55 = vlaneseq }
 0x279   : > { %v1632_v52 = vsub.f32 %v14435_v34, %v16141_v37 }
 0x27a   : > { %10716 = vmatprep.mubr.f32.mxu1 %v1603_v43  ;;  %v1622_v49 = vsub.f32 %v14442_v32, %v1621_v51  ;;  %v14476_v43 = vrot.slane %v16139_v29, 7 }
 0x27b   : > { %5429 = vrot.lane.b32.xlu1 %v14399_v36, %s13620_s16  ;;  %5431 = vrot.lane.b32.xlu0 %v14414_v14, %s13620_s16  ;;  %v1633_v47 = vand.u32 4294901760, %v1632_v52 }
 0x27c   : > { %10717 = vmatmul.mubr.f32.vlgmr.msra.gmra.mrb[0].mxu1 %v1613_v44  ;;  %v1623_v61 = vand.u32 4294901760, %v1622_v49 }
 0x27d   : > { %12171 = vmatpush3.bf16.msra.mxu1 %v14380_v8  ;;  %v14468_v8 = vshrl.u32 %v1410_v55, 7  ;;  %v1480_v55 = vrot.slane %v14399_v36, 7 }
 0x27e   : > { %10719 = vmatprep.mubr.f32.mxu1 %v1623_v61  ;;  %12173 = vmatprep.subr.bf16.mxu1 %v14383_v53 }
 0x27f   : > { %5433 = vrot.lane.b32.xlu1 %v14410_v17, %s13620_s16  ;;  %16279 = vst [vmem:[#allocation43_spill] sm:$0xff] %v14468_v8  ;;  %v1413_v44 = vadd.s32 16, %v14468_v8 }
 0x280   : > { %10720 = vmatmul.mubr.f32.gmra.mrb[2].mxu1 %v1633_v47  ;;  %v1482_v47 = vrot.slane %v14414_v14, 7 }
 0x281   : > { %12175 = vmatpush3.bf16.msra.mxu1 %v14383_v53  ;;  %10730 = vmatprep.mubr.f32.mxu1 %v14412_v38  ;;  %v1419_v53 = vand.u32 15, %v14468_v8  ;;  %v1433_v61 = vand.u32 15, %v1413_v44 }
 0x282   : > { %12177 = vmatprep.subr.bf16.mxu1 %v14385_v12  ;;  %v1483_v44 = vsel %vm1476_vm1, %v1480_v55, %v1482_v47 }
 0x283   : > { %vm14484_vm2 = vcmp.ne.s32.totalorder %v1419_v53, 0  ;;  %vm14497_vm3 = vcmp.ne.s32.totalorder %v1433_v61, 0 }
 0x284   : > { %10731 = vmatmul.mubr.f32.vlgmr.msra.gmra.mrb[0].mxu1 %v14408_v5  ;;  %v1492_v7 = vsel %vm14497_vm3, %v1483_v44, 0.0 }
 0x285   : > { %12179 = vmatpush3.bf16.msra.mxu1 %v14385_v12  ;;  %10733 = vmatprep.mubr.f32.mxu1 %v14432_v30  ;;  %v1478_v12 = vrot.slane %v14401_v42, 7 }
 0x286   : > { %12181 = vmatprep.subr.bf16.mxu1 %v14387_v23 }
 0x287   : > { %v1479_v52 = vsel %vm1476_vm1, %v14476_v43, %v1478_v12  ;;  %v1481_v60 = vsel %vm1476_vm1, %v1478_v12, %v1480_v55  ;;  %v16285_v55 = vand.u32 4294901760, %v14435_v34 }
 0x288   : > { %10734 = vmatmul.mubr.f32.gmra.mrb[2].mxu1 %v14429_v22  ;;  %v1490_v53 = vsel %vm14484_vm2, %v1479_v52, 0.0  ;;  %v2148_v12 = vsel %vm1521_vm0, %v1481_v60, 0 }
 0x289   : > { %12183 = vmatpush3.bf16.msra.mxu1 %v14387_v23  ;;  %10744 = vmatprep.mubr.f32.mxu1 %v14420_v31  ;;  %v1512_v23 = vld [vmem:[#allocation7] sm:$0xff]  ;;  %v1513_v31 = vld [vmem:[#allocation7 + $0x8] sm:$0xff] }
 0x28a   : > { %12185 = vmatprep.subr.bf16.mxu1 %v14372_v15  ;;  %v2160_v29 = vand.u32 4294901760, %v1513_v31 }
 0x28c   : > { %10745 = vmatmul.mubr.f32.vlgmr.msra.gmra.mrb[0].mxu1 %v14417_v19  ;;  %v14510_v61 = vsub.f32 %v1513_v31, %v2160_v29  ;;  %v2163_v19 = vand.u32 4294901760, %v1514_v20 }
 0x28d   : > { %12187 = vmatpush3.bf16.msra.mxu1 %v14372_v15  ;;  %10747 = vmatprep.mubr.f32.mxu1 %v14442_v32  ;;  %v2157_v32 = vand.u32 4294901760, %v1512_v23 }
 0x28e   : > { %12189 = vmatprep.subr.bf16.mxu1 %v14376_v6  ;;  %v16153_v31 = vand.u32 4294901760, %v14510_v61  ;;  %v14529_v60 = vsub.f32 %v1514_v20, %v2163_v19 }
 0x28f   : > { %v14508_v52 = vsub.f32 %v1512_v23, %v2157_v32 }
 0x290   : > { %10748 = vmatmul.mubr.f32.gmra.mrb[2].mxu1 %v14435_v34  ;;  %v2276_v20 = vsub.f32 %v14510_v61, %v16153_v31 }
 0x291   : > { %12191 = vmatpush3.bf16.msra.mxu1 %v14376_v6  ;;  %10758 = vmatprep.mubr.f32.mxu1 %v1601_v9  ;;  %v2145_v9 = vsel %vm1521_vm0, %v1490_v53, 0  ;;  %v16154_v23 = vand.u32 4294901760, %v14508_v52  ;;  %v14527_v53 = vand.u32 4294901760, %v2148_v12 }
 0x292   : > { %12193 = vmatprep.subr.bf16.mxu1 %v14389_v16  ;;  %v14515_v4 = vand.u32 4294901760, %v2145_v9  ;;  %v2277_v31 = vand.u32 4294901760, %v2276_v20 }
 0x293   : > { %v14552_v44 = vsub.f32 %v2148_v12, %v14527_v53 }
 0x294   : > { %10759 = vmatmul.mubr.f32.vlgmr.msra.gmra.mrb[0].mxu1 %v16284_v33  ;;  %v2166_v33 = vand.u32 4294901760, %v1515_v58 }
 0x295   : > { %12195 = vmatpush3.bf16.msra.mxu1 %v14389_v16  ;;  %10761 = vmatprep.mubr.f32.mxu1 %v1621_v51  ;;  %v2151_v16 = vsel %vm1521_vm0, %v1492_v7, 0  ;;  %v1485_v51 = vsel %vm1476_vm1, %v1482_v47, %v1484_v48  ;;  %v14534_v7 = vsub.f32 %v2145_v9, %v14515_v4  ;;  %v14542_v47 = vpack.c.bf16 %v2160_v29, %v2157_v32 }
 0x296   : > { %12197 = vmatprep.subr.bf16.mxu1 %v14391_v24  ;;  %v14531_v34 = vsub.f32 %v1515_v58, %v2166_v33  ;;  %v14536_v48 = vand.u32 4294901760, %v2151_v16  ;;  %v2269_v58 = vsub.f32 %v14508_v52, %v16154_v23  ;;  %v16156_v9 = vand.u32 4294901760, %v14529_v60 }
 0x297   : > { %v16159_v23 = vand.u32 4294901760, %v14552_v44  ;;  %v16295_v63 = vand.u32 4294901760, %v14552_v44 }
 0x298   : > { %10762 = vmatmul.mubr.f32.gmra.mrb[2].mxu1 %v16285_v55  ;;  %v14560_v32 = vsub.f32 %v2151_v16, %v14536_v48  ;;  %v2270_v12 = vand.u32 4294901760, %v2269_v58  ;;  %v2283_v29 = vsub.f32 %v14529_v60, %v16156_v9 }
 0x299   : > { %12199 = vmatpush3.bf16.msra.mxu1 %v14391_v24  ;;  %10772 = vmatprep.mubr.f32.mxu1 %v14412_v38  ;;  %v2154_v24 = vsel %vm1521_vm0, %v1485_v51, 0  ;;  %v14565_v51 = vpack.c.bf16 %v2166_v33, %v2163_v19 }
 0x29a   : > { %12201 = vmatprep.subr.bf16.mxu1 %v14372_v15  ;;  %v14556_v55 = vand.u32 4294901760, %v2154_v24  ;;  %v16158_v33 = vand.u32 4294901760, %v14560_v32  ;;  %v12216_v58 = vpack.c.bf16 %v2277_v31, %v2270_v12  ;;  %v2284_v20 = vand.u32 4294901760, %v2283_v29 }
 0x29c   : > { %10773 = vmatmul.mubr.f32.vlgmr.msra.gmra.mrb[0].mxu1 %v14408_v5 }
 0x29d   : > { %12203 = vmatpush3.bf16.msra.mxu1 %v14372_v15  ;;  %10775 = vmatprep.mubr.f32.mxu1 %v14432_v30  ;;  %v16155_v15 = vand.u32 4294901760, %v14531_v34 }
 0x29e   : > { %12205 = vmatprep.subr.bf16.mxu1 %v14376_v6 }
 0x29f   : > { %v2290_v16 = vsub.f32 %v14531_v34, %v16155_v15 }
 0x2a0   : > { %10776 = vmatmul.mubr.f32.gmra.mrb[2].mxu1 %v14429_v22 }
 0x2a1   : > { %12207 = vmatpush3.bf16.msra.mxu1 %v14376_v6  ;;  %10786 = vmatprep.mubr.f32.mxu1 %v14412_v38  ;;  %v14576_v6 = vsub.f32 %v2154_v24, %v14556_v55  ;;  %v16286_v38 = vand.u32 4294901760, %v14534_v7  ;;  %v2238_v24 = vsub.f32 %v14552_v44, %v16159_v23  ;;  %v2291_v15 = vand.u32 4294901760, %v2290_v16 }
 0x2a2   : > { %12209 = vmatprep.subr.bf16.mxu1 %v14542_v47  ;;  %v1500_v23 = vrot.slane %v14410_v17, 1 }
 0x2a3   : > { %v2228_v19 = vsub.f32 %v14534_v7, %v16286_v38  ;;  %v16157_v9 = vand.u32 4294901760, %v14576_v6  ;;  %v12220_v31 = vpack.c.bf16 %v2291_v15, %v2284_v20  ;;  %v1412_v15 = vadd.s32 8, %v14468_v8 }
 0x2a4   : > { %10787 = vmatmul.mubr.f32.vlgmr.msra.gmra.mrb[0].mxu1 %v14408_v5  ;;  %v2248_v5 = vsub.f32 %v14560_v32, %v16158_v33  ;;  %v1498_v20 = vrot.slane %v14414_v14, 1 }
 0x2a5   : > { %12211 = vmatpush3.bf16.msra.mxu1 %v14542_v47  ;;  %10789 = vmatprep.mubr.f32.mxu1 %v14432_v30  ;;  %v2229_v38 = vand.u32 4294901760, %v2228_v19  ;;  %v2239_v30 = vand.u32 4294901760, %v2238_v24  ;;  %v2258_v29 = vsub.f32 %v14576_v6, %v16157_v9  ;;  %v12224_v19 = vpack.c.bf16 %v14510_v61, %v14508_v52 }
 0x2a6   : > { %12213 = vmatprep.subr.bf16.mxu1 %v14565_v51  ;;  %v2249_v12 = vand.u32 4294901760, %v2248_v5  ;;  %v1414_v24 = vadd.s32 24, %v14468_v8  ;;  %v1495_v5 = vrot.slane %v14401_v42, 1  ;;  %v16291_v9 = vmov 0.0  }
 0x2a7   : > { %v2259_v16 = vand.u32 4294901760, %v2258_v29  ;;  %v16288_v29 = vand.u32 4294901760, %v14510_v61  ;;  %v14627_v33 = vrot.slane %v16291_v9, 1  ;;  %v2773_v9 = vld [vmem:[#allocation7 + $0x50] sm:$0xff] }
 0x2a8   : > { %10790 = vmatmul.mubr.f32.gmra.mrb[2].mxu1 %v14429_v22  ;;  %v12228_v22 = vpack.c.bf16 %v14531_v34, %v14529_v60 }
 0x2a9   : > { %12215 = vmatpush3.bf16.msra.mxu1 %v14565_v51  ;;  %10800 = vmatprep.mubr.f32.mxu1 %v2229_v38  ;;  %v2771_v38 = vld [vmem:[#allocation7 + $0x40] sm:$0xff] }
 0x2aa   : > { %12217 = vmatprep.subr.bf16.mxu1 %v12216_v58 }
 0x2ac   : > { %10801 = vmatmul.mubr.f32.vlgmr.msra.gmra.mrb[0].mxu1 %v2239_v30  ;;  %v1496_v30 = vrot.slane %v14399_v36, 1 }
 0x2ad   : > { %12219 = vmatpush3.bf16.msra.mxu1 %v12216_v58  ;;  %10803 = vmatprep.mubr.f32.mxu1 %v2249_v12  ;;  %v1426_v58 = vand.u32 15, %v1412_v15  ;;  %v1440_v15 = vand.u32 15, %v1414_v24  ;;  %v16294_v24 = vand.u32 4294901760, %v14531_v34  ;;  %v1501_v34 = vsel %vm1494_vm4, %v1498_v20, %v1500_v23 }
 0x2ae   : > { %12221 = vmatprep.subr.bf16.mxu1 %v12220_v31 }
 0x2af   : > { %vm14622_vm5 = vcmp.ne.s32.totalorder %v1426_v58, 15  ;;  %v16293_v58 = vand.u32 4294901760, %v14529_v60  ;;  %vm14651_vm6 = vcmp.ne.s32.totalorder %v1440_v15, 15 }
 0x2b0   : > { %10804 = vmatmul.mubr.f32.gmra.mrb[2].mxu1 %v2259_v16  ;;  %v2772_v16 = vld [vmem:[#allocation7 + $0x48] sm:$0xff] }
 0x2b1   : > { %12223 = vmatpush3.bf16.msra.mxu1 %v12220_v31  ;;  %10814 = vmatprep.mubr.f32.mxu1 %v14515_v4  ;;  %v16287_v31 = vand.u32 4294901760, %v14508_v52  ;;  %v16292_v52 = vand.u32 4294901760, %v14534_v7  ;;  %v2791_v61 = vand.u32 4294901760, %v2772_v16  ;;  %v12244_v8 = vpack.c.bf16 %v16294_v24, %v16293_v58 }
 0x2b2   : > { %12225 = vmatprep.subr.bf16.mxu1 %v12224_v19 }
 0x2b3   : > { %v12240_v12 = vpack.c.bf16 %v16288_v29, %v16287_v31  ;;  %v1497_v31 = vsel %vm1494_vm4, %v1495_v5, %v1496_v30  ;;  %v1499_v29 = vsel %vm1494_vm4, %v1496_v30, %v1498_v20  ;;  %v16296_v30 = vand.u32 4294901760, %v14560_v32 }
 0x2b4   : > { %10815 = vmatmul.mubr.f32.vlgmr.msra.gmra.mrb[0].mxu1 %v14527_v53  ;;  %v1509_v5 = vsel %vm14622_vm5, %v1499_v29, 0.0  ;;  %v14648_v60 = vsub.f32 %v2772_v16, %v2791_v61  ;;  %v2782_v16 = vsel %vm1521_vm0, %v1501_v34, 0 }
 0x2b5   : > { %12227 = vmatpush3.bf16.msra.mxu1 %v12224_v19  ;;  %10817 = vmatprep.mubr.f32.mxu1 %v14536_v48  ;;  %v2788_v19 = vand.u32 4294901760, %v2771_v38 }
 0x2b6   : > { %12229 = vmatprep.subr.bf16.mxu1 %v12228_v22  ;;  %v16166_v15 = vand.u32 4294901760, %v14648_v60 }
 0x2b7   : > { %v14684_v34 = vpack.c.bf16 %v2791_v61, %v2788_v19 }
 0x2b8   : > { %10818 = vmatmul.mubr.f32.gmra.mrb[2].mxu1 %v14556_v55 }
 0x2b9   : > { %12231 = vmatpush3.bf16.msra.mxu1 %v12228_v22  ;;  %10828 = vmatprep.mubr.f32.mxu1 %v14534_v7  ;;  %v2776_v7 = vsel %vm1521_vm0, %v1497_v31, 0 }
 0x2ba   : > { %12233 = vmatprep.subr.bf16.mxu1 %v14542_v47  ;;  %v14657_v31 = vand.u32 4294901760, %v2776_v7 }
 0x2bc   : > { %10829 = vmatmul.mubr.f32.vlgmr.msra.gmra.mrb[0].mxu1 %v14552_v44  ;;  %v2794_v44 = vand.u32 4294901760, %v2773_v9 }
 0x2bd   : > { %12235 = vmatpush3.bf16.msra.mxu1 %v14542_v47  ;;  %10831 = vmatprep.mubr.f32.mxu1 %v14560_v32  ;;  %v16299_v32 = vand.u32 4294901760, %v14576_v6 }
 0x2be   : > { %12237 = vmatprep.subr.bf16.mxu1 %v14565_v51  ;;  %v14671_v24 = vsub.f32 %v2773_v9, %v2794_v44  ;;  %v2907_v9 = vsub.f32 %v14648_v60, %v16166_v15 }
 0x2c0   : > { %10832 = vmatmul.mubr.f32.gmra.mrb[2].mxu1 %v14576_v6  ;;  %v2908_v15 = vand.u32 4294901760, %v2907_v9 }
 0x2c1   : > { %12239 = vmatpush3.bf16.msra.mxu1 %v14565_v51  ;;  %10842 = vmatprep.mubr.f32.mxu1 %v16292_v52  ;;  %v14642_v52 = vsub.f32 %v2771_v38, %v2788_v19  ;;  %v2797_v38 = vand.u32 4294901760, %v2774_v2 }
 0x2c2   : > { %12241 = vmatprep.subr.bf16.mxu1 %v12240_v12 }
 0x2c3   : > { %v14673_v6 = vsub.f32 %v2774_v2, %v2797_v38 }
 0x2c4   : > { %10843 = vmatmul.mubr.f32.vlgmr.msra.gmra.mrb[0].mxu1 %v16295_v63  ;;  %v1503_v63 = vsel %vm1494_vm4, %v1500_v23, %v14627_v33  ;;  %v16167_v23 = vand.u32 4294901760, %v14642_v52 }
 0x2c5   : > { %12243 = vmatpush3.bf16.msra.mxu1 %v12240_v12  ;;  %10845 = vmatprep.mubr.f32.mxu1 %v16296_v30  ;;  %v2779_v12 = vsel %vm1521_vm0, %v1509_v5, 0  ;;  %v1511_v20 = vsel %vm14651_vm6, %v1503_v63, 0.0  ;;  %v14676_v5 = vsub.f32 %v2776_v7, %v14657_v31  ;;  %v14678_v30 = vand.u32 4294901760, %v2782_v16 }
 0x2c6   : > { %12245 = vmatprep.subr.bf16.mxu1 %v12244_v8  ;;  %v14669_v29 = vand.u32 4294901760, %v2779_v12  ;;  %v2900_v2 = vsub.f32 %v14642_v52, %v16167_v23  ;;  %v16170_v63 = vand.u32 4294901760, %v14671_v24 }
 0x2c7   : > { %v2858_v19 = vand.u32 4294901760, %v14676_v5  ;;  %v14702_v61 = vsub.f32 %v2782_v16, %v14678_v30  ;;  %v16300_v16 = vand.u32 4294901760, %v14673_v6 }
 0x2c8   : > { %10846 = vmatmul.mubr.f32.gmra.mrb[2].mxu1 %v16299_v32  ;;  %v14694_v7 = vsub.f32 %v2779_v12, %v14669_v29  ;;  %v2901_v12 = vand.u32 4294901760, %v2900_v2 }
 0x2c9   : > { %12247 = vmatpush3.bf16.msra.mxu1 %v12244_v8  ;;  %10856 = vmatprep.mubr.f32.mxu1 %v14515_v4  ;;  %v2785_v8 = vsel %vm1521_vm0, %v1511_v20, 0  ;;  %v14707_v20 = vpack.c.bf16 %v2797_v38, %v2794_v44  ;;  %v2921_v50 = vsub.f32 %v14673_v6, %v16300_v16  ;;  %v2878_v44 = vand.u32 4294901760, %v14702_v61 }
 0x2ca   : > { %12249 = vmatprep.subr.bf16.mxu1 %v14542_v47  ;;  %v14698_v32 = vand.u32 4294901760, %v2785_v8  ;;  %v2868_v23 = vand.u32 4294901760, %v14694_v7  ;;  %v12264_v38 = vpack.c.bf16 %v2908_v15, %v2901_v12 }
 0x2cc   : > { %10857 = vmatmul.mubr.f32.vlgmr.msra.gmra.mrb[0].mxu1 %v14527_v53  ;;  %v2869_v2 = vsub.f32 %v14694_v7, %v2868_v23 }
 0x2cd   : > { %12251 = vmatpush3.bf16.msra.mxu1 %v14542_v47  ;;  %10859 = vmatprep.mubr.f32.mxu1 %v14536_v48  ;;  %v2914_v47 = vsub.f32 %v14671_v24, %v16170_v63  ;;  %v2922_v63 = vand.u32 4294901760, %v2921_v50  ;;  %v12272_v50 = vpack.c.bf16 %v14648_v60, %v14642_v52 }
 0x2ce   : > { %12253 = vmatprep.subr.bf16.mxu1 %v14565_v51 }
 0x2cf   : > { %v2915_v9 = vand.u32 4294901760, %v2914_v47 }
 0x2d0   : > { %10860 = vmatmul.mubr.f32.gmra.mrb[2].mxu1 %v14556_v55 }
 0x2d1   : > { %12255 = vmatpush3.bf16.msra.mxu1 %v14565_v51  ;;  %10870 = vmatprep.mubr.f32.mxu1 %v14515_v4  ;;  %v2887_v51 = vsub.f32 %v2785_v8, %v14698_v32  ;;  %v2859_v4 = vsub.f32 %v14676_v5, %v2858_v19  ;;  %v2879_v8 = vsub.f32 %v14702_v61, %v2878_v44 }
 0x2d2   : > { %12257 = vmatprep.subr.bf16.mxu1 %v14684_v34  ;;  %v12268_v45 = vpack.c.bf16 %v2922_v63, %v2915_v9 }
 0x2d3   : > { %v2888_v16 = vand.u32 4294901760, %v2887_v51  ;;  %v2860_v46 = vand.u32 4294901760, %v2859_v4  ;;  %v2880_v15 = vand.u32 4294901760, %v2879_v8 }
 0x2d4   : > { %10871 = vmatmul.mubr.f32.vlgmr.msra.gmra.mrb[0].mxu1 %v14527_v53  ;;  %v2870_v53 = vand.u32 4294901760, %v2869_v2 }
 0x2d5   : > { %12259 = vmatpush3.bf16.msra.mxu1 %v14684_v34  ;;  %10873 = vmatprep.mubr.f32.mxu1 %v14536_v48  ;;  %v2889_v48 = vsub.f32 %v2887_v51, %v2888_v16 }
 0x2d6   : > { %12261 = vmatprep.subr.bf16.mxu1 %v14707_v20 }
 0x2d7   : > { %v2890_v47 = vand.u32 4294901760, %v2889_v48 }
 0x2d8   : > { %10874 = vmatmul.mubr.f32.gmra.mrb[2].mxu1 %v14556_v55  ;;  %v16302_v55 = vand.u32 4294901760, %v14648_v60  ;;  %v3501_v60 = vld [vmem:[#allocation7 + $0x88] sm:$0xff] }
 0x2d9   : > { %12263 = vmatpush3.bf16.msra.mxu1 %v14707_v20  ;;  %10884 = vmatprep.mubr.f32.mxu1 %v2860_v46  ;;  %v12276_v46 = vpack.c.bf16 %v14673_v6, %v14671_v24 }
 0x2da   : > { %12265 = vmatprep.subr.bf16.mxu1 %v12264_v38 }
 0x2dc   : > { %10885 = vmatmul.mubr.f32.vlgmr.msra.gmra.mrb[0].mxu1 %v2870_v53 }
 0x2dd   : > { %12267 = vmatpush3.bf16.msra.mxu1 %v12264_v38  ;;  %10887 = vmatprep.mubr.f32.mxu1 %v2880_v15 }
 0x2de   : > { %12269 = vmatprep.subr.bf16.mxu1 %v12268_v45 }
 0x2e0   : > { %10888 = vmatmul.mubr.f32.gmra.mrb[2].mxu1 %v2890_v47 }
 0x2e1   : > { %12271 = vmatpush3.bf16.msra.mxu1 %v12268_v45  ;;  %10898 = vmatprep.mubr.f32.mxu1 %v14657_v31  ;;  %v16301_v45 = vand.u32 4294901760, %v14642_v52  ;;  %v3500_v52 = vld [vmem:[#allocation7 + $0x80] sm:$0xff] }
 0x2e2   : > { %12273 = vmatprep.subr.bf16.mxu1 %v12272_v50 }
 0x2e3   : > { %v12288_v63 = vpack.c.bf16 %v16302_v55, %v16301_v45 }
 0x2e4   : > { %10899 = vmatmul.mubr.f32.vlgmr.msra.gmra.mrb[0].mxu1 %v14669_v29 }
 0x2e5   : > { %12275 = vmatpush3.bf16.msra.mxu1 %v12272_v50  ;;  %10901 = vmatprep.mubr.f32.mxu1 %v14678_v30 }
 0x2e6   : > { %12277 = vmatprep.subr.bf16.mxu1 %v12276_v46 }
 0x2e8   : > { %10902 = vmatmul.mubr.f32.gmra.mrb[2].mxu1 %v14698_v32 }
 0x2e9   : > { %12279 = vmatpush3.bf16.msra.mxu1 %v12276_v46  ;;  %10912 = vmatprep.mubr.f32.mxu1 %v14676_v5  ;;  %v16303_v5 = vand.u32 4294901760, %v14671_v24  ;;  %v3513_v24 = vand.u32 4294901760, %v3500_v52 }
 0x2ea   : > { %12281 = vmatprep.subr.bf16.mxu1 %v14684_v34 }
 0x2ec   : > { %10913 = vmatmul.mubr.f32.vlgmr.msra.gmra.mrb[0].mxu1 %v14694_v7  ;;  %v16304_v7 = vand.u32 4294901760, %v14673_v6  ;;  %v3516_v6 = vand.u32 4294901760, %v3501_v60 }
 0x2ed   : > { %12283 = vmatpush3.bf16.msra.mxu1 %v14684_v34  ;;  %10915 = vmatprep.mubr.f32.mxu1 %v14702_v61 }
 0x2ee   : > { %12285 = vmatprep.subr.bf16.mxu1 %v14707_v20  ;;  %v12292_v12 = vpack.c.bf16 %v16304_v7, %v16303_v5 }
 0x2f0   : > { %10916 = vmatmul.mubr.f32.gmra.mrb[2].mxu1 %v2887_v51  ;;  %v14763_v51 = vpack.c.bf16 %v3516_v6, %v3513_v24 }
 0x2f1   : > { %12287 = vmatpush3.bf16.msra.mxu1 %v14707_v20  ;;  %10926 = vmatprep.mubr.f32.mxu1 %v2858_v19 }
 0x2f2   : > { %12289 = vmatprep.subr.bf16.mxu1 %v12288_v63 }
 0x2f4   : > { %10927 = vmatmul.mubr.f32.vlgmr.msra.gmra.mrb[0].mxu1 %v2868_v23  ;;  %v3502_v23 = vld [vmem:[#allocation7 + $0x90] sm:$0xff] }
 0x2f5   : > { %12291 = vmatpush3.bf16.msra.mxu1 %v12288_v63  ;;  %10929 = vmatprep.mubr.f32.mxu1 %v2878_v44  ;;  %v3519_v19 = vand.u32 4294901760, %v3502_v23 }
 0x2f6   : > { %12293 = vmatprep.subr.bf16.mxu1 %v12292_v12 }
 0x2f7   : > { %v3637_v38 = vsub.f32 %v3502_v23, %v3519_v19 }
 0x2f8   : > { %10930 = vmatmul.mubr.f32.gmra.mrb[2].mxu1 %v2888_v16 }
 0x2f9   : > { %12295 = vmatpush3.bf16.msra.mxu1 %v12292_v12  ;;  %10940 = vmatprep.mubr.f32.mxu1 %v14657_v31  ;;  %v3638_v8 = vand.u32 4294901760, %v3637_v38  ;;  %v9652_v12 = vld [vmem:[#allocation8] ss:$0 sm:$0xff] }
 0x2fa   : > { %12297 = vmatprep.subr.bf16.mxu1 %v14684_v34 }
 0x2fb   : > { %v3639_v47 = vsub.f32 %v3637_v38, %v3638_v8 }
 0x2fc   : > { %10941 = vmatmul.mubr.f32.vlgmr.msra.gmra.mrb[0].mxu1 %v14669_v29 }
 0x2fd   : > { %12299 = vmatpush3.bf16.msra.mxu1 %v14684_v34  ;;  %10943 = vmatprep.mubr.f32.mxu1 %v14678_v30  ;;  %v3503_v34 = vld [vmem:[#allocation7 + $0x98] sm:$0xff]  ;;  %v3640_v46 = vand.u32 4294901760, %v3639_v47 }
 0x2fe   : > { %12301 = vmatprep.subr.bf16.mxu1 %v14707_v20  ;;  %v3522_v61 = vand.u32 4294901760, %v3503_v34 }
 0x300   : > { %10944 = vmatmul.mubr.f32.gmra.mrb[2].mxu1 %v14698_v32  ;;  %v14765_v4 = vpack.c.bf16 %v3522_v61, %v3519_v19  ;;  %v3644_v2 = vsub.f32 %v3503_v34, %v3522_v61  ;;  %v9654_v61 = vld [vmem:[#allocation11] ss:$0 sm:$0xff] }
 0x301   : > { %12303 = vmatpush3.bf16.msra.mxu1 %v14707_v20  ;;  %10954 = vmatprep.mubr.f32.mxu1 %v14657_v31  ;;  %v3623_v31 = vsub.f32 %v3500_v52, %v3513_v24  ;;  %v3443_v24 = vpop.permute.xlu0 %3442 }
 0x302   : > { %12305 = vmatprep.subr.bf16.mxu1 %v14763_v51  ;;  %v3645_v53 = vand.u32 4294901760, %v3644_v2  ;;  %v14776_v55 = vpack.c.bf16 %v3644_v2, %v3637_v38 }
 0x304   : > { %10955 = vmatmul.mubr.f32.vlgmr.msra.gmra.mrb[0].mxu1 %v14669_v29  ;;  %v3630_v29 = vsub.f32 %v3501_v60, %v3516_v6  ;;  %v3646_v50 = vsub.f32 %v3644_v2, %v3645_v53  ;;  %v14782_v7 = vpack.c.bf16 %v3645_v53, %v3638_v8  ;;  %v9653_v6 = vld [vmem:[#allocation10] ss:$0 sm:$0xff]  ;;  %v3447_v2 = vpop.permute.xlu1 %3446 }
 0x305   : > { %10957 = vmatprep.mubr.f32.mxu1 %v14678_v30  ;;  %12307 = vmatpush3.bf16.msra.mxu1 %v14763_v51  ;;  %v3624_v30 = vand.u32 4294901760, %v3623_v31  ;;  %v3445_v8 = vpop.permute.xlu0 %3444 }
 0x306   : > { %12309 = vmatprep.subr.bf16.mxu1 %v14765_v4  ;;  %v14771_v48 = vpack.c.bf16 %v3630_v29, %v3623_v31  ;;  %v3647_v45 = vand.u32 4294901760, %v3646_v50 }
 0x307   : > { %v3625_v20 = vsub.f32 %v3623_v31, %v3624_v30 }
 0x308   : > { %10958 = vmatmul.mubr.f32.gmra.mrb[2].mxu1 %v14698_v32  ;;  %v3631_v32 = vand.u32 4294901760, %v3630_v29  ;;  %v14778_v63 = vpack.c.bf16 %v3647_v45, %v3640_v46 }
 0x309   : > { %12311 = vmatpush3.bf16.msra.mxu1 %v14765_v4  ;;  %v3626_v9 = vand.u32 4294901760, %v3625_v20 }
 0x30a   : > { %v3632_v44 = vsub.f32 %v3630_v29, %v3631_v32  ;;  %v14780_v5 = vpack.c.bf16 %v3631_v32, %v3624_v30 }
 0x30c   : > { %v3633_v16 = vand.u32 4294901760, %v3632_v44 }
 0x30e   : > { %v14773_v15 = vpack.c.bf16 %v3633_v16, %v3626_v9 }
 0x310   : > { %12313 = vmatprep.subr.bf16.mxu1 %v14773_v15 }
 0x3d7   : > { %v10956_v52 = vpop.f32.mrb[0].mxu1 }
 0x3d8   : > { %v3413_v60 = vadd.f32 %v10956_v52, %v9652_v12  ;;  %v3379_v23 = vpop.f32.mrb[1].mxu1 }
 0x3d9   : > { %v3412_v34 = vadd.f32 %v9652_v12, %v3379_v23 }
 0x3da   : > { %v3417_v19 = vmax.f32 %v3413_v60, 0.0 }
 0x3db   : > { %v3416_v31 = vmax.f32 %v3412_v34, 0.0  ;;  %v10959_v29 = vpop.f32.mrb[2].mxu1 }
 0x3dc   : > { %v3428_v20 = vmul.f32 %v9653_v6, %v3417_v19  ;;  %v3415_v44 = vadd.f32 %v10959_v29, %v9652_v12  ;;  %v3391_v38 = vpop.f32.mrb[3].mxu1 }
 0x3dd   : > { %v3427_v9 = vmul.f32 %v9653_v6, %v3416_v31  ;;  %v3414_v30 = vadd.f32 %v9652_v12, %v3391_v38  ;;  %v3449_v12 = vpop.permute.xlu1 %3448 }
 0x3de   : > { %v14784_v32 = vadd.f32 %v9654_v61, %v3428_v20  ;;  %v3419_v16 = vmax.f32 %v3415_v44, 0.0 }
 0x3df   : > { %v14786_v53 = vadd.f32 %v9654_v61, %v3427_v9  ;;  %v3418_v47 = vmax.f32 %v3414_v30, 0.0 }
 0x3e0   : > { %v14789_v50 = vadd.f32 %v3445_v8, %v14784_v32  ;;  %v3430_v46 = vmul.f32 %v9653_v6, %v3419_v16 }
 0x3e1   : > { %v14792_v45 = vadd.f32 %v3443_v24, %v14786_v53  ;;  %v3429_v52 = vmul.f32 %v9653_v6, %v3418_v47 }
 0x3e2   : > { %v3506_v60 = vsel %vm1521_vm0, %v14789_v50, 0  ;;  %v14796_v23 = vadd.f32 %v9654_v61, %v3430_v46 }
 0x3e3   : > { %v14798_v34 = vand.u32 4294901760, %v3506_v60  ;;  %v14800_v19 = vadd.f32 %v9654_v61, %v3429_v52  ;;  %v3504_v29 = vsel %vm1521_vm0, %v14792_v45, 0  ;;  %v3479_v61 = vrot.slane %v14789_v50, 1 }
 0x3e4   : > { %v14803_v31 = vadd.f32 %v3449_v12, %v14796_v23  ;;  %v14813_v20 = vand.u32 4294901760, %v3504_v29  ;;  %v3478_v52 = vrot.slane %v14792_v45, 1 }
 0x3e5   : > { %v14808_v24 = vsub.f32 %v3506_v60, %v14798_v34  ;;  %v14811_v6 = vadd.f32 %v3447_v2, %v14800_v19 }
 0x3e6   : > { %v3510_v44 = vsel %vm1521_vm0, %v14803_v31, 0  ;;  %v3582_v9 = vsub.f32 %v3504_v29, %v14813_v20  ;;  %v16193_v57 = vrot.slane %v14803_v31, 1  ;;  %v14840_v40 = vsel %vm1494_vm4, %v3478_v52, %v3479_v61 }
 0x3e7   : > { %v3481_v38 = vrot.slane %v14811_v6, 1  ;;  %v3593_v30 = vand.u32 4294901760, %v14808_v24  ;;  %v3508_v16 = vsel %vm1521_vm0, %v14811_v6, 0  ;;  %v14823_v8 = vand.u32 4294901760, %v3510_v44 }
 0x3e8   : > { %v3583_v47 = vand.u32 4294901760, %v3582_v9  ;;  %v14828_v46 = vand.u32 4294901760, %v3508_v16 }
 0x3e9   : > { %v14826_v2 = vsel %vm1494_vm4, %v3479_v61, %v3481_v38  ;;  %v3594_v60 = vsub.f32 %v14808_v24, %v3593_v30  ;;  %v14833_v12 = vsub.f32 %v3510_v44, %v14823_v8 }
 0x3ea   : > { %v3584_v29 = vsub.f32 %v3582_v9, %v3583_v47  ;;  %v3602_v35 = vsub.f32 %v3508_v16, %v14828_v46 }
 0x3eb   : > { %v3613_v27 = vand.u32 4294901760, %v14833_v12  ;;  %v3595_v11 = vand.u32 4294901760, %v3594_v60 }
 0x3ec   : > { %v3585_v26 = vand.u32 4294901760, %v3584_v29  ;;  %v3603_v1 = vand.u32 4294901760, %v3602_v35  ;;  %v14847_v29 = vsel %vm1494_vm4, %v3481_v38, %v16193_v57 }
 0x3ed   : > { %v3614_v62 = vsub.f32 %v14833_v12, %v3613_v27 }
 0x3ee   : > { %10968 = vmatprep.mubr.f32.mxu1 %v3585_v26  ;;  %v3604_v21 = vsub.f32 %v3602_v35, %v3603_v1  ;;  %v3496_v26 = vld [vmem:[#allocation7 + $0x68] sm:$0xff] }
 0x3ef   : > { %10969 = vmatmul.mubr.f32.vlgmr.msra.gmra.mrb[4].mxu1 %v3595_v11  ;;  %v3615_v16 = vand.u32 4294901760, %v3614_v62  ;;  %v3466_v62 = vrot.slane %v14811_v6, 7  ;;  %v3495_v11 = vld [vmem:[#allocation7 + $0x60] sm:$0xff]  ;;  %v3498_v6 = vld [vmem:[#allocation7 + $0x78] sm:$0xff] }
 0x3f0   : > { %12315 = vmatpush3.bf16.msra.mxu1 %v14773_v15  ;;  %v3605_v44 = vand.u32 4294901760, %v3604_v21  ;;  %v3462_v21 = vrot.slane %v14792_v45, 7  ;;  %v3464_v15 = vrot.slane %v14789_v50, 7  ;;  %v3468_v50 = vrot.slane %v14803_v31, 7 }
 0x3f1   : > { %12317 = vmatprep.subr.bf16.mxu1 %v14778_v63 }
 0x3f2   : > { %10971 = vmatprep.mubr.f32.mxu1 %v3605_v44  ;;  %v3467_v45 = vsel %vm1476_vm1, %v3464_v15, %v3466_v62  ;;  %v3465_v61 = vsel %vm1476_vm1, %v3462_v21, %v3464_v15 }
 0x3f3   : > { %10972 = vmatmul.mubr.f32.gmra.mrb[6].mxu1 %v3615_v16  ;;  %v3476_v52 = vsel %vm14497_vm3, %v3467_v45, 0.0  ;;  %v4130_v44 = vsel %vm1521_vm0, %v3465_v61, 0 }
 0x3f4   : > { %12319 = vmatpush3.bf16.msra.mxu1 %v14778_v63  ;;  %10982 = vmatprep.mubr.f32.mxu1 %v14813_v20  ;;  %v4142_v63 = vand.u32 4294901760, %v3496_v26 }
 0x3f5   : > { %12321 = vmatprep.subr.bf16.mxu1 %v14771_v48 }
 0x3f7   : > { %10983 = vmatmul.mubr.f32.vlgmr.msra.gmra.mrb[4].mxu1 %v14798_v34 }
 0x3f8   : > { %12323 = vmatpush3.bf16.msra.mxu1 %v14771_v48  ;;  %10985 = vmatprep.mubr.f32.mxu1 %v14828_v46  ;;  %v3463_v48 = vsel %vm1476_vm1, %v14476_v43, %v3462_v21 }
 0x3f9   : > { %12325 = vmatprep.subr.bf16.mxu1 %v14776_v55 }
 0x3fb   : > { %10986 = vmatmul.mubr.f32.gmra.mrb[6].mxu1 %v14823_v8 }
 0x3fc   : > { %12327 = vmatpush3.bf16.msra.mxu1 %v14776_v55  ;;  %10996 = vmatprep.mubr.f32.mxu1 %v3582_v9  ;;  %v4139_v55 = vand.u32 4294901760, %v3495_v11 }
 0x3fd   : > { %12329 = vmatprep.subr.bf16.mxu1 %v14763_v51 }
 0x3fe   : > { %v14877_v9 = vsub.f32 %v3495_v11, %v4139_v55  ;;  %v14893_v11 = vand.u32 4294901760, %v4130_v44  ;;  %v14909_v15 = vpack.c.bf16 %v4142_v63, %v4139_v55 }
 0x3ff   : > { %10997 = vmatmul.mubr.f32.vlgmr.msra.gmra.mrb[4].mxu1 %v14808_v24  ;;  %v3497_v24 = vld [vmem:[#allocation7 + $0x70] sm:$0xff] }
 0x400   : > { %12331 = vmatpush3.bf16.msra.mxu1 %v14763_v51  ;;  %10999 = vmatprep.mubr.f32.mxu1 %v3602_v35  ;;  %v3474_v35 = vsel %vm14484_vm2, %v3463_v48, 0.0  ;;  %v4145_v60 = vand.u32 4294901760, %v3497_v24 }
 0x401   : > { %12333 = vmatprep.subr.bf16.mxu1 %v14765_v4  ;;  %v4127_v38 = vsel %vm1521_vm0, %v3474_v35, 0 }
 0x402   : > { %v14885_v16 = vand.u32 4294901760, %v4127_v38 }
 0x403   : > { %11000 = vmatmul.mubr.f32.gmra.mrb[6].mxu1 %v14833_v12  ;;  %v4148_v12 = vand.u32 4294901760, %v3498_v6 }
 0x404   : > { %12335 = vmatpush3.bf16.msra.mxu1 %v14765_v4  ;;  %11010 = vmatprep.mubr.f32.mxu1 %v3583_v47  ;;  %v14879_v47 = vsub.f32 %v3496_v26, %v4142_v63  ;;  %v14896_v26 = vsub.f32 %v3497_v24, %v4145_v60  ;;  %v14919_v24 = vsub.f32 %v4130_v44, %v14893_v11 }
 0x405   : > { %12337 = vmatprep.subr.bf16.mxu1 %v14780_v5  ;;  %v14898_v48 = vsub.f32 %v3498_v6, %v4148_v12 }
 0x406   : > { %v4257_v21 = vand.u32 4294901760, %v14879_v47  ;;  %v16195_v6 = vand.u32 4294901760, %v14896_v26  ;;  %v4219_v44 = vand.u32 4294901760, %v14919_v24 }
 0x407   : > { %11011 = vmatmul.mubr.f32.vlgmr.msra.gmra.mrb[4].mxu1 %v3593_v30  ;;  %v4133_v30 = vsel %vm1521_vm0, %v3476_v52, 0 }
 0x408   : > { %12339 = vmatpush3.bf16.msra.mxu1 %v14780_v5  ;;  %11013 = vmatprep.mubr.f32.mxu1 %v3603_v1  ;;  %v3469_v1 = vsel %vm1476_vm1, %v3466_v62, %v3468_v50  ;;  %v4250_v5 = vand.u32 4294901760, %v14877_v9  ;;  %v14903_v62 = vand.u32 4294901760, %v4133_v30  ;;  %v4258_v45 = vsub.f32 %v14879_v47, %v4257_v21 }
 0x409   : > { %12341 = vmatprep.subr.bf16.mxu1 %v14782_v7  ;;  %v14932_v50 = vpack.c.bf16 %v4148_v12, %v4145_v60 }
 0x40a   : > { %v4251_v35 = vsub.f32 %v14877_v9, %v4250_v5  ;;  %v14927_v63 = vsub.f32 %v4133_v30, %v14903_v62  ;;  %v4259_v52 = vand.u32 4294901760, %v4258_v45 }
 0x40b   : > { %11014 = vmatmul.mubr.f32.gmra.mrb[6].mxu1 %v3613_v27  ;;  %v14901_v27 = vsub.f32 %v4127_v38, %v14885_v16 }
 0x40c   : > { %12343 = vmatpush3.bf16.msra.mxu1 %v14782_v7  ;;  %11024 = vmatprep.mubr.f32.mxu1 %v14813_v20  ;;  %v4136_v7 = vsel %vm1521_vm0, %v3469_v1, 0  ;;  %v4252_v38 = vand.u32 4294901760, %v4251_v35  ;;  %v4265_v1 = vsub.f32 %v14896_v26, %v16195_v6  ;;  %v4229_v60 = vand.u32 4294901760, %v14927_v63 }
 0x40d   : > { %12345 = vmatprep.subr.bf16.mxu1 %v14763_v51  ;;  %v14923_v61 = vand.u32 4294901760, %v4136_v7  ;;  %v4209_v55 = vand.u32 4294901760, %v14901_v27  ;;  %v4220_v35 = vsub.f32 %v14919_v24, %v4219_v44 }
 0x40e   : > { %v12360_v12 = vpack.c.bf16 %v4259_v52, %v4252_v38  ;;  %v4266_v45 = vand.u32 4294901760, %v4265_v1  ;;  %v4230_v6 = vsub.f32 %v14927_v63, %v4229_v60 }
 0x40f   : > { %11025 = vmatmul.mubr.f32.vlgmr.msra.gmra.mrb[4].mxu1 %v14798_v34 }
 0x410   : > { %12347 = vmatpush3.bf16.msra.mxu1 %v14763_v51  ;;  %11027 = vmatprep.mubr.f32.mxu1 %v14828_v46  ;;  %v16194_v51 = vand.u32 4294901760, %v14898_v48  ;;  %v4231_v52 = vand.u32 4294901760, %v4230_v6  ;;  %v4753_v6 = vld [vmem:[#allocation7 + $0xa0] sm:$0xff] }
 0x411   : > { %12349 = vmatprep.subr.bf16.mxu1 %v14765_v4 }
 0x412   : > { %v4272_v30 = vsub.f32 %v14898_v48, %v16194_v51 }
 0x413   : > { %11028 = vmatmul.mubr.f32.gmra.mrb[6].mxu1 %v14823_v8 }
 0x414   : > { %12351 = vmatpush3.bf16.msra.mxu1 %v14765_v4  ;;  %11038 = vmatprep.mubr.f32.mxu1 %v14813_v20  ;;  %v14943_v4 = vsub.f32 %v4136_v7, %v14923_v61  ;;  %v4210_v20 = vsub.f32 %v14901_v27, %v4209_v55  ;;  %v4273_v57 = vand.u32 4294901760, %v4272_v30  ;;  %v12368_v30 = vpack.c.bf16 %v14879_v47, %v14877_v9  ;;  %v4756_v9 = vld [vmem:[#allocation7 + $0xb8] sm:$0xff] }
 0x415   : > { %12353 = vmatprep.subr.bf16.mxu1 %v14909_v15  ;;  %v3491_v47 = vsel %vm14622_vm5, %v14826_v2, 0.0 }
 0x416   : > { %v4239_v7 = vand.u32 4294901760, %v14943_v4  ;;  %v4211_v51 = vand.u32 4294901760, %v4210_v20  ;;  %v16305_v20 = vand.u32 4294901760, %v14896_v26  ;;  %v4761_v2 = vsel %vm1521_vm0, %v3491_v47, 0 }
 0x417   : > { %11039 = vmatmul.mubr.f32.vlgmr.msra.gmra.mrb[4].mxu1 %v14798_v34  ;;  %v4221_v34 = vand.u32 4294901760, %v4220_v35  ;;  %v4755_v35 = vld [vmem:[#allocation7 + $0xb0] sm:$0xff] }
 0x418   : > { %12355 = vmatpush3.bf16.msra.mxu1 %v14909_v15  ;;  %11041 = vmatprep.mubr.f32.mxu1 %v14828_v46  ;;  %v12364_v46 = vpack.c.bf16 %v4273_v57, %v4266_v45  ;;  %v4240_v38 = vsub.f32 %v14943_v4, %v4239_v7  ;;  %v12384_v57 = vpack.c.bf16 %v4257_v21, %v4250_v5  ;;  %v4758_v5 = vsel %vm1521_vm0, %v14840_v40, 0 }
 0x419   : > { %12357 = vmatprep.subr.bf16.mxu1 %v14932_v50  ;;  %v4779_v45 = vand.u32 4294901760, %v4756_v9  ;;  %v4764_v40 = vsel %vm1521_vm0, %v14847_v29, 0 }
 0x41a   : > { %v4241_v1 = vand.u32 4294901760, %v4240_v38 }
 0x41b   : > { %11042 = vmatmul.mubr.f32.gmra.mrb[6].mxu1 %v14823_v8  ;;  %v12372_v8 = vpack.c.bf16 %v14898_v48, %v14896_v26  ;;  %v16307_v26 = vrot.slane %v14803_v31, 1 }
 0x41c   : > { %12359 = vmatpush3.bf16.msra.mxu1 %v14932_v50  ;;  %11052 = vmatprep.mubr.f32.mxu1 %v4211_v51  ;;  %v4754_v51 = vld [vmem:[#allocation7 + $0xa8] sm:$0xff] }
 0x41d   : > { %12361 = vmatprep.subr.bf16.mxu1 %v12360_v12 }
 0x41f   : > { %11053 = vmatmul.mubr.f32.vlgmr.msra.gmra.mrb[4].mxu1 %v4221_v34  ;;  %v14994_v34 = vand.u32 4294901760, %v4758_v5 }
 0x420   : > { %12363 = vmatpush3.bf16.msra.mxu1 %v12360_v12  ;;  %11055 = vmatprep.mubr.f32.mxu1 %v4231_v52  ;;  %v15014_v52 = vand.u32 4294901760, %v4764_v40 }
 0x421   : > { %12365 = vmatprep.subr.bf16.mxu1 %v12364_v46  ;;  %v15012_v29 = vsub.f32 %v4758_v5, %v14994_v34 }
 0x423   : > { %11056 = vmatmul.mubr.f32.gmra.mrb[6].mxu1 %v4241_v1 }
 0x424   : > { %12367 = vmatpush3.bf16.msra.mxu1 %v12364_v46  ;;  %11066 = vmatprep.mubr.f32.mxu1 %v14885_v16  ;;  %v15005_v46 = vand.u32 4294901760, %v4761_v2 }
 0x425   : > { %12369 = vmatprep.subr.bf16.mxu1 %v12368_v30 }
 0x427   : > { %11067 = vmatmul.mubr.f32.vlgmr.msra.gmra.mrb[4].mxu1 %v14893_v11 }
 0x428   : > { %12371 = vmatpush3.bf16.msra.mxu1 %v12368_v30  ;;  %11069 = vmatprep.mubr.f32.mxu1 %v14903_v62 }
 0x429   : > { %12373 = vmatprep.subr.bf16.mxu1 %v12372_v8 }
 0x42b   : > { %11070 = vmatmul.mubr.f32.gmra.mrb[6].mxu1 %v14923_v61 }
 0x42c   : > { %12375 = vmatpush3.bf16.msra.mxu1 %v12372_v8  ;;  %11080 = vmatprep.mubr.f32.mxu1 %v14901_v27  ;;  %v4770_v27 = vand.u32 4294901760, %v4753_v6 }
 0x42d   : > { %12377 = vmatprep.subr.bf16.mxu1 %v14909_v15 }
 0x42e   : > { %v14986_v21 = vsub.f32 %v4753_v6, %v4770_v27  ;;  %v15030_v6 = vsub.f32 %v4761_v2, %v15005_v46 }
 0x42f   : > { %11081 = vmatmul.mubr.f32.vlgmr.msra.gmra.mrb[4].mxu1 %v14919_v24  ;;  %v4773_v24 = vand.u32 4294901760, %v4754_v51 }
 0x430   : > { %12379 = vmatpush3.bf16.msra.mxu1 %v14909_v15  ;;  %11083 = vmatprep.mubr.f32.mxu1 %v14927_v63  ;;  %v16306_v63 = vand.u32 4294901760, %v14898_v48  ;;  %v3485_v48 = vsel %vm1494_vm4, %v16307_v26, %v14627_v33  ;;  %v4881_v31 = vand.u32 4294901760, %v14986_v21 }
 0x431   : > { %12381 = vmatprep.subr.bf16.mxu1 %v14932_v50  ;;  %v15020_v30 = vpack.c.bf16 %v4773_v24, %v4770_v27  ;;  %v4840_v27 = vand.u32 4294901760, %v15012_v29 }
 0x432   : > { %v12388_v12 = vpack.c.bf16 %v16306_v63, %v16305_v20  ;;  %v4882_v8 = vsub.f32 %v14986_v21, %v4881_v31 }
 0x433   : > { %11084 = vmatmul.mubr.f32.gmra.mrb[6].mxu1 %v14943_v4  ;;  %v4776_v4 = vand.u32 4294901760, %v4755_v35 }
 0x434   : > { %12383 = vmatpush3.bf16.msra.mxu1 %v14932_v50  ;;  %11094 = vmatprep.mubr.f32.mxu1 %v4209_v55  ;;  %v14988_v55 = vsub.f32 %v4754_v51, %v4773_v24  ;;  %v15038_v24 = vsub.f32 %v4764_v40, %v15014_v52 }
 0x435   : > { %12385 = vmatprep.subr.bf16.mxu1 %v12384_v57  ;;  %v15007_v38 = vsub.f32 %v4755_v35, %v4776_v4  ;;  %v15043_v63 = vpack.c.bf16 %v4779_v45, %v4776_v4 }
 0x436   : > { %v4860_v26 = vand.u32 4294901760, %v15038_v24 }
 0x437   : > { %11095 = vmatmul.mubr.f32.vlgmr.msra.gmra.mrb[4].mxu1 %v4219_v44  ;;  %v3493_v44 = vsel %vm14651_vm6, %v3485_v48, 0.0  ;;  %v4895_v51 = vand.u32 4294901760, %v15007_v38 }
 0x438   : > { %12387 = vmatpush3.bf16.msra.mxu1 %v12384_v57  ;;  %11097 = vmatprep.mubr.f32.mxu1 %v4229_v60  ;;  %v4888_v60 = vand.u32 4294901760, %v14988_v55  ;;  %v4767_v1 = vsel %vm1521_vm0, %v3493_v44, 0 }
 0x439   : > { %12389 = vmatprep.subr.bf16.mxu1 %v12388_v12  ;;  %v15034_v20 = vand.u32 4294901760, %v4767_v1  ;;  %v4896_v47 = vsub.f32 %v15007_v38, %v4895_v51 }
 0x43a   : > { %v4889_v57 = vsub.f32 %v14988_v55, %v4888_v60 }
 0x43b   : > { %11098 = vmatmul.mubr.f32.gmra.mrb[6].mxu1 %v4239_v7  ;;  %v15009_v7 = vsub.f32 %v4756_v9, %v4779_v45  ;;  %v4850_v9 = vand.u32 4294901760, %v15030_v6  ;;  %v4897_v45 = vand.u32 4294901760, %v4896_v47  ;;  %v12432_v47 = vpack.c.bf16 %v4888_v60, %v4881_v31 }
 0x43c   : > { %12391 = vmatpush3.bf16.msra.mxu1 %v12388_v12  ;;  %11108 = vmatprep.mubr.f32.mxu1 %v14885_v16  ;;  %v4883_v12 = vand.u32 4294901760, %v4882_v8  ;;  %v4890_v35 = vand.u32 4294901760, %v4889_v57 }
 0x43d   : > { %12393 = vmatprep.subr.bf16.mxu1 %v14909_v15  ;;  %v4851_v4 = vsub.f32 %v15030_v6, %v4850_v9 }
 0x43e   : > { %v12408_v48 = vpack.c.bf16 %v4890_v35, %v4883_v12  ;;  %v12416_v35 = vpack.c.bf16 %v14988_v55, %v14986_v21  ;;  %v5485_v21 = vld [vmem:[#allocation7 + $0xe0] sm:$0xff]  ;;  %v5486_v55 = vld [vmem:[#allocation7 + $0xe8] sm:$0xff] }
 0x43f   : > { %11109 = vmatmul.mubr.f32.vlgmr.msra.gmra.mrb[4].mxu1 %v14893_v11  ;;  %v5498_v31 = vand.u32 4294901760, %v5485_v21  ;;  %v5501_v60 = vand.u32 4294901760, %v5486_v55 }
 0x440   : > { %12395 = vmatpush3.bf16.msra.mxu1 %v14909_v15  ;;  %11111 = vmatprep.mubr.f32.mxu1 %v14903_v62  ;;  %v4902_v15 = vand.u32 4294901760, %v15009_v7 }
 0x441   : > { %12397 = vmatprep.subr.bf16.mxu1 %v14932_v50 }
 0x442   : > { %v4903_v5 = vsub.f32 %v15009_v7, %v4902_v15 }
 0x443   : > { %11112 = vmatmul.mubr.f32.gmra.mrb[6].mxu1 %v14923_v61 }
 0x444   : > { %12399 = vmatpush3.bf16.msra.mxu1 %v14932_v50  ;;  %11122 = vmatprep.mubr.f32.mxu1 %v14885_v16  ;;  %v4869_v50 = vsub.f32 %v4767_v1, %v15034_v20  ;;  %v4841_v16 = vsub.f32 %v15012_v29, %v4840_v27  ;;  %v4904_v2 = vand.u32 4294901760, %v4903_v5  ;;  %v4861_v1 = vsub.f32 %v15038_v24, %v4860_v26 }
 0x445   : > { %12401 = vmatprep.subr.bf16.mxu1 %v15020_v30 }
 0x446   : > { %v4870_v40 = vand.u32 4294901760, %v4869_v50  ;;  %v4842_v44 = vand.u32 4294901760, %v4841_v16  ;;  %v12412_v8 = vpack.c.bf16 %v4904_v2, %v4897_v45  ;;  %v4862_v57 = vand.u32 4294901760, %v4861_v1 }
 0x447   : > { %11123 = vmatmul.mubr.f32.vlgmr.msra.gmra.mrb[4].mxu1 %v14893_v11  ;;  %v4852_v11 = vand.u32 4294901760, %v4851_v4 }
 0x448   : > { %12403 = vmatpush3.bf16.msra.mxu1 %v15020_v30  ;;  %11125 = vmatprep.mubr.f32.mxu1 %v14903_v62  ;;  %v4871_v62 = vsub.f32 %v4869_v50, %v4870_v40 }
 0x449   : > { %12405 = vmatprep.subr.bf16.mxu1 %v15043_v63 }
 0x44a   : > { %v4872_v12 = vand.u32 4294901760, %v4871_v62 }
 0x44b   : > { %11126 = vmatmul.mubr.f32.gmra.mrb[6].mxu1 %v14923_v61  ;;  %v12420_v61 = vpack.c.bf16 %v15009_v7, %v15007_v38 }
 0x44c   : > { %12407 = vmatpush3.bf16.msra.mxu1 %v15043_v63  ;;  %11136 = vmatprep.mubr.f32.mxu1 %v4842_v44 }
 0x44d   : > { %12409 = vmatprep.subr.bf16.mxu1 %v12408_v48 }
 0x44f   : > { %11137 = vmatmul.mubr.f32.vlgmr.msra.gmra.mrb[4].mxu1 %v4852_v11 }
 0x450   : > { %12411 = vmatpush3.bf16.msra.mxu1 %v12408_v48  ;;  %11139 = vmatprep.mubr.f32.mxu1 %v4862_v57  ;;  %v9655_v57 = vld [vmem:[#allocation8 + $0x1] ss:$0 sm:$0xff] }
 0x451   : > { %12413 = vmatprep.subr.bf16.mxu1 %v12412_v8 }
 0x453   : > { %11140 = vmatmul.mubr.f32.gmra.mrb[6].mxu1 %v4872_v12 }
 0x454   : > { %12415 = vmatpush3.bf16.msra.mxu1 %v12412_v8  ;;  %11150 = vmatprep.mubr.f32.mxu1 %v14994_v34 }
 0x455   : > { %12417 = vmatprep.subr.bf16.mxu1 %v12416_v35 }
 0x457   : > { %11151 = vmatmul.mubr.f32.vlgmr.msra.gmra.mrb[4].mxu1 %v15005_v46 }
 0x458   : > { %12419 = vmatpush3.bf16.msra.mxu1 %v12416_v35  ;;  %11153 = vmatprep.mubr.f32.mxu1 %v15014_v52 }
 0x459   : > { %12421 = vmatprep.subr.bf16.mxu1 %v12420_v61 }
 0x45b   : > { %11154 = vmatmul.mubr.f32.gmra.mrb[6].mxu1 %v15034_v20 }
 0x45c   : > { %12423 = vmatpush3.bf16.msra.mxu1 %v12420_v61  ;;  %11164 = vmatprep.mubr.f32.mxu1 %v15012_v29  ;;  %v12436_v29 = vpack.c.bf16 %v4902_v15, %v4895_v51 }
 0x45d   : > { %12425 = vmatprep.subr.bf16.mxu1 %v15020_v30 }
 0x45f   : > { %11165 = vmatmul.mubr.f32.vlgmr.msra.gmra.mrb[4].mxu1 %v15030_v6  ;;  %v5615_v6 = vsub.f32 %v5486_v55, %v5501_v60 }
 0x460   : > { %12427 = vmatpush3.bf16.msra.mxu1 %v15020_v30  ;;  %11167 = vmatprep.mubr.f32.mxu1 %v15038_v24 }
 0x461   : > { %12429 = vmatprep.subr.bf16.mxu1 %v15043_v63 }
 0x463   : > { %11168 = vmatmul.mubr.f32.gmra.mrb[6].mxu1 %v4869_v50 }
 0x464   : > { %12431 = vmatpush3.bf16.msra.mxu1 %v15043_v63  ;;  %11178 = vmatprep.mubr.f32.mxu1 %v4840_v27 }
 0x465   : > { %12433 = vmatprep.subr.bf16.mxu1 %v12432_v47 }
 0x467   : > { %11179 = vmatmul.mubr.f32.vlgmr.msra.gmra.mrb[4].mxu1 %v4850_v9 }
 0x468   : > { %12435 = vmatpush3.bf16.msra.mxu1 %v12432_v47  ;;  %11181 = vmatprep.mubr.f32.mxu1 %v4860_v26  ;;  %v9656_v47 = vld [vmem:[#allocation10 + $0x1] ss:$0 sm:$0xff] }
 0x469   : > { %12437 = vmatprep.subr.bf16.mxu1 %v12436_v29 }
 0x46b   : > { %11182 = vmatmul.mubr.f32.gmra.mrb[6].mxu1 %v4870_v40 }
 0x46c   : > { %12439 = vmatpush3.bf16.msra.mxu1 %v12436_v29  ;;  %11192 = vmatprep.mubr.f32.mxu1 %v14994_v34 }
 0x46d   : > { %12441 = vmatprep.subr.bf16.mxu1 %v15020_v30 }
 0x46f   : > { %11193 = vmatmul.mubr.f32.vlgmr.msra.gmra.mrb[4].mxu1 %v15005_v46 }
 0x470   : > { %12443 = vmatpush3.bf16.msra.mxu1 %v15020_v30  ;;  %11195 = vmatprep.mubr.f32.mxu1 %v15014_v52  ;;  %v5608_v30 = vsub.f32 %v5485_v21, %v5498_v31 }
 0x471   : > { %12445 = vmatprep.subr.bf16.mxu1 %v15043_v63 }
 0x472   : > { %v5609_v15 = vand.u32 4294901760, %v5608_v30  ;;  %v15124_v48 = vpack.c.bf16 %v5615_v6, %v5608_v30 }
 0x473   : > { %11196 = vmatmul.mubr.f32.gmra.mrb[6].mxu1 %v15034_v20 }
 0x474   : > { %12447 = vmatpush3.bf16.msra.mxu1 %v15043_v63  ;;  %11206 = vmatprep.mubr.f32.mxu1 %v14994_v34  ;;  %v5487_v34 = vld [vmem:[#allocation7 + $0xf0] sm:$0xff]  ;;  %v5610_v27 = vsub.f32 %v5608_v30, %v5609_v15 }
 0x475   : > { %12593 = vmatprep.subr.bf16.mxu1 %v13999_v10  ;;  %v5504_v38 = vand.u32 4294901760, %v5487_v34 }
 0x476   : > { %v5611_v5 = vand.u32 4294901760, %v5610_v27 }
 0x477   : > { %11207 = vmatmul.mubr.f32.vlgmr.msra.gmra.mrb[4].mxu1 %v15005_v46  ;;  %v5488_v46 = vld [vmem:[#allocation7 + $0xf8] sm:$0xff]  ;;  %v5622_v63 = vsub.f32 %v5487_v34, %v5504_v38 }
 0x478   : > { %11209 = vmatprep.mubr.f32.mxu1 %v15014_v52  ;;  %12595 = vmatpush3.bf16.msra.mxu1 %v13999_v10  ;;  %v5507_v7 = vand.u32 4294901760, %v5488_v46  ;;  %v15116_v52 = vpack.c.bf16 %v5501_v60, %v5498_v31  ;;  %v9657_v31 = vld [vmem:[#allocation11 + $0x1] ss:$0 sm:$0xff] }
 0x479   : > { %12597 = vmatprep.subr.bf16.mxu1 %v14001_v13  ;;  %v5623_v16 = vand.u32 4294901760, %v5622_v63 }
 0x47a   : > { %v15118_v51 = vpack.c.bf16 %v5507_v7, %v5504_v38  ;;  %12449 = vmatprep.subr.bf16.mxu0 %v15116_v52  ;;  %v5629_v9 = vsub.f32 %v5488_v46, %v5507_v7  ;;  %v5430_v7 = vpop.permute.xlu1 %5429 }
 0x47b   : > { %11210 = vmatmul.mubr.f32.gmra.mrb[6].mxu1 %v15034_v20  ;;  %v5616_v20 = vand.u32 4294901760, %v5615_v6  ;;  %12451 = vmatpush3.bf16.msra.mxu0 %v15116_v52  ;;  %v5624_v45 = vsub.f32 %v5622_v63, %v5623_v16 }
 0x47c   : > { %12599 = vmatpush3.bf16.msra.mxu1 %v14001_v13  ;;  %12453 = vmatprep.subr.bf16.mxu0 %v15118_v51  ;;  %v5630_v26 = vand.u32 4294901760, %v5629_v9  ;;  %v15129_v1 = vpack.c.bf16 %v5629_v9, %v5622_v63 }
 0x47d   : > { %12601 = vmatprep.subr.bf16.mxu1 %v14019_v18  ;;  %v5617_v24 = vsub.f32 %v5615_v6, %v5616_v20  ;;  %v5625_v40 = vand.u32 4294901760, %v5624_v45  ;;  %v15133_v8 = vpack.c.bf16 %v5616_v20, %v5609_v15  ;;  %v5428_v15 = vpop.permute.xlu0 %5427 }
 0x47e   : > { %v5631_v2 = vsub.f32 %v5629_v9, %v5630_v26  ;;  %v15135_v62 = vpack.c.bf16 %v5630_v26, %v5623_v16 }
 0x47f   : > { %v5618_v50 = vand.u32 4294901760, %v5617_v24  ;;  %12455 = vmatpush3.bf16.msra.mxu0 %v15118_v51 }
 0x480   : > { %12603 = vmatpush3.bf16.msra.mxu1 %v14019_v18  ;;  %v5632_v44 = vand.u32 4294901760, %v5631_v2 }
 0x481   : > { %12605 = vmatprep.subr.bf16.mxu1 %v14048_v28  ;;  %v15126_v4 = vpack.c.bf16 %v5618_v50, %v5611_v5 }
 0x482   : > { %v15131_v11 = vpack.c.bf16 %v5632_v44, %v5625_v40  ;;  %v5434_v40 = vpop.permute.xlu1 %5433 }
 0x483   : > { %12457 = vmatprep.subr.bf16.mxu0 %v15126_v4 }
 0x484   : > { %12607 = vmatpush3.bf16.msra.mxu1 %v14048_v28 }
 0x485   : > { %12609 = vmatprep.subr.bf16.mxu1 %v14072_v41 }
 0x488   : > { %12611 = vmatpush3.bf16.msra.mxu1 %v14072_v41 }
 0x489   : > { %12613 = vmatprep.subr.bf16.mxu1 %v14101_v56 }
 0x48c   : > { %12615 = vmatpush3.bf16.msra.mxu1 %v14101_v56 }
 0x48d   : > { %12617 = vmatprep.subr.bf16.mxu1 %v14114_v0 }
 0x490   : > { %12619 = vmatpush3.bf16.msra.mxu1 %v14114_v0 }
 0x491   : > { %12621 = vmatprep.subr.bf16.mxu1 %v14117_v3 }
 0x494   : > { %12623 = vmatpush3.bf16.msra.mxu1 %v14117_v3 }
 0x495   : > { %12625 = vmatprep.subr.bf16.mxu1 %v14149_v54 }
 0x54a   : > { %v11208_v12 = vpop.f32.mrb[4].mxu1 }
 0x54b   : > { %v5396_v35 = vadd.f32 %v11208_v12, %v9655_v57  ;;  %v5361_v61 = vpop.f32.mrb[5].mxu1 }
 0x54c   : > { %v5395_v29 = vadd.f32 %v9655_v57, %v5361_v61 }
 0x54d   : > { %v5400_v21 = vmax.f32 %v5396_v35, 0.0  ;;  %v5432_v35 = vpop.permute.xlu0 %5431 }
 0x54e   : > { %v5399_v55 = vmax.f32 %v5395_v29, 0.0  ;;  %v11211_v34 = vpop.f32.mrb[6].mxu1 }
 0x54f   : > { %v5412_v60 = vmul.f32 %v9656_v47, %v5400_v21  ;;  %v5398_v46 = vadd.f32 %v11211_v34, %v9655_v57  ;;  %v5373_v38 = vpop.f32.mrb[7].mxu1 }
 0x550   : > { %v5411_v30 = vmul.f32 %v9656_v47, %v5399_v55  ;;  %v5397_v6 = vadd.f32 %v9655_v57, %v5373_v38 }
 0x551   : > { %v5402_v20 = vmax.f32 %v5398_v46, 0.0  ;;  %v5424_v27 = vadd.f32 %v9657_v31, %v5412_v60 }
 0x552   : > { %v5401_v24 = vmax.f32 %v5397_v6, 0.0  ;;  %v5423_v63 = vadd.f32 %v9657_v31, %v5411_v30 }
 0x553   : > { %v5414_v9 = vmul.f32 %v9656_v47, %v5402_v20  ;;  %7418 = vrot.lane.b32.xlu1 %v5424_v27, %s13622_s4  ;;  %v15138_v5 = vadd.f32 %v5430_v7, %v5424_v27 }
 0x554   : > { %v5413_v50 = vmul.f32 %v9656_v47, %v5401_v24  ;;  %7416 = vrot.lane.b32.xlu0 %v5423_v63, %s13622_s4  ;;  %v15141_v16 = vadd.f32 %v5428_v15, %v5423_v63 }
 0x555   : > { %v15143_v26 = vadd.f32 %v9657_v31, %v5414_v9  ;;  %v16196_v45 = vrot.slane %v15138_v5, 7  ;;  %v5491_v2 = vsel %vm1521_vm0, %v15138_v5, 0  ;;  %v5464_v46 = vrot.slane %v15138_v5, 1 }
 0x556   : > { %v15148_v44 = vadd.f32 %v9657_v31, %v5413_v50  ;;  %v15150_v57 = vand.u32 4294901760, %v5491_v2  ;;  %v5447_v12 = vrot.slane %v15141_v16, 7  ;;  %v5489_v47 = vsel %vm1521_vm0, %v15141_v16, 0 }
 0x557   : > { %v15154_v61 = vadd.f32 %v5434_v40, %v15143_v26  ;;  %v15169_v34 = vand.u32 4294901760, %v5489_v47  ;;  %v5463_v40 = vrot.slane %v15141_v16, 1 }
 0x558   : > { %v15159_v29 = vadd.f32 %v5432_v35, %v15148_v44  ;;  %v15162_v21 = vsub.f32 %v5491_v2, %v15150_v57  ;;  %v15167_v55 = vsel %vm1476_vm1, %v5447_v12, %v16196_v45 }
 0x559   : > { %v5495_v31 = vsel %vm1521_vm0, %v15154_v61, 0  ;;  %v5567_v38 = vsub.f32 %v5489_v47, %v15169_v34  ;;  %v5468_v0 = vrot.slane %v15154_v61, 1  ;;  %v15197_v41 = vsel %vm1494_vm4, %v5463_v40, %v5464_v46 }
 0x55a   : > { %v5466_v60 = vrot.slane %v15159_v29, 1  ;;  %v5578_v7 = vand.u32 4294901760, %v15162_v21  ;;  %v5493_v30 = vsel %vm1521_vm0, %v15159_v29, 0  ;;  %v15179_v6 = vand.u32 4294901760, %v5495_v31 }
 0x55b   : > { %v5568_v20 = vand.u32 4294901760, %v5567_v38  ;;  %v15184_v27 = vand.u32 4294901760, %v5493_v30 }
 0x55c   : > { %v15182_v15 = vsel %vm1494_vm4, %v5464_v46, %v5466_v60  ;;  %v5579_v24 = vsub.f32 %v15162_v21, %v5578_v7  ;;  %v15188_v63 = vsub.f32 %v5495_v31, %v15179_v6  ;;  %v15203_v16 = vsel %vm1494_vm4, %v5466_v60, %v5468_v0  ;;  %v5482_v60 = vld [vmem:[#allocation7 + $0xd0] sm:$0xff]  ;;  %v5483_v46 = vld [vmem:[#allocation7 + $0xd8] sm:$0xff] }
 0x55d   : > { %v5569_v9 = vsub.f32 %v5567_v38, %v5568_v20  ;;  %v5587_v50 = vsub.f32 %v5493_v30, %v15184_v27 }
 0x55e   : > { %v5598_v2 = vand.u32 4294901760, %v15188_v63  ;;  %v5580_v45 = vand.u32 4294901760, %v5579_v24  ;;  %v6133_v24 = vand.u32 4294901760, %v5483_v46 }
 0x55f   : > { %v5570_v35 = vand.u32 4294901760, %v5569_v9  ;;  %v5588_v47 = vand.u32 4294901760, %v5587_v50 }
 0x560   : > { %v5599_v3 = vsub.f32 %v15188_v63, %v5598_v2 }
 0x561   : > { %11220 = vmatprep.mubr.f32.mxu0 %v5570_v35  ;;  %v5589_v56 = vsub.f32 %v5587_v50, %v5588_v47  ;;  %v15254_v35 = vsub.f32 %v5483_v46, %v6133_v24 }
 0x562   : > { %11221 = vmatmul.mubr.f32.vlgmr.msra.gmra.mrb[4].mxu0 %v5580_v45  ;;  %v5600_v30 = vand.u32 4294901760, %v5599_v3  ;;  %v5480_v3 = vld [vmem:[#allocation7 + $0xc0] sm:$0xff] }
 0x563   : > { %12459 = vmatpush3.bf16.msra.mxu0 %v15126_v4  ;;  %v5590_v31 = vand.u32 4294901760, %v5589_v56  ;;  %v5451_v56 = vrot.slane %v15159_v29, 7  ;;  %v5448_v4 = vsel %vm1476_vm1, %v14476_v43, %v5447_v12  ;;  %v16308_v29 = vrot.slane %v15138_v5, 7 }
 0x564   : > { %12461 = vmatprep.subr.bf16.mxu0 %v15131_v11  ;;  %v5459_v45 = vsel %vm14484_vm2, %v5448_v4, 0.0  ;;  %v5453_v43 = vrot.slane %v15154_v61, 7  ;;  %v6130_v5 = vand.u32 4294901760, %v5482_v60 }
 0x565   : > { %11223 = vmatprep.mubr.f32.mxu0 %v5590_v31  ;;  %v6112_v12 = vsel %vm1521_vm0, %v5459_v45, 0 }
 0x566   : > { %11224 = vmatmul.mubr.f32.gmra.mrb[6].mxu0 %v5600_v30  ;;  %v5454_v9 = vsel %vm1476_vm1, %v5451_v56, %v5453_v43  ;;  %v15288_v45 = vpack.c.bf16 %v6133_v24, %v6130_v5 }
 0x567   : > { %12463 = vmatpush3.bf16.msra.mxu0 %v15131_v11  ;;  %11234 = vmatprep.mubr.f32.mxu0 %v15169_v34 }
 0x568   : > { %12465 = vmatprep.subr.bf16.mxu0 %v15124_v48 }
 0x56a   : > { %11235 = vmatmul.mubr.f32.vlgmr.msra.gmra.mrb[4].mxu0 %v15150_v57 }
 0x56b   : > { %12467 = vmatpush3.bf16.msra.mxu0 %v15124_v48  ;;  %11237 = vmatprep.mubr.f32.mxu0 %v15184_v27  ;;  %v5481_v48 = vld [vmem:[#allocation7 + $0xc8] sm:$0xff] }
 0x56c   : > { %12469 = vmatprep.subr.bf16.mxu0 %v15129_v1  ;;  %v6127_v11 = vand.u32 4294901760, %v5481_v48 }
 0x56e   : > { %11238 = vmatmul.mubr.f32.gmra.mrb[6].mxu0 %v15179_v6  ;;  %v15234_v49 = vsub.f32 %v5481_v48, %v6127_v11 }
 0x56f   : > { %12471 = vmatpush3.bf16.msra.mxu0 %v15129_v1  ;;  %11248 = vmatprep.mubr.f32.mxu0 %v5567_v38  ;;  %v6124_v1 = vand.u32 4294901760, %v5480_v3 }
 0x570   : > { %12473 = vmatprep.subr.bf16.mxu0 %v15116_v52 }
 0x571   : > { %v15232_v38 = vsub.f32 %v5480_v3, %v6124_v1  ;;  %v15265_v31 = vpack.c.bf16 %v6127_v11, %v6124_v1 }
 0x572   : > { %11249 = vmatmul.mubr.f32.vlgmr.msra.gmra.mrb[4].mxu0 %v15162_v21  ;;  %v5452_v21 = vsel %vm1476_vm1, %v16308_v29, %v5451_v56 }
 0x573   : > { %12475 = vmatpush3.bf16.msra.mxu0 %v15116_v52  ;;  %11251 = vmatprep.mubr.f32.mxu0 %v5587_v50  ;;  %v6235_v37 = vand.u32 4294901760, %v15232_v38  ;;  %v6242_v50 = vand.u32 4294901760, %v15234_v49 }
 0x574   : > { %12477 = vmatprep.subr.bf16.mxu0 %v15118_v51 }
 0x575   : > { %v6236_v30 = vsub.f32 %v15232_v38, %v6235_v37  ;;  %v6243_v56 = vsub.f32 %v15234_v49, %v6242_v50 }
 0x576   : > { %11252 = vmatmul.mubr.f32.gmra.mrb[6].mxu0 %v15188_v63  ;;  %v6115_v63 = vsel %vm1521_vm0, %v15167_v55, 0  ;;  %v15252_v55 = vsub.f32 %v5482_v60, %v6130_v5 }
 0x577   : > { %12479 = vmatpush3.bf16.msra.mxu0 %v15118_v51  ;;  %11262 = vmatprep.mubr.f32.mxu0 %v5568_v20  ;;  %v5461_v20 = vsel %vm14497_vm3, %v5452_v21, 0.0  ;;  %v15249_v40 = vand.u32 4294901760, %v6115_v63  ;;  %v6237_v29 = vand.u32 4294901760, %v6236_v30  ;;  %v6244_v21 = vand.u32 4294901760, %v6243_v56 }
 0x578   : > { %12481 = vmatprep.subr.bf16.mxu0 %v15133_v8  ;;  %v6249_v48 = vand.u32 4294901760, %v15252_v55 }
 0x579   : > { %v15275_v3 = vsub.f32 %v6115_v63, %v15249_v40 }
 0x57a   : > { %11263 = vmatmul.mubr.f32.vlgmr.msra.gmra.mrb[4].mxu0 %v5578_v7  ;;  %v15241_v7 = vand.u32 4294901760, %v6112_v12  ;;  %v6250_v46 = vsub.f32 %v15252_v55, %v6249_v48 }
 0x57b   : > { %12483 = vmatpush3.bf16.msra.mxu0 %v15133_v8  ;;  %11265 = vmatprep.mubr.f32.mxu0 %v5588_v47  ;;  %v6118_v8 = vsel %vm1521_vm0, %v5461_v20, 0  ;;  %v6204_v60 = vand.u32 4294901760, %v15275_v3  ;;  %v12504_v20 = vpack.c.bf16 %v6244_v21, %v6237_v29  ;;  %v12512_v21 = vpack.c.bf16 %v15234_v49, %v15232_v38  ;;  %v6741_v38 = vld [vmem:[#allocation7 + $0x118] sm:$0xff] }
 0x57c   : > { %12485 = vmatprep.subr.bf16.mxu0 %v15135_v62  ;;  %v15259_v47 = vand.u32 4294901760, %v6118_v8  ;;  %v6251_v24 = vand.u32 4294901760, %v6250_v46  ;;  %v12528_v46 = vpack.c.bf16 %v6242_v50, %v6235_v37  ;;  %v5476_v49 = vsel %vm14622_vm5, %v15182_v15, 0.0 }
 0x57d   : > { %v6205_v5 = vsub.f32 %v15275_v3, %v6204_v60  ;;  %v6743_v37 = vsel %vm1521_vm0, %v15197_v41, 0  ;;  %v6746_v22 = vsel %vm1521_vm0, %v5476_v49, 0  ;;  %v6749_v41 = vsel %vm1521_vm0, %v15203_v16, 0 }
 0x57e   : > { %11266 = vmatmul.mubr.f32.gmra.mrb[6].mxu0 %v5598_v2  ;;  %v15257_v2 = vsub.f32 %v6112_v12, %v15241_v7  ;;  %v15283_v11 = vsub.f32 %v6118_v8, %v15259_v47  ;;  %v15351_v15 = vand.u32 4294901760, %v6743_v37  ;;  %v15370_v58 = vand.u32 4294901760, %v6749_v41 }
 0x57f   : > { %12487 = vmatpush3.bf16.msra.mxu0 %v15135_v62  ;;  %11276 = vmatprep.mubr.f32.mxu0 %v15169_v34  ;;  %v6121_v62 = vsel %vm1521_vm0, %v5454_v9, 0 }
 0x580   : > { %12489 = vmatprep.subr.bf16.mxu0 %v15116_v52  ;;  %v15279_v4 = vand.u32 4294901760, %v6121_v62  ;;  %v6194_v1 = vand.u32 4294901760, %v15257_v2  ;;  %v6214_v12 = vand.u32 4294901760, %v15283_v11  ;;  %v15368_v16 = vsub.f32 %v6743_v37, %v15351_v15 }
 0x582   : > { %11277 = vmatmul.mubr.f32.vlgmr.msra.gmra.mrb[4].mxu0 %v15150_v57 }
 0x583   : > { %12491 = vmatpush3.bf16.msra.mxu0 %v15116_v52  ;;  %11279 = vmatprep.mubr.f32.mxu0 %v15184_v27  ;;  %v6256_v52 = vand.u32 4294901760, %v15254_v35 }
 0x584   : > { %12493 = vmatprep.subr.bf16.mxu0 %v15118_v51 }
 0x585   : > { %v6257_v43 = vsub.f32 %v15254_v35, %v6256_v52 }
 0x586   : > { %11280 = vmatmul.mubr.f32.gmra.mrb[6].mxu0 %v15179_v6 }
 0x587   : > { %12495 = vmatpush3.bf16.msra.mxu0 %v15118_v51  ;;  %11290 = vmatprep.mubr.f32.mxu0 %v15169_v34  ;;  %v15299_v51 = vsub.f32 %v6121_v62, %v15279_v4  ;;  %v6195_v34 = vsub.f32 %v15257_v2, %v6194_v1  ;;  %v6258_v63 = vand.u32 4294901760, %v6257_v43  ;;  %v6215_v62 = vsub.f32 %v15283_v11, %v6214_v12  ;;  %v6738_v43 = vld [vmem:[#allocation7 + $0x100] sm:$0xff] }
 0x588   : > { %12497 = vmatprep.subr.bf16.mxu0 %v15265_v31 }
 0x589   : > { %v6224_v8 = vand.u32 4294901760, %v15299_v51  ;;  %v6196_v9 = vand.u32 4294901760, %v6195_v34  ;;  %v6216_v56 = vand.u32 4294901760, %v6215_v62  ;;  %v6739_v34 = vld [vmem:[#allocation7 + $0x108] sm:$0xff] }
 0x58a   : > { %11291 = vmatmul.mubr.f32.vlgmr.msra.gmra.mrb[4].mxu0 %v15150_v57  ;;  %v6206_v57 = vand.u32 4294901760, %v6205_v5 }
 0x58b   : > { %12499 = vmatpush3.bf16.msra.mxu0 %v15265_v31  ;;  %11293 = vmatprep.mubr.f32.mxu0 %v15184_v27  ;;  %v12508_v27 = vpack.c.bf16 %v6258_v63, %v6251_v24  ;;  %v6225_v30 = vsub.f32 %v15299_v51, %v6224_v8 }
 0x58c   : > { %12501 = vmatprep.subr.bf16.mxu0 %v15288_v45 }
 0x58d   : > { %v6226_v29 = vand.u32 4294901760, %v6225_v30 }
 0x58e   : > { %11294 = vmatmul.mubr.f32.gmra.mrb[6].mxu0 %v15179_v6  ;;  %v12516_v6 = vpack.c.bf16 %v15254_v35, %v15252_v55  ;;  %v5470_v55 = vsel %vm1494_vm4, %v5468_v0, %v14627_v33  ;;  %v15360_v33 = vand.u32 4294901760, %v6746_v22 }
 0x58f   : > { %12503 = vmatpush3.bf16.msra.mxu0 %v15288_v45  ;;  %11304 = vmatprep.mubr.f32.mxu0 %v6196_v9 }
 0x590   : > { %12505 = vmatprep.subr.bf16.mxu0 %v12504_v20 }
 0x592   : > { %11305 = vmatmul.mubr.f32.vlgmr.msra.gmra.mrb[4].mxu0 %v6206_v57  ;;  %v6825_v57 = vand.u32 4294901760, %v15368_v16 }
 0x593   : > { %12507 = vmatpush3.bf16.msra.mxu0 %v12504_v20  ;;  %11307 = vmatprep.mubr.f32.mxu0 %v6216_v56  ;;  %v6740_v20 = vld [vmem:[#allocation7 + $0x110] sm:$0xff] }
 0x594   : > { %12509 = vmatprep.subr.bf16.mxu0 %v12508_v27  ;;  %v6761_v35 = vand.u32 4294901760, %v6740_v20 }
 0x596   : > { %11308 = vmatmul.mubr.f32.gmra.mrb[6].mxu0 %v6226_v29 }
 0x597   : > { %12511 = vmatpush3.bf16.msra.mxu0 %v12508_v27  ;;  %11318 = vmatprep.mubr.f32.mxu0 %v15241_v7  ;;  %v15394_v27 = vsub.f32 %v6749_v41, %v15370_v58 }
 0x598   : > { %12513 = vmatprep.subr.bf16.mxu0 %v12512_v21 }
 0x59a   : > { %11319 = vmatmul.mubr.f32.vlgmr.msra.gmra.mrb[4].mxu0 %v15249_v40 }
 0x59b   : > { %12515 = vmatpush3.bf16.msra.mxu0 %v12512_v21  ;;  %11321 = vmatprep.mubr.f32.mxu0 %v15259_v47 }
 0x59c   : > { %12517 = vmatprep.subr.bf16.mxu0 %v12516_v6 }
 0x59e   : > { %11322 = vmatmul.mubr.f32.gmra.mrb[6].mxu0 %v15279_v4 }
 0x59f   : > { %12519 = vmatpush3.bf16.msra.mxu0 %v12516_v6  ;;  %11332 = vmatprep.mubr.f32.mxu0 %v15257_v2  ;;  %v6755_v2 = vand.u32 4294901760, %v6738_v43 }
 0x5a0   : > { %12521 = vmatprep.subr.bf16.mxu0 %v15265_v31 }
 0x5a1   : > { %v15342_v50 = vsub.f32 %v6738_v43, %v6755_v2  ;;  %v6845_v43 = vand.u32 4294901760, %v15394_v27 }
 0x5a2   : > { %11333 = vmatmul.mubr.f32.vlgmr.msra.gmra.mrb[4].mxu0 %v15275_v3  ;;  %v6758_v3 = vand.u32 4294901760, %v6739_v34 }
 0x5a3   : > { %12523 = vmatpush3.bf16.msra.mxu0 %v15265_v31  ;;  %11335 = vmatprep.mubr.f32.mxu0 %v15283_v11  ;;  %v12532_v11 = vpack.c.bf16 %v6256_v52, %v6249_v48  ;;  %v6764_v48 = vand.u32 4294901760, %v6741_v38  ;;  %v5478_v52 = vsel %vm14651_vm6, %v5470_v55, 0.0  ;;  %v6866_v61 = vand.u32 4294901760, %v15342_v50 }
 0x5a4   : > { %12525 = vmatprep.subr.bf16.mxu0 %v15288_v45  ;;  %v15376_v5 = vpack.c.bf16 %v6758_v3, %v6755_v2  ;;  %v6846_v49 = vsub.f32 %v15394_v27, %v6845_v43 }
 0x5a5   : > { %v6867_v24 = vsub.f32 %v15342_v50, %v6866_v61  ;;  %v15399_v30 = vpack.c.bf16 %v6764_v48, %v6761_v35 }
 0x5a6   : > { %11336 = vmatmul.mubr.f32.gmra.mrb[6].mxu0 %v15299_v51  ;;  %v15365_v51 = vsub.f32 %v6741_v38, %v6764_v48  ;;  %v6847_v55 = vand.u32 4294901760, %v6846_v49 }
 0x5a7   : > { %12527 = vmatpush3.bf16.msra.mxu0 %v15288_v45  ;;  %11346 = vmatprep.mubr.f32.mxu0 %v6194_v1  ;;  %v15344_v1 = vsub.f32 %v6739_v34, %v6758_v3  ;;  %v6868_v56 = vand.u32 4294901760, %v6867_v24 }
 0x5a8   : > { %12529 = vmatprep.subr.bf16.mxu0 %v12528_v46 }
 0x5a9   : > { %v6873_v0 = vand.u32 4294901760, %v15344_v1  ;;  %v12560_v48 = vpack.c.bf16 %v15344_v1, %v15342_v50  ;;  %v9658_v50 = vld [vmem:[#allocation8 + $0x2] ss:$0 sm:$0xff] }
 0x5aa   : > { %11347 = vmatmul.mubr.f32.vlgmr.msra.gmra.mrb[4].mxu0 %v6204_v60  ;;  %v15363_v60 = vsub.f32 %v6740_v20, %v6761_v35 }
 0x5ab   : > { %12531 = vmatpush3.bf16.msra.mxu0 %v12528_v46  ;;  %11349 = vmatprep.mubr.f32.mxu0 %v6214_v12  ;;  %v6752_v12 = vsel %vm1521_vm0, %v5478_v52, 0  ;;  %v6874_v63 = vsub.f32 %v15344_v1, %v6873_v0 }
 0x5ac   : > { %12533 = vmatprep.subr.bf16.mxu0 %v12532_v11  ;;  %v6880_v9 = vand.u32 4294901760, %v15363_v60  ;;  %v15390_v62 = vand.u32 4294901760, %v6752_v12 }
 0x5ad   : > { %v6875_v29 = vand.u32 4294901760, %v6874_v63 }
 0x5ae   : > { %11350 = vmatmul.mubr.f32.gmra.mrb[6].mxu0 %v6224_v8  ;;  %v15386_v8 = vsub.f32 %v6746_v22, %v15360_v33  ;;  %v6881_v6 = vsub.f32 %v15363_v60, %v6880_v9  ;;  %v12576_v22 = vpack.c.bf16 %v6873_v0, %v6866_v61  ;;  %v9659_v0 = vld [vmem:[#allocation10 + $0x2] ss:$0 sm:$0xff] }
 0x5af   : > { %12535 = vmatpush3.bf16.msra.mxu0 %v12532_v11  ;;  %11360 = vmatprep.mubr.f32.mxu0 %v15241_v7  ;;  %v12552_v34 = vpack.c.bf16 %v6875_v29, %v6868_v56 }
 0x5b0   : > { %12537 = vmatprep.subr.bf16.mxu0 %v15265_v31  ;;  %v6835_v21 = vand.u32 4294901760, %v15386_v8  ;;  %v6882_v3 = vand.u32 4294901760, %v6881_v6 }
 0x5b2   : > { %11361 = vmatmul.mubr.f32.vlgmr.msra.gmra.mrb[4].mxu0 %v15249_v40  ;;  %v6836_v2 = vsub.f32 %v15386_v8, %v6835_v21 }
 0x5b3   : > { %12539 = vmatpush3.bf16.msra.mxu0 %v15265_v31  ;;  %11363 = vmatprep.mubr.f32.mxu0 %v15259_v47  ;;  %v6887_v31 = vand.u32 4294901760, %v15365_v51 }
 0x5b4   : > { %12541 = vmatprep.subr.bf16.mxu0 %v15288_v45 }
 0x5b5   : > { %v6888_v46 = vsub.f32 %v15365_v51, %v6887_v31  ;;  %v12580_v41 = vpack.c.bf16 %v6887_v31, %v6880_v9 }
 0x5b6   : > { %11364 = vmatmul.mubr.f32.gmra.mrb[6].mxu0 %v15279_v4 }
 0x5b7   : > { %12543 = vmatpush3.bf16.msra.mxu0 %v15288_v45  ;;  %11374 = vmatprep.mubr.f32.mxu0 %v15241_v7  ;;  %v6854_v45 = vsub.f32 %v6752_v12, %v15390_v62  ;;  %v6826_v7 = vsub.f32 %v15368_v16, %v6825_v57  ;;  %v6889_v11 = vand.u32 4294901760, %v6888_v46 }
 0x5b8   : > { %12545 = vmatprep.subr.bf16.mxu0 %v15376_v5 }
 0x5b9   : > { %v6855_v20 = vand.u32 4294901760, %v6854_v45  ;;  %v6827_v38 = vand.u32 4294901760, %v6826_v7  ;;  %v12556_v37 = vpack.c.bf16 %v6889_v11, %v6882_v3 }
 0x5ba   : > { %11375 = vmatmul.mubr.f32.vlgmr.msra.gmra.mrb[4].mxu0 %v15249_v40  ;;  %v6837_v40 = vand.u32 4294901760, %v6836_v2 }
 0x5bb   : > { %12547 = vmatpush3.bf16.msra.mxu0 %v15376_v5  ;;  %11377 = vmatprep.mubr.f32.mxu0 %v15259_v47  ;;  %v6856_v47 = vsub.f32 %v6854_v45, %v6855_v20 }
 0x5bc   : > { %12549 = vmatprep.subr.bf16.mxu0 %v15399_v30 }
 0x5bd   : > { %v6857_v35 = vand.u32 4294901760, %v6856_v47 }
 0x5be   : > { %11378 = vmatmul.mubr.f32.gmra.mrb[6].mxu0 %v15279_v4  ;;  %v12564_v4 = vpack.c.bf16 %v15365_v51, %v15363_v60 }
 0x5bf   : > { %12551 = vmatpush3.bf16.msra.mxu0 %v15399_v30  ;;  %11388 = vmatprep.mubr.f32.mxu0 %v6827_v38 }
 0x5c0   : > { %12553 = vmatprep.subr.bf16.mxu0 %v12552_v34 }
 0x5c2   : > { %11389 = vmatmul.mubr.f32.vlgmr.msra.gmra.mrb[4].mxu0 %v6837_v40 }
 0x5c3   : > { %12555 = vmatpush3.bf16.msra.mxu0 %v12552_v34  ;;  %11391 = vmatprep.mubr.f32.mxu0 %v6847_v55 }
 0x5c4   : > { %12557 = vmatprep.subr.bf16.mxu0 %v12556_v37 }
 0x5c5   : > { %v7419_v29 = vpop.permute.xlu1 %7418 }
 0x5c6   : > { %11392 = vmatmul.mubr.f32.gmra.mrb[6].mxu0 %v6857_v35  ;;  %v7445_v6 = vsel %vm1521_vm0, %v14784_v32, %v7419_v29  ;;  %v16329_v29 = vld [vmem:[#allocation27_spill] sm:$0xff] }
 0x5c7   : > { %12559 = vmatpush3.bf16.msra.mxu0 %v12556_v37  ;;  %11402 = vmatprep.mubr.f32.mxu0 %v15351_v15 }
 0x5c8   : > { %12561 = vmatprep.subr.bf16.mxu0 %v12560_v48 }
 0x5ca   : > { %11403 = vmatmul.mubr.f32.vlgmr.msra.gmra.mrb[4].mxu0 %v15360_v33 }
 0x5cb   : > { %12563 = vmatpush3.bf16.msra.mxu0 %v12560_v48  ;;  %11405 = vmatprep.mubr.f32.mxu0 %v15370_v58 }
 0x5cc   : > { %12565 = vmatprep.subr.bf16.mxu0 %v12564_v4 }
 0x5ce   : > { %11406 = vmatmul.mubr.f32.gmra.mrb[6].mxu0 %v15390_v62 }
 0x5cf   : > { %12567 = vmatpush3.bf16.msra.mxu0 %v12564_v4  ;;  %11416 = vmatprep.mubr.f32.mxu0 %v15368_v16 }
 0x5d0   : > { %12569 = vmatprep.subr.bf16.mxu0 %v15376_v5 }
 0x5d2   : > { %11417 = vmatmul.mubr.f32.vlgmr.msra.gmra.mrb[4].mxu0 %v15386_v8 }
 0x5d3   : > { %12571 = vmatpush3.bf16.msra.mxu0 %v15376_v5  ;;  %11419 = vmatprep.mubr.f32.mxu0 %v15394_v27 }
 0x5d4   : > { %12573 = vmatprep.subr.bf16.mxu0 %v15399_v30 }
 0x5d6   : > { %11420 = vmatmul.mubr.f32.gmra.mrb[6].mxu0 %v6854_v45 }
 0x5d7   : > { %12575 = vmatpush3.bf16.msra.mxu0 %v15399_v30  ;;  %11430 = vmatprep.mubr.f32.mxu0 %v6825_v57 }
 0x5d8   : > { %12577 = vmatprep.subr.bf16.mxu0 %v12576_v22 }
 0x5da   : > { %11431 = vmatmul.mubr.f32.vlgmr.msra.gmra.mrb[4].mxu0 %v6835_v21  ;;  %v7417_v21 = vpop.permute.xlu0 %7416 }
 0x5db   : > { %12579 = vmatpush3.bf16.msra.mxu0 %v12576_v22  ;;  %11433 = vmatprep.mubr.f32.mxu0 %v6845_v43 }
 0x5dc   : > { %12581 = vmatprep.subr.bf16.mxu0 %v12580_v41 }
 0x5de   : > { %11434 = vmatmul.mubr.f32.gmra.mrb[6].mxu0 %v6855_v20 }
 0x5df   : > { %12583 = vmatpush3.bf16.msra.mxu0 %v12580_v41  ;;  %11444 = vmatprep.mubr.f32.mxu0 %v15351_v15 }
 0x5e0   : > { %12585 = vmatprep.subr.bf16.mxu0 %v15376_v5 }
 0x5e2   : > { %11445 = vmatmul.mubr.f32.vlgmr.msra.gmra.mrb[4].mxu0 %v15360_v33 }
 0x5e3   : > { %12587 = vmatpush3.bf16.msra.mxu0 %v15376_v5  ;;  %11447 = vmatprep.mubr.f32.mxu0 %v15370_v58  ;;  %v9660_v5 = vld [vmem:[#allocation11 + $0x2] ss:$0 sm:$0xff] }
 0x5e4   : > { %12589 = vmatprep.subr.bf16.mxu0 %v15399_v30 }
 0x5e6   : > { %11448 = vmatmul.mubr.f32.gmra.mrb[6].mxu0 %v15390_v62 }
 0x5e7   : > { %12591 = vmatpush3.bf16.msra.mxu0 %v15399_v30  ;;  %11458 = vmatprep.mubr.f32.mxu0 %v15351_v15 }
 0x5ea   : > { %11459 = vmatmul.mubr.f32.vlgmr.msra.gmra.mrb[4].mxu0 %v15360_v33 }
 0x5eb   : > { %11461 = vmatprep.mubr.f32.mxu0 %v15370_v58 }
 0x5ee   : > { %11462 = vmatmul.mubr.f32.gmra.mrb[6].mxu0 %v15390_v62 }
 0x6bd   : > { %v11460_v1 = vpop.f32.mrb[4].mxu0 }
 0x6be   : > { %v7381_v52 = vadd.f32 %v11460_v1, %v9658_v50  ;;  %v7346_v61 = vpop.f32.mrb[5].mxu0 }
 0x6bf   : > { %v7380_v60 = vadd.f32 %v9658_v50, %v7346_v61 }
 0x6c0   : > { %v7385_v51 = vmax.f32 %v7381_v52, 0.0 }
 0x6c1   : > { %v7384_v16 = vmax.f32 %v7380_v60, 0.0  ;;  %v11463_v12 = vpop.f32.mrb[6].mxu0 }
 0x6c2   : > { %v7397_v24 = vmul.f32 %v9659_v0, %v7385_v51  ;;  %v7383_v63 = vadd.f32 %v11463_v12, %v9658_v50  ;;  %v7358_v8 = vpop.f32.mrb[7].mxu0  ;;  %v16312_v12 = vld [vmem:[#allocation34_spill] sm:$0xff] }
 0x6c3   : > { %v7396_v15 = vmul.f32 %v9659_v0, %v7384_v16  ;;  %v7382_v9 = vadd.f32 %v9658_v50, %v7358_v8  ;;  %v16310_v16 = vld [vmem:[#allocation32_spill] sm:$0xff] }
 0x6c4   : > { %v7387_v33 = vmax.f32 %v7383_v63, 0.0  ;;  %v7409_v31 = vadd.f32 %v9660_v5, %v7397_v24  ;;  %v16316_v24 = vld [vmem:[#allocation38_spill] sm:$0xff]  ;;  %v16317_v63 = vld [vmem:[#allocation39_spill] sm:$0xff]  ;;  %v16318_v8 = vld [vmem:[#allocation40_spill] sm:$0xff] }
 0x6c5   : > { %v7386_v58 = vmax.f32 %v7382_v9, 0.0  ;;  %v7408_v57 = vadd.f32 %v9660_v5, %v7396_v15  ;;  %v16319_v15 = vld [vmem:[#allocation41_spill] sm:$0xff]  ;;  %v16320_v9 = vld [vmem:[#allocation42_spill] sm:$0xff] }
 0x6c6   : > { %7434 = vrot.lane.b32.xlu1 %v7409_v31, %s13620_s16  ;;  %v7399_v62 = vmul.f32 %v9659_v0, %v7387_v33  ;;  %v16321_v33 = vld [vmem:[#allocation19_spill] sm:$0xff]  ;;  %v16322_v31 = vld [vmem:[#allocation20_spill] sm:$0xff] }
 0x6c7   : > { %7432 = vrot.lane.b32.xlu0 %v7408_v57, %s13620_s16  ;;  %v7398_v27 = vmul.f32 %v9659_v0, %v7386_v58  ;;  %v16323_v58 = vld [vmem:[#allocation21_spill] sm:$0xff]  ;;  %v16324_v57 = vld [vmem:[#allocation22_spill] sm:$0xff] }
 0x6c8   : > { %v7411_v30 = vadd.f32 %v9660_v5, %v7399_v62  ;;  %v16325_v62 = vld [vmem:[#allocation23_spill] sm:$0xff] }
 0x6c9   : > { %v7410_v56 = vadd.f32 %v9660_v5, %v7398_v27  ;;  %v16315_v5 = vld [vmem:[#allocation37_spill] sm:$0xff]  ;;  %v16326_v27 = vld [vmem:[#allocation24_spill] sm:$0xff] }
 0x6ca   : > { %7422 = vrot.lane.b32.xlu1 %v15143_v26, %s13622_s4  ;;  %v7444_v26 = vsel %vm1521_vm0, %v14786_v53, %v7417_v21  ;;  %v16330_v21 = vld [vmem:[#allocation28_spill] sm:$0xff] }
 0x6cb   : > { %7420 = vrot.lane.b32.xlu0 %v15148_v44, %s13622_s4  ;;  %s16356_s4 = sld [smem:[#allocation49_spill]] }
 0x6ce   : > { %7438 = vrot.lane.b32.xlu1 %v7411_v30, %s13620_s16  ;;  %v16327_v30 = vld [vmem:[#allocation25_spill] sm:$0xff] }
 0x6cf   : > { %7436 = vrot.lane.b32.xlu0 %v7410_v56, %s13620_s16  ;;  %v16328_v56 = vld [vmem:[#allocation26_spill] sm:$0xff]  ;;  %s16359_s16 = sld [smem:[#allocation52_spill]] }
 0x738   : > { %v7435_v46 = vpop.permute.xlu1 %7434 }
 0x739   : > { %v7450_v45 = vsel %vm7448_vm7, %v7445_v6, %v7435_v46  ;;  %v7433_v44 = vpop.permute.xlu0 %7432  ;;  %v16331_v6 = vld [vmem:[#allocation29_spill] sm:$0xff]  ;;  %v16332_v46 = vld [vmem:[#allocation30_spill] sm:$0xff] }
 0x73a   : > { %v7455_v7 = vsel %vm7453_vm8, %v7450_v45, %v14399_v36  ;;  %v7449_v43 = vsel %vm7448_vm7, %v7444_v26, %v7433_v44  ;;  %v13623_v45 = vmov 0.0|0.0   ;;  %v8259_v44 = vld [vmem:[%s16333_s13 + $0x10] sm:$0xff] }
 0x73b   : > { %v15471_v34 = vand.u32 4294901760, %v7455_v7  ;;  %v7454_v2 = vsel %vm7453_vm8, %v7449_v43, %v14401_v42  ;;  %12784 = vmatprep.subr.bf16.mxu0 %v13623_v45  ;;  %v8292_v43 = vand.u32 4294901760, %v8259_v44 }
 0x73c   : > { %v15475_v3 = vand.u32 4294901760, %v7454_v2  ;;  %v7423_v32 = vpop.permute.xlu1 %7422 }
 0x73d   : > { %v15478_v11 = vsub.f32 %v7455_v7, %v15471_v34  ;;  %v7421_v53 = vpop.permute.xlu0 %7420  ;;  %v7447_v36 = vsel %vm1521_vm0, %v14796_v23, %v7423_v32  ;;  %v8260_v7 = vld [vmem:[%s16333_s13 + $0x18] sm:$0xff]  ;;  %v8262_v32 = vld [vmem:[%s16333_s13 + $0x28] sm:$0xff] }
 0x73e   : > { %v15481_v20 = vsub.f32 %v7454_v2, %v15475_v3  ;;  %v7446_v37 = vsel %vm1521_vm0, %v14800_v19, %v7421_v53  ;;  %v8301_v53 = vand.u32 4294901760, %v8262_v32 }
 0x73f   : > { %v7551_v38 = vand.u32 4294901760, %v15478_v11 }
 0x740   : > { %v7439_v49 = vpop.permute.xlu1 %7438  ;;  %v7541_v40 = vand.u32 4294901760, %v15481_v20 }
 0x741   : > { %v7552_v42 = vsub.f32 %v15478_v11, %v7551_v38  ;;  %v7452_v47 = vsel %vm7448_vm7, %v7447_v36, %v7439_v49  ;;  %v7437_v55 = vpop.permute.xlu0 %7436  ;;  %v8264_v36 = vld [vmem:[%s16333_s13 + $0x38] sm:$0xff] }
 0x742   : > { %v7457_v35 = vsel %vm7453_vm8, %v7452_v47, %v14410_v17  ;;  %v7451_v48 = vsel %vm7448_vm7, %v7446_v37, %v7437_v55  ;;  %v7542_v23 = vsub.f32 %v15481_v20, %v7541_v40  ;;  %v15663_v47 = vsub.f32 %v8259_v44, %v8292_v43 }
 0x743   : > { %v15499_v4 = vand.u32 4294901760, %v7457_v35  ;;  %v7456_v22 = vsel %vm7453_vm8, %v7451_v48, %v14414_v14  ;;  %v7553_v50 = vand.u32 4294901760, %v7552_v42  ;;  %v8266_v48 = vld [vmem:[%s16333_s13 + $0x48] sm:$0xff] }
 0x744   : > { %v15503_v41 = vand.u32 4294901760, %v7456_v22  ;;  %v7543_v19 = vand.u32 4294901760, %v7542_v23  ;;  %v8267_v23 = vld [vmem:[%s16333_s13 + $0x50] sm:$0xff] }
 0x745   : > { %v15506_v1 = vsub.f32 %v7457_v35, %v15499_v4  ;;  %v8265_v35 = vld [vmem:[%s16333_s13 + $0x40] sm:$0xff] }
 0x746   : > { %v15509_v17 = vsub.f32 %v7456_v22, %v15503_v41  ;;  %11496 = vmatprep.mubr.f32.mxu1 %v7543_v19  ;;  %v15679_v22 = vsub.f32 %v8262_v32, %v8301_v53 }
 0x747   : > { %11497 = vmatmul.mubr.f32.vlgmr.msra.gmra.mrb[8].mxu1 %v7553_v50  ;;  %v7571_v52 = vand.u32 4294901760, %v15506_v1  ;;  %v8268_v50 = vld [vmem:[%s16333_s13 + $0x58] sm:$0xff] }
 0x748   : > { %12627 = vmatpush3.bf16.msra.mxu1 %v14149_v54  ;;  %v7561_v61 = vand.u32 4294901760, %v15509_v17  ;;  %v16309_v54 = vld [vmem:[#allocation31_spill] sm:$0xff] }
 0x749   : > { %12629 = vmatprep.subr.bf16.mxu1 %v14213_v59  ;;  %v7572_v14 = vsub.f32 %v15506_v1, %v7571_v52 }
 0x74a   : > { %v7562_v0 = vsub.f32 %v15509_v17, %v7561_v61 }
 0x74b   : > { %v7573_v51 = vand.u32 4294901760, %v7572_v14  ;;  %v8313_v14 = vand.u32 4294901760, %v8266_v48 }
 0x74c   : > { %12631 = vmatpush3.bf16.msra.mxu1 %v14213_v59  ;;  %v7563_v60 = vand.u32 4294901760, %v7562_v0  ;;  %v16311_v59 = vld [vmem:[#allocation33_spill] sm:$0xff]  ;;  %v8316_v0 = vand.u32 4294901760, %v8267_v23 }
 0x74d   : > { %12633 = vmatprep.subr.bf16.mxu1 %v14218_v39 }
 0x74e   : > { %11499 = vmatprep.mubr.f32.mxu1 %v7563_v60  ;;  %v8271_v60 = vld [vmem:[%s16333_s13 + $0x70] sm:$0xff] }
 0x74f   : > { %11500 = vmatmul.mubr.f32.gmra.mrb[10].mxu1 %v7573_v51  ;;  %v8319_v51 = vand.u32 4294901760, %v8268_v50 }
 0x750   : > { %12635 = vmatpush3.bf16.msra.mxu1 %v14218_v39  ;;  %11534 = vmatprep.mubr.f32.mxu1 %v15475_v3  ;;  %v16313_v39 = vld [vmem:[#allocation35_spill] sm:$0xff] }
 0x751   : > { %12637 = vmatprep.subr.bf16.mxu1 %v14227_v25 }
 0x754   : > { %12639 = vmatpush3.bf16.msra.mxu1 %v14227_v25  ;;  %v16314_v25 = vld [vmem:[#allocation36_spill] sm:$0xff] }
 0x755   : > { %12641 = vmatprep.subr.bf16.mxu1 %v16309_v54 }
 0x758   : > { %12643 = vmatpush3.bf16.msra.mxu1 %v16309_v54 }
 0x759   : > { %12645 = vmatprep.subr.bf16.mxu1 %v16310_v16 }
 0x75c   : > { %12647 = vmatpush3.bf16.msra.mxu1 %v16310_v16 }
 0x75d   : > { %12649 = vmatprep.subr.bf16.mxu1 %v16311_v59 }
 0x760   : > { %12651 = vmatpush3.bf16.msra.mxu1 %v16311_v59  ;;  %v8272_v59 = vld [vmem:[%s16333_s13 + $0x78] sm:$0xff] }
 0x761   : > { %12653 = vmatprep.subr.bf16.mxu1 %v16312_v12 }
 0x764   : > { %12655 = vmatpush3.bf16.msra.mxu1 %v16312_v12  ;;  %v8328_v12 = vand.u32 4294901760, %v8271_v60 }
 0x765   : > { %12657 = vmatprep.subr.bf16.mxu1 %v16313_v39 }
 0x767   : > { %11535 = vmatmul.mubr.f32.vlgmr.msra.gmra.mrb[8].mxu1 %v15471_v34 }
 0x768   : > { %11537 = vmatprep.mubr.f32.mxu1 %v15503_v41  ;;  %12659 = vmatpush3.bf16.msra.mxu1 %v16313_v39 }
 0x769   : > { %12661 = vmatprep.subr.bf16.mxu1 %v16314_v25 }
 0x76b   : > { %11538 = vmatmul.mubr.f32.gmra.mrb[10].mxu1 %v15499_v4 }
 0x76c   : > { %12663 = vmatpush3.bf16.msra.mxu1 %v16314_v25  ;;  %11572 = vmatprep.mubr.f32.mxu1 %v15481_v20 }
 0x76d   : > { %12665 = vmatprep.subr.bf16.mxu1 %v16315_v5 }
 0x770   : > { %12667 = vmatpush3.bf16.msra.mxu1 %v16315_v5  ;;  %v15708_v5 = vsub.f32 %v8266_v48, %v8313_v14 }
 0x771   : > { %12669 = vmatprep.subr.bf16.mxu1 %v16316_v24 }
 0x774   : > { %12671 = vmatpush3.bf16.msra.mxu1 %v16316_v24  ;;  %v15710_v24 = vsub.f32 %v8267_v23, %v8316_v0 }
 0x775   : > { %12673 = vmatprep.subr.bf16.mxu1 %v16317_v63 }
 0x778   : > { %12675 = vmatpush3.bf16.msra.mxu1 %v16317_v63  ;;  %v15712_v63 = vsub.f32 %v8268_v50, %v8319_v51 }
 0x779   : > { %12677 = vmatprep.subr.bf16.mxu1 %v16318_v8 }
 0x77c   : > { %12679 = vmatpush3.bf16.msra.mxu1 %v16318_v8 }
 0x77d   : > { %12681 = vmatprep.subr.bf16.mxu1 %v16319_v15 }
 0x780   : > { %12683 = vmatpush3.bf16.msra.mxu1 %v16319_v15 }
 0x781   : > { %12685 = vmatprep.subr.bf16.mxu1 %v16320_v9 }
 0x784   : > { %12687 = vmatpush3.bf16.msra.mxu1 %v16320_v9  ;;  %v8331_v9 = vand.u32 4294901760, %v8272_v59 }
 0x785   : > { %12689 = vmatprep.subr.bf16.mxu1 %v13999_v10 }
 0x787   : > { %11573 = vmatmul.mubr.f32.vlgmr.msra.gmra.mrb[8].mxu1 %v15478_v11 }
 0x788   : > { %11575 = vmatprep.mubr.f32.mxu1 %v15509_v17  ;;  %12691 = vmatpush3.bf16.msra.mxu1 %v13999_v10  ;;  %v8270_v17 = vld [vmem:[%s16333_s13 + $0x68] sm:$0xff] }
 0x789   : > { %12693 = vmatprep.subr.bf16.mxu1 %v14001_v13  ;;  %v8325_v16 = vand.u32 4294901760, %v8270_v17 }
 0x78b   : > { %11576 = vmatmul.mubr.f32.gmra.mrb[10].mxu1 %v15506_v1  ;;  %v8269_v1 = vld [vmem:[%s16333_s13 + $0x60] sm:$0xff]  ;;  %v15716_v15 = vsub.f32 %v8270_v17, %v8325_v16 }
 0x78c   : > { %12695 = vmatpush3.bf16.msra.mxu1 %v14001_v13  ;;  %11610 = vmatprep.mubr.f32.mxu1 %v7541_v40  ;;  %v8307_v40 = vand.u32 4294901760, %v8264_v36  ;;  %v8322_v54 = vand.u32 4294901760, %v8269_v1 }
 0x78d   : > { %12697 = vmatprep.subr.bf16.mxu1 %v14019_v18 }
 0x78e   : > { %v15714_v8 = vsub.f32 %v8269_v1, %v8322_v54 }
 0x790   : > { %12699 = vmatpush3.bf16.msra.mxu1 %v14019_v18 }
 0x791   : > { %12701 = vmatprep.subr.bf16.mxu1 %v14048_v28 }
 0x794   : > { %12703 = vmatpush3.bf16.msra.mxu1 %v14048_v28 }
 0x795   : > { %12705 = vmatprep.subr.bf16.mxu1 %v16321_v33 }
 0x798   : > { %12707 = vmatpush3.bf16.msra.mxu1 %v16321_v33 }
 0x799   : > { %12709 = vmatprep.subr.bf16.mxu1 %v16322_v31 }
 0x79c   : > { %12711 = vmatpush3.bf16.msra.mxu1 %v16322_v31 }
 0x79d   : > { %12713 = vmatprep.subr.bf16.mxu1 %v16323_v58 }
 0x7a0   : > { %12715 = vmatpush3.bf16.msra.mxu1 %v16323_v58 }
 0x7a1   : > { %12717 = vmatprep.subr.bf16.mxu1 %v16324_v57 }
 0x7a4   : > { %12719 = vmatpush3.bf16.msra.mxu1 %v16324_v57 }
 0x7a5   : > { %12721 = vmatprep.subr.bf16.mxu1 %v16325_v62 }
 0x7a7   : > { %11611 = vmatmul.mubr.f32.vlgmr.msra.gmra.mrb[8].mxu1 %v7551_v38  ;;  %v8263_v38 = vld [vmem:[%s16333_s13 + $0x30] sm:$0xff] }
 0x7a8   : > { %11613 = vmatprep.mubr.f32.mxu1 %v7561_v61  ;;  %12723 = vmatpush3.bf16.msra.mxu1 %v16325_v62  ;;  %v8304_v49 = vand.u32 4294901760, %v8263_v38  ;;  %v8310_v61 = vand.u32 4294901760, %v8265_v35  ;;  %v15731_v62 = vpack.c.bf16 %v8325_v16, %v8322_v54  ;;  %v16210_v16 = vand.u32 4294901760, %v15710_v24 }
 0x7a9   : > { %12725 = vmatprep.subr.bf16.mxu1 %v16326_v27 }
 0x7aa   : > { %v15683_v19 = vsub.f32 %v8263_v38, %v8304_v49  ;;  %v15704_v39 = vpack.c.bf16 %v8313_v14, %v8310_v61  ;;  %v15706_v25 = vsub.f32 %v8265_v35, %v8310_v61  ;;  %v16211_v61 = vand.u32 4294901760, %v15708_v5 }
 0x7ab   : > { %11614 = vmatmul.mubr.f32.gmra.mrb[10].mxu1 %v7571_v52  ;;  %v15694_v52 = vsub.f32 %v8264_v36, %v8307_v40 }
 0x7ac   : > { %12727 = vmatpush3.bf16.msra.mxu1 %v16326_v27  ;;  %11648 = vmatprep.mubr.f32.mxu1 %v15475_v3  ;;  %v16214_v36 = vand.u32 4294901760, %v15683_v19  ;;  %v16212_v17 = vand.u32 4294901760, %v15706_v25 }
 0x7ad   : > { %12729 = vmatprep.subr.bf16.mxu1 %v16327_v30 }
 0x7ae   : > { %v8422_v35 = vsub.f32 %v15683_v19, %v16214_v36 }
 0x7b0   : > { %12731 = vmatpush3.bf16.msra.mxu1 %v16327_v30  ;;  %v8423_v50 = vand.u32 4294901760, %v8422_v35 }
 0x7b1   : > { %12733 = vmatprep.subr.bf16.mxu1 %v16328_v56 }
 0x7b4   : > { %12735 = vmatpush3.bf16.msra.mxu1 %v16328_v56  ;;  %v15736_v56 = vpack.c.bf16 %v8331_v9, %v8328_v12 }
 0x7b5   : > { %12737 = vmatprep.subr.bf16.mxu1 %v16329_v29 }
 0x7b8   : > { %12739 = vmatpush3.bf16.msra.mxu1 %v16329_v29 }
 0x7b9   : > { %12741 = vmatprep.subr.bf16.mxu1 %v16330_v21 }
 0x7bc   : > { %12743 = vmatpush3.bf16.msra.mxu1 %v16330_v21 }
 0x7bd   : > { %12745 = vmatprep.subr.bf16.mxu1 %v16331_v6 }
 0x7c0   : > { %12747 = vmatpush3.bf16.msra.mxu1 %v16331_v6  ;;  %v16218_v6 = vand.u32 4294901760, %v15663_v47 }
 0x7c1   : > { %12749 = vmatprep.subr.bf16.mxu1 %v16332_v46 }
 0x7c4   : > { %12751 = vmatpush3.bf16.msra.mxu1 %v16332_v46 }
 0x7c5   : > { %12753 = vmatprep.subr.bf16.mxu1 %v13999_v10 }
 0x7c7   : > { %11649 = vmatmul.mubr.f32.vlgmr.msra.gmra.mrb[8].mxu1 %v15471_v34 }
 0x7c8   : > { %11651 = vmatprep.mubr.f32.mxu1 %v15503_v41  ;;  %12755 = vmatpush3.bf16.msra.mxu1 %v13999_v10  ;;  %v8257_v10 = vld [vmem:[%s16333_s13] sm:$0xff] }
 0x7c9   : > { %12757 = vmatprep.subr.bf16.mxu1 %v14001_v13 }
 0x7cb   : > { %11652 = vmatmul.mubr.f32.gmra.mrb[10].mxu1 %v15499_v4 }
 0x7cc   : > { %12759 = vmatpush3.bf16.msra.mxu1 %v14001_v13  ;;  %11686 = vmatprep.mubr.f32.mxu1 %v15475_v3  ;;  %v8258_v13 = vld [vmem:[%s16333_s13 + $0x8] sm:$0xff]  ;;  %v8261_v3 = vld [vmem:[%s16333_s13 + $0x20] sm:$0xff] }
 0x7cd   : > { %12761 = vmatprep.subr.bf16.mxu1 %v14019_v18  ;;  %v8298_v11 = vand.u32 4294901760, %v8261_v3 }
 0x7cf   : > { %v15650_v20 = vpack.c.bf16 %v8301_v53, %v8298_v11 }
 0x7d0   : > { %12763 = vmatpush3.bf16.msra.mxu1 %v14019_v18  ;;  %v8286_v18 = vand.u32 4294901760, %v8257_v10 }
 0x7d1   : > { %12765 = vmatprep.subr.bf16.mxu1 %v14048_v28 }
 0x7d2   : > { %v15659_v42 = vsub.f32 %v8257_v10, %v8286_v18 }
 0x7d4   : > { %12767 = vmatpush3.bf16.msra.mxu1 %v14048_v28  ;;  %v8289_v28 = vand.u32 4294901760, %v8258_v13  ;;  %v16220_v27 = vand.u32 4294901760, %v15659_v42 }
 0x7d5   : > { %12769 = vmatprep.subr.bf16.mxu1 %v16321_v33 }
 0x7d6   : > { %v15628_v26 = vpack.c.bf16 %v8289_v28, %v8286_v18  ;;  %v15661_v37 = vsub.f32 %v8258_v13, %v8289_v28  ;;  %v8380_v29 = vsub.f32 %v15659_v42, %v16220_v27  ;;  %v8394_v18 = vsub.f32 %v15663_v47, %v16218_v6 }
 0x7d8   : > { %12771 = vmatpush3.bf16.msra.mxu1 %v16321_v33  ;;  %12786 = vmatpush3.bf16.msra.mxu0 %v15628_v26  ;;  %v15718_v33 = vsub.f32 %v8271_v60, %v8328_v12  ;;  %v16219_v30 = vand.u32 4294901760, %v15661_v37  ;;  %v8381_v10 = vand.u32 4294901760, %v8380_v29  ;;  %v8443_v60 = vsub.f32 %v15708_v5, %v16211_v61 }
 0x7d9   : > { %12773 = vmatprep.subr.bf16.mxu1 %v16322_v31  ;;  %12787 = vmatprep.subr.bf16.mxu0 %v13623_v45 }
 0x7da   : > { %v8387_v21 = vsub.f32 %v15661_v37, %v16219_v30  ;;  %v8444_v54 = vand.u32 4294901760, %v8443_v60 }
 0x7dc   : > { %12775 = vmatpush3.bf16.msra.mxu1 %v16322_v31  ;;  %v15721_v31 = vpack.c.bf16 %v8319_v51, %v8316_v0  ;;  %v8388_v13 = vand.u32 4294901760, %v8387_v21  ;;  %v8436_v0 = vsub.f32 %v15706_v25, %v16212_v17 }
 0x7dd   : > { %12777 = vmatprep.subr.bf16.mxu1 %v16323_v58 }
 0x7de   : > { %v15755_v44 = vpack.c.bf16 %v8388_v13, %v8381_v10  ;;  %v8437_v51 = vand.u32 4294901760, %v8436_v0  ;;  %v16208_v13 = vand.u32 4294901760, %v15714_v8 }
 0x7e0   : > { %12779 = vmatpush3.bf16.msra.mxu1 %v16323_v58  ;;  %v16334_v58 = vmov 0.0   ;;  %v15790_v12 = vpack.c.bf16 %v8444_v54, %v8437_v51  ;;  %v12833_v51 = vpack.c.bf16 %v15661_v37, %v15659_v42 }
 0x7e1   : > { %12781 = vmatprep.subr.bf16.mxu1 %v16324_v57  ;;  %11724 = vmatprep.mubr.msk.f32.mxu0 %vm13624_vm9, %v16334_v58 }
 0x7e4   : > { %12783 = vmatpush3.bf16.msra.mxu1 %v16324_v57  ;;  %v15726_v57 = vsub.f32 %v8272_v59, %v8331_v9  ;;  %v16209_v59 = vand.u32 4294901760, %v15712_v63  ;;  %v8450_v9 = vsub.f32 %v15710_v24, %v16210_v16 }
 0x7e5   : > { %12928 = vmatprep.subr.bf16.mxu1 %v13623_v45 }
 0x7e6   : > { %v8457_v29 = vsub.f32 %v15712_v63, %v16209_v59  ;;  %v8451_v21 = vand.u32 4294901760, %v8450_v9 }
 0x7e7   : > { %11687 = vmatmul.mubr.f32.vlgmr.msra.gmra.mrb[8].mxu1 %v15471_v34  ;;  %v8295_v34 = vand.u32 4294901760, %v8260_v7 }
 0x7e8   : > { %11689 = vmatprep.mubr.f32.mxu1 %v15503_v41  ;;  %v15681_v41 = vpack.c.bf16 %v8307_v40, %v8304_v49  ;;  %v16213_v49 = vand.u32 4294901760, %v15694_v52  ;;  %v8458_v10 = vand.u32 4294901760, %v8457_v29  ;;  %v12842_v29 = vpack.c.bf16 %v15694_v52, %v15683_v19 }
 0x7e9   : > { %v15640_v2 = vpack.c.bf16 %v8295_v34, %v8292_v43  ;;  %v15665_v55 = vsub.f32 %v8260_v7, %v8295_v34  ;;  %v8395_v7 = vand.u32 4294901760, %v8394_v18  ;;  %v16207_v18 = vand.u32 4294901760, %v15716_v15 }
 0x7ea   : > { %v8429_v48 = vsub.f32 %v15694_v52, %v16213_v49  ;;  %v13354_v49 = vld [vmem:[#allocation5] ss:$0 sm:$0xff] }
 0x7eb   : > { %11690 = vmatmul.mubr.f32.gmra.mrb[10].mxu1 %v15499_v4  ;;  %12789 = vmatpush3.bf16.msra.mxu0 %v15640_v2  ;;  %v15677_v4 = vsub.f32 %v8261_v3, %v8298_v11  ;;  %v16217_v46 = vand.u32 4294901760, %v15665_v55  ;;  %v16215_v3 = vand.u32 4294901760, %v15679_v22  ;;  %v12836_v54 = vpack.c.bf16 %v15665_v55, %v15663_v47 }
 0x7ec   : > { %12790 = vmatprep.subr.bf16.mxu0 %v13623_v45  ;;  %11910 = vmatprep.mubr.msk.f32.mxu1 %vm13624_vm9, %v16334_v58  ;;  %v8430_v1 = vand.u32 4294901760, %v8429_v48 }
 0x7ed   : > { %v8401_v28 = vsub.f32 %v15665_v55, %v16217_v46  ;;  %v16216_v34 = vand.u32 4294901760, %v15677_v4  ;;  %v8415_v53 = vsub.f32 %v15679_v22, %v16215_v3  ;;  %v12839_v9 = vpack.c.bf16 %v15679_v22, %v15677_v4 }
 0x7ee   : > { %v15780_v14 = vpack.c.bf16 %v8430_v1, %v8423_v50 }
 0x7ef   : > { %12792 = vmatpush3.bf16.msra.mxu0 %v15650_v20  ;;  %v8402_v43 = vand.u32 4294901760, %v8401_v28  ;;  %v8408_v11 = vsub.f32 %v15677_v4, %v16216_v34  ;;  %v8416_v40 = vand.u32 4294901760, %v8415_v53  ;;  %v15800_v28 = vpack.c.bf16 %v8458_v10, %v8451_v21 }
 0x7f0   : > { %12793 = vmatprep.subr.bf16.mxu0 %v13623_v45  ;;  %v12845_v21 = vpack.c.bf16 %v15708_v5, %v15706_v25  ;;  %v12848_v10 = vpack.c.bf16 %v15712_v63, %v15710_v24 }
 0x7f1   : > { %v15760_v32 = vpack.c.bf16 %v8402_v43, %v8395_v7  ;;  %v8409_v38 = vand.u32 4294901760, %v8408_v11  ;;  %v8464_v7 = vsub.f32 %v15714_v8, %v16208_v13  ;;  %v8471_v43 = vsub.f32 %v15716_v15, %v16207_v18  ;;  %v13353_v18 = vld [vmem:[%s16110_s3] ss:$0 sm:$0xff] }
 0x7f3   : > { %12795 = vmatpush3.bf16.msra.mxu0 %v15681_v41  ;;  %v15776_v23 = vpack.c.bf16 %v8416_v40, %v8409_v38  ;;  %v8465_v11 = vand.u32 4294901760, %v8464_v7  ;;  %v8472_v53 = vand.u32 4294901760, %v8471_v43  ;;  %v16206_v38 = vand.u32 4294901760, %v15718_v33 }
 0x7f4   : > { %12796 = vmatprep.subr.bf16.mxu0 %v13623_v45  ;;  %v16205_v40 = vand.u32 4294901760, %v15726_v57 }
 0x7f5   : > { %v15810_v35 = vpack.c.bf16 %v8472_v53, %v8465_v11  ;;  %v8478_v48 = vsub.f32 %v15718_v33, %v16206_v38  ;;  %v13352_v53 = vld [vmem:[%s16109_s2] ss:$0 sm:$0xff] }
 0x7f6   : > { %v8485_v50 = vsub.f32 %v15726_v57, %v16205_v40 }
 0x7f7   : > { %12798 = vmatpush3.bf16.msra.mxu0 %v15704_v39  ;;  %v8479_v1 = vand.u32 4294901760, %v8478_v48 }
 0x7f8   : > { %12799 = vmatprep.subr.bf16.mxu0 %v13623_v45  ;;  %v8486_v0 = vand.u32 4294901760, %v8485_v50 }
 0x7fa   : > { %v15818_v60 = vpack.c.bf16 %v8486_v0, %v8479_v1 }
 0x7fb   : > { %12801 = vmatpush3.bf16.msra.mxu0 %v15721_v31 }
 0x7fc   : > { %12802 = vmatprep.subr.bf16.mxu0 %v13623_v45 }
 0x7ff   : > { %12804 = vmatpush3.bf16.msra.mxu0 %v15731_v62 }
 0x800   : > { %12805 = vmatprep.subr.bf16.mxu0 %v13623_v45 }
 0x803   : > { %12807 = vmatpush3.bf16.msra.mxu0 %v15736_v56 }
 0x804   : > { %12808 = vmatprep.subr.bf16.mxu0 %v13623_v45 }
 0x8ba   : > { %v11688_v11 = vpop.f32.mrb[8].mxu1 }
 0x8bb   : > { %v12968_v48 = vadd.f32 %v13352_v53, %v11688_v11  ;;  %v8206_v50 = vpop.f32.mrb[9].mxu1 }
 0x8bc   : > { %v12969_v1 = vadd.f32 %v13352_v53, %v8206_v50 }
 0x8bd   : > { %v8229_v0 = vmax.f32 %v12968_v48, 0.0 }
 0x8be   : > { %v8228_v40 = vmax.f32 %v12969_v1, 0.0  ;;  %v11691_v38 = vpop.f32.mrb[10].mxu1 }
 0x8bf   : > { %v8233_v13 = vmul.f32 %v13353_v18, %v8229_v0  ;;  %v12970_v59 = vadd.f32 %v13352_v53, %v11691_v38  ;;  %v8218_v16 = vpop.f32.mrb[11].mxu1 }
 0x8c0   : > { %v8232_v61 = vmul.f32 %v13353_v18, %v8228_v40  ;;  %v12971_v17 = vadd.f32 %v13352_v53, %v8218_v16 }
 0x8c1   : > { %v15842_v36 = vadd.f32 %v13354_v49, %v8233_v13  ;;  %v8231_v3 = vmax.f32 %v12970_v59, 0.0 }
 0x8c2   : > { %v15844_v34 = vadd.f32 %v13354_v49, %v8232_v61  ;;  %v8230_v11 = vmax.f32 %v12971_v17, 0.0 }
 0x8c3   : > { %v8235_v50 = vmul.f32 %v13353_v18, %v8231_v3 }
 0x8c4   : > { %v8240_v48 = vadd.f32 %v15842_v36, %v15844_v34  ;;  %v8234_v1 = vmul.f32 %v13353_v18, %v8230_v11 }
 0x8c5   : > { %v15848_v46 = vadd.f32 %v13354_v49, %v8235_v50 }
 0x8c6   : > { %v8241_v6 = vrot.slane %v8240_v48, 4  ;;  %v15850_v0 = vadd.f32 %v13354_v49, %v8234_v1 }
 0x8c8   : > { %v8242_v38 = vadd.f32 %v8241_v6, %v8240_v48  ;;  %v8247_v16 = vadd.f32 %v15848_v46, %v15850_v0 }
 0x8ca   : > { %v8243_v13 = vrot.slane %v8242_v38, 2  ;;  %v8248_v40 = vrot.slane %v8247_v16, 4 }
 0x8cc   : > { %v8244_v59 = vadd.f32 %v8243_v13, %v8242_v38  ;;  %v8249_v61 = vadd.f32 %v8248_v40, %v8247_v16 }
 0x8ce   : > { %v8245_v53 = vrot.slane %v8244_v59, 1  ;;  %v8250_v17 = vrot.slane %v8249_v61, 2 }
 0x8d0   : > { %v8251_v3 = vadd.f32 %v8250_v17, %v8249_v61  ;;  %v8246_v30 = vadd.f32 %v8245_v53, %v8244_v59 }
 0x8d2   : > { %v8252_v27 = vrot.slane %v8251_v3, 1  ;;  %v8255_v18 = vmul.f32 0.0625, %v8246_v30  ;;  %v16336_v30 = vpack.c.bf16 %v15726_v57, %v15718_v33 }
 0x8d4   : > { %v8253_v43 = vadd.f32 %v8252_v27, %v8251_v3  ;;  %v16335_v27 = vpack.c.bf16 %v15716_v15, %v15714_v8 }
 0x8d6   : > { %v8256_v11 = vmul.f32 0.0625, %v8253_v43 }
 0x8d8   : > { %v8283_v50 = vsel %vm8282_vm10, %v8256_v11, %v8255_v18 }
 0x8d9   : > { %v15854_v49 = vand.u32 4294901760, %v8283_v50 }
 0x8db   : > { %v8367_v6 = vsub.f32 %v8283_v50, %v15854_v49 }
 0x8dd   : > { %v8368_v48 = vand.u32 4294901760, %v8367_v6 }
 0x8df   : > { %v8369_v1 = vsub.f32 %v8367_v6, %v8368_v48 }
 0x8e1   : > { %v8370_v7 = vand.u32 4294901760, %v8369_v1 }
 0x8e3   : > { %11725 = vmatmul.mubr.f32.vlgmr.msra.gmra.mrb[8].mxu0 %v8370_v7 }
 0x8e4   : > { %12810 = vmatpush3.bf16.msra.mxu0 %v15755_v44  ;;  %11759 = vmatprep.mubr.msk.f32.mxu0 %vm13624_vm9, %v16334_v58  ;;  %v16337_v44 = vand.u32 4294901760, %v15659_v42  ;;  %v16341_v42 = vand.u32 4294901760, %v15677_v4  ;;  %v16347_v4 = vand.u32 4294901760, %v15710_v24  ;;  %v8946_v24 = vld [vmem:[%s16353_s27 + $0x18] sm:$0xff] }
 0x8e5   : > { %12811 = vmatprep.subr.bf16.mxu0 %v13623_v45 }
 0x8e8   : > { %12813 = vmatpush3.bf16.msra.mxu0 %v15760_v32  ;;  %v16338_v32 = vand.u32 4294901760, %v15661_v37  ;;  %v16342_v37 = vand.u32 4294901760, %v15679_v22  ;;  %v16348_v22 = vand.u32 4294901760, %v15712_v63 }
 0x8e9   : > { %12814 = vmatprep.subr.bf16.mxu0 %v13623_v45 }
 0x8ec   : > { %12816 = vmatpush3.bf16.msra.mxu0 %v15776_v23  ;;  %v12881_v23 = vpack.c.bf16 %v16338_v32, %v16337_v44 }
 0x8ed   : > { %12817 = vmatprep.subr.bf16.mxu0 %v13623_v45 }
 0x8f0   : > { %12819 = vmatpush3.bf16.msra.mxu0 %v15780_v14  ;;  %v16339_v14 = vand.u32 4294901760, %v15663_v47  ;;  %v16344_v47 = vand.u32 4294901760, %v15694_v52  ;;  %v16350_v52 = vand.u32 4294901760, %v15716_v15 }
 0x8f1   : > { %12820 = vmatprep.subr.bf16.mxu0 %v13623_v45 }
 0x8f4   : > { %12822 = vmatpush3.bf16.msra.mxu0 %v15790_v12  ;;  %v16340_v12 = vand.u32 4294901760, %v15665_v55 }
 0x8f5   : > { %12823 = vmatprep.subr.bf16.mxu0 %v13623_v45 }
 0x8f8   : > { %12825 = vmatpush3.bf16.msra.mxu0 %v15800_v28  ;;  %v12884_v28 = vpack.c.bf16 %v16340_v12, %v16339_v14  ;;  %v9663_v12 = vld [vmem:[%s16356_s4] ss:$0 sm:$0xff] }
 0x8f9   : > { %12826 = vmatprep.subr.bf16.mxu0 %v13623_v45 }
 0x8fc   : > { %12828 = vmatpush3.bf16.msra.mxu0 %v15810_v35  ;;  %v12887_v35 = vpack.c.bf16 %v16342_v37, %v16341_v42 }
 0x8fd   : > { %12829 = vmatprep.subr.bf16.mxu0 %v13623_v45 }
 0x900   : > { %12831 = vmatpush3.bf16.msra.mxu0 %v15818_v60  ;;  %v16343_v60 = vand.u32 4294901760, %v15683_v19  ;;  %v16349_v19 = vand.u32 4294901760, %v15714_v8  ;;  %v8967_v8 = vand.u32 4294901760, %v8946_v24 }
 0x901   : > { %12832 = vmatprep.subr.bf16.mxu0 %v13623_v45 }
 0x902   : > { %v12890_v55 = vpack.c.bf16 %v16344_v47, %v16343_v60 }
 0x903   : > { %11760 = vmatmul.mubr.f32.vlgmr.msra.gmra.mrb[8].mxu0 %v15854_v49 }
 0x904   : > { %12834 = vmatpush3.bf16.msra.mxu0 %v12833_v51  ;;  %11794 = vmatprep.mubr.msk.f32.mxu0 %vm13624_vm9, %v16334_v58  ;;  %v16345_v51 = vand.u32 4294901760, %v15706_v25  ;;  %v16351_v25 = vand.u32 4294901760, %v15718_v33 }
 0x905   : > { %12835 = vmatprep.subr.bf16.mxu0 %v13623_v45 }
 0x908   : > { %12837 = vmatpush3.bf16.msra.mxu0 %v12836_v54  ;;  %v16346_v54 = vand.u32 4294901760, %v15708_v5  ;;  %v16352_v5 = vand.u32 4294901760, %v15726_v57 }
 0x909   : > { %12838 = vmatprep.subr.bf16.mxu0 %v13623_v45 }
 0x90c   : > { %12840 = vmatpush3.bf16.msra.mxu0 %v12839_v9  ;;  %v12893_v9 = vpack.c.bf16 %v16346_v54, %v16345_v51  ;;  %v9664_v54 = vld [vmem:[%s16357_s11] ss:$0 sm:$0xff]  ;;  %s13535_s11 = scalar_lea.vmem %s13534_s14, 1024 }
 0x90d   : > { %12841 = vmatprep.subr.bf16.mxu0 %v13623_v45  ;;  %p13537_p0 = scmp.lt.s32.totalorder %s13535_s11, %s13529_s30 }
 0x90f   : > { %p13538_p2 = por %p13537_p0, %p13536_p13 }
 0x910   : > { %12843 = vmatpush3.bf16.msra.mxu0 %v12842_v29  ;;  %v12896_v29 = vpack.c.bf16 %v16348_v22, %v16347_v4 }
 0x911   : > { %12844 = vmatprep.subr.bf16.mxu0 %v13623_v45  ;;  %p13539_p8 = pnand %p13538_p2, %p13532_p1 }
 0x914   : > { %12846 = vmatpush3.bf16.msra.mxu0 %v12845_v21  ;;  %v12899_v21 = vpack.c.bf16 %v16350_v52, %v16349_v19 }
 0x915   : > { %12847 = vmatprep.subr.bf16.mxu0 %v13623_v45 }
 0x918   : > { %12849 = vmatpush3.bf16.msra.mxu0 %v12848_v10  ;;  %v12902_v10 = vpack.c.bf16 %v16352_v5, %v16351_v25  ;;  %v16358_v25 = vld [vmem:[#allocation43_spill] sm:$0xff] }
 0x919   : > { %12850 = vmatprep.subr.bf16.mxu0 %v13623_v45 }
 0x91c   : > { %12852 = vmatpush3.bf16.msra.mxu0 %v16335_v27  ;;  %v9661_v27 = vld [vmem:[%s16354_s6] ss:$0 sm:$0xff]  ;;  %s9675_s6 = sshll.u32 %s13730_s24, 9  ;;  %s9494_s24 = scalar_lea.sflag [#allocation4], %s13957_s22 }
 0x91d   : > { %12853 = vmatprep.subr.bf16.mxu0 %v13623_v45  ;;  %s16059_s4 = scalar_lea.hbm %s16359_s16, %s9675_s6 }
 0x920   : > { %12855 = vmatpush3.bf16.msra.mxu0 %v16336_v30 }
 0x921   : > { %12856 = vmatprep.subr.bf16.mxu0 %v13623_v45 }
 0x923   : > { %11795 = vmatmul.mubr.f32.vlgmr.msra.gmra.mrb[8].mxu0 %v8367_v6 }
 0x924   : > { %12858 = vmatpush3.bf16.msra.mxu0 %v15628_v26  ;;  %11829 = vmatprep.mubr.msk.f32.mxu0 %vm13624_vm9, %v16334_v58 }
 0x925   : > { %12859 = vmatprep.subr.bf16.mxu0 %v13623_v45 }
 0x928   : > { %12861 = vmatpush3.bf16.msra.mxu0 %v15640_v2 }
 0x929   : > { %12862 = vmatprep.subr.bf16.mxu0 %v13623_v45 }
 0x92c   : > { %12864 = vmatpush3.bf16.msra.mxu0 %v15650_v20 }
 0x92d   : > { %12865 = vmatprep.subr.bf16.mxu0 %v13623_v45 }
 0x930   : > { %12867 = vmatpush3.bf16.msra.mxu0 %v15681_v41 }
 0x931   : > { %12868 = vmatprep.subr.bf16.mxu0 %v13623_v45 }
 0x934   : > { %12870 = vmatpush3.bf16.msra.mxu0 %v15704_v39 }
 0x935   : > { %12871 = vmatprep.subr.bf16.mxu0 %v13623_v45 }
 0x938   : > { %12873 = vmatpush3.bf16.msra.mxu0 %v15721_v31 }
 0x939   : > { %12874 = vmatprep.subr.bf16.mxu0 %v13623_v45 }
 0x93c   : > { %12876 = vmatpush3.bf16.msra.mxu0 %v15731_v62 }
 0x93d   : > { %12877 = vmatprep.subr.bf16.mxu0 %v13623_v45 }
 0x940   : > { %12879 = vmatpush3.bf16.msra.mxu0 %v15736_v56 }
 0x941   : > { %12880 = vmatprep.subr.bf16.mxu0 %v13623_v45 }
 0x943   : > { %11830 = vmatmul.mubr.f32.vlgmr.msra.gmra.mrb[8].mxu0 %v8368_v48 }
 0x944   : > { %12882 = vmatpush3.bf16.msra.mxu0 %v12881_v23  ;;  %11864 = vmatprep.mubr.msk.f32.mxu0 %vm13624_vm9, %v16334_v58  ;;  %v9662_v23 = vld [vmem:[%s16355_s9] ss:$0 sm:$0xff] }
 0x945   : > { %12883 = vmatprep.subr.bf16.mxu0 %v13623_v45 }
 0x948   : > { %12885 = vmatpush3.bf16.msra.mxu0 %v12884_v28 }
 0x949   : > { %12886 = vmatprep.subr.bf16.mxu0 %v13623_v45 }
 0x94c   : > { %12888 = vmatpush3.bf16.msra.mxu0 %v12887_v35 }
 0x94d   : > { %12889 = vmatprep.subr.bf16.mxu0 %v13623_v45 }
 0x950   : > { %12891 = vmatpush3.bf16.msra.mxu0 %v12890_v55 }
 0x951   : > { %12892 = vmatprep.subr.bf16.mxu0 %v13623_v45 }
 0x954   : > { %12894 = vmatpush3.bf16.msra.mxu0 %v12893_v9 }
 0x955   : > { %12895 = vmatprep.subr.bf16.mxu0 %v13623_v45 }
 0x958   : > { %12897 = vmatpush3.bf16.msra.mxu0 %v12896_v29 }
 0x959   : > { %12898 = vmatprep.subr.bf16.mxu0 %v13623_v45 }
 0x95c   : > { %12900 = vmatpush3.bf16.msra.mxu0 %v12899_v21  ;;  %v13625_v21 = vmov 1966171168  }
 0x95d   : > { %12901 = vmatprep.subr.bf16.mxu0 %v13623_v45 }
 0x960   : > { %12903 = vmatpush3.bf16.msra.mxu0 %v12902_v10 }
 0x961   : > { %12904 = vmatprep.subr.bf16.mxu0 %v13623_v45 }
 0x963   : > { %11865 = vmatmul.mubr.f32.vlgmr.msra.gmra.mrb[8].mxu0 %v15854_v49 }
 0x964   : > { %12906 = vmatpush3.bf16.msra.mxu0 %v15628_v26  ;;  %11899 = vmatprep.mubr.msk.f32.mxu0 %vm13624_vm9, %v16334_v58  ;;  %v8943_v26 = vld [vmem:[%s16353_s27] sm:$0xff] }
 0x965   : > { %12907 = vmatprep.subr.bf16.mxu0 %v13623_v45 }
 0x968   : > { %12909 = vmatpush3.bf16.msra.mxu0 %v15640_v2  ;;  %v8944_v2 = vld [vmem:[%s16353_s27 + $0x8] sm:$0xff] }
 0x969   : > { %12910 = vmatprep.subr.bf16.mxu0 %v13623_v45 }
 0x96c   : > { %12912 = vmatpush3.bf16.msra.mxu0 %v15650_v20  ;;  %v8945_v20 = vld [vmem:[%s16353_s27 + $0x10] sm:$0xff] }
 0x96d   : > { %12913 = vmatprep.subr.bf16.mxu0 %v13623_v45  ;;  %v8964_v63 = vand.u32 4294901760, %v8945_v20 }
 0x96f   : > { %v9052_v57 = vsub.f32 %v8945_v20, %v8964_v63 }
 0x970   : > { %12915 = vmatpush3.bf16.msra.mxu0 %v15681_v41  ;;  %v8958_v41 = vand.u32 4294901760, %v8943_v26 }
 0x971   : > { %12916 = vmatprep.subr.bf16.mxu0 %v13623_v45  ;;  %v9053_v13 = vand.u32 4294901760, %v9052_v57 }
 0x972   : > { %v9038_v33 = vsub.f32 %v8943_v26, %v8958_v41 }
 0x973   : > { %v9054_v53 = vsub.f32 %v9052_v57, %v9053_v13 }
 0x974   : > { %12918 = vmatpush3.bf16.msra.mxu0 %v15704_v39  ;;  %v8961_v39 = vand.u32 4294901760, %v8944_v2  ;;  %v9039_v7 = vand.u32 4294901760, %v9038_v33 }
 0x975   : > { %12919 = vmatprep.subr.bf16.mxu0 %v13623_v45  ;;  %v9055_v18 = vand.u32 4294901760, %v9054_v53 }
 0x976   : > { %v16001_v15 = vpack.c.bf16 %v8961_v39, %v8958_v41  ;;  %v9040_v38 = vsub.f32 %v9038_v33, %v9039_v7 }
 0x978   : > { %12921 = vmatpush3.bf16.msra.mxu0 %v15721_v31  ;;  %v9045_v31 = vsub.f32 %v8944_v2, %v8961_v39  ;;  %12930 = vmatpush3.bf16.msra.mxu1 %v16001_v15  ;;  %v9041_v59 = vand.u32 4294901760, %v9040_v38  ;;  %v9473_v2 = vsub.s32 0, %v16358_v25 }
 0x979   : > { %12922 = vmatprep.subr.bf16.mxu0 %v13623_v45  ;;  %12931 = vmatprep.subr.bf16.mxu1 %v13623_v45 }
 0x97a   : > { %v9046_v43 = vand.u32 4294901760, %v9045_v31 }
 0x97c   : > { %12924 = vmatpush3.bf16.msra.mxu0 %v15731_v62  ;;  %v9059_v62 = vsub.f32 %v8946_v24, %v8967_v8  ;;  %v9047_v16 = vsub.f32 %v9045_v31, %v9046_v43  ;;  %v12953_v48 = vpack.c.bf16 %v9046_v43, %v9039_v7 }
 0x97d   : > { %12925 = vmatprep.subr.bf16.mxu0 %v13623_v45 }
 0x97e   : > { %v9060_v40 = vand.u32 4294901760, %v9059_v62  ;;  %v9048_v61 = vand.u32 4294901760, %v9047_v16  ;;  %v12944_v6 = vpack.c.bf16 %v9059_v62, %v9052_v57  ;;  %v13355_v57 = vld [vmem:[%s13963_s28] sm:$0xff] }
 0x980   : > { %12927 = vmatpush3.bf16.msra.mxu0 %v15736_v56  ;;  %v16004_v56 = vpack.c.bf16 %v8967_v8, %v8964_v63  ;;  %v9061_v17 = vsub.f32 %v9059_v62, %v9060_v40  ;;  %v12935_v3 = vpack.c.bf16 %v9048_v61, %v9041_v59  ;;  %v12956_v1 = vpack.c.bf16 %v9060_v40, %v9053_v13 }
 0x982   : > { %12933 = vmatpush3.bf16.msra.mxu1 %v16004_v56  ;;  %v9062_v11 = vand.u32 4294901760, %v9061_v17 }
 0x983   : > { %11900 = vmatmul.mubr.f32.vlgmr.msra.gmra.mrb[8].mxu0 %v15854_v49  ;;  %12934 = vmatprep.subr.bf16.mxu1 %v13623_v45  ;;  %v12941_v49 = vpack.c.bf16 %v9045_v31, %v9038_v33 }
 0x984   : > { %v12938_v50 = vpack.c.bf16 %v9062_v11, %v9055_v18 }
 0xa56   : > { %v8922_v30 = vpop.f32.mrb[8].mxu0 }
 0xa57   : > { %v12972_v44 = vadd.f32 %v9661_v27, %v8922_v30  ;;  %v11901_v32 = vpop.f32.mrb[9].mxu0 }
 0xa59   : > { %v8926_v14 = vmax.f32 %v12972_v44, 0.0 }
 0xa5b   : > { %v8934_v28 = vmul.f32 %v9662_v23, %v8926_v14 }
 0xa5d   : > { %v8942_v42 = vadd.f32 %v9663_v12, %v8934_v28 }
 0xa5f   : > { %v8955_v37 = vsel %vm1521_vm0, %v8942_v42, 0 }
 0xa60   : > { %v9026_v35 = vand.u32 4294901760, %v8955_v37 }
 0xa62   : > { %v9027_v60 = vsub.f32 %v8955_v37, %v9026_v35 }
 0xa64   : > { %v9028_v47 = vand.u32 4294901760, %v9027_v60 }
 0xa66   : > { %v9029_v55 = vsub.f32 %v9027_v60, %v9028_v47 }
 0xa68   : > { %v9030_v51 = vand.u32 4294901760, %v9029_v55 }
 0xa6a   : > { %11911 = vmatmul.mubr.f32.vlgmr.msra.gmra.mrb[12].mxu1 %v9030_v51 }
 0xa6b   : > { %12936 = vmatpush3.bf16.msra.mxu1 %v12935_v3  ;;  %11921 = vmatprep.mubr.msk.f32.mxu1 %vm13624_vm9, %v16334_v58 }
 0xa6c   : > { %12937 = vmatprep.subr.bf16.mxu1 %v13623_v45 }
 0xa6f   : > { %12939 = vmatpush3.bf16.msra.mxu1 %v12938_v50 }
 0xa70   : > { %12940 = vmatprep.subr.bf16.mxu1 %v13623_v45 }
 0xa72   : > { %11922 = vmatmul.mubr.f32.vlgmr.msra.gmra.mrb[12].mxu1 %v9026_v35 }
 0xa73   : > { %12942 = vmatpush3.bf16.msra.mxu1 %v12941_v49  ;;  %11932 = vmatprep.mubr.msk.f32.mxu1 %vm13624_vm9, %v16334_v58 }
 0xa74   : > { %12943 = vmatprep.subr.bf16.mxu1 %v13623_v45 }
 0xa77   : > { %12945 = vmatpush3.bf16.msra.mxu1 %v12944_v6 }
 0xa78   : > { %12946 = vmatprep.subr.bf16.mxu1 %v13623_v45 }
 0xa7a   : > { %11933 = vmatmul.mubr.f32.vlgmr.msra.gmra.mrb[12].mxu1 %v9027_v60 }
 0xa7b   : > { %12948 = vmatpush3.bf16.msra.mxu1 %v16001_v15  ;;  %11943 = vmatprep.mubr.msk.f32.mxu1 %vm13624_vm9, %v16334_v58 }
 0xa7c   : > { %12949 = vmatprep.subr.bf16.mxu1 %v13623_v45 }
 0xa7f   : > { %12951 = vmatpush3.bf16.msra.mxu1 %v16004_v56 }
 0xa80   : > { %12952 = vmatprep.subr.bf16.mxu1 %v13623_v45 }
 0xa82   : > { %11944 = vmatmul.mubr.f32.vlgmr.msra.gmra.mrb[12].mxu1 %v9028_v47 }
 0xa83   : > { %12954 = vmatpush3.bf16.msra.mxu1 %v12953_v48  ;;  %11954 = vmatprep.mubr.msk.f32.mxu1 %vm13624_vm9, %v16334_v58 }
 0xa84   : > { %12955 = vmatprep.subr.bf16.mxu1 %v13623_v45 }
 0xa87   : > { %12957 = vmatpush3.bf16.msra.mxu1 %v12956_v1 }
 0xa88   : > { %12958 = vmatprep.subr.bf16.mxu1 %v13623_v45 }
 0xa8a   : > { %11955 = vmatmul.mubr.f32.vlgmr.msra.gmra.mrb[12].mxu1 %v9026_v35 }
 0xa8b   : > { %12960 = vmatpush3.bf16.msra.mxu1 %v16001_v15  ;;  %11965 = vmatprep.mubr.msk.f32.mxu1 %vm13624_vm9, %v16334_v58  ;;  %v9450_v58 = vunpack.c.l.s4 %v13625_v21 }
 0xa8c   : > { %12961 = vmatprep.subr.bf16.mxu1 %v13623_v45 }
 0xa8d   : > { %v9451_v45 = vunpack.c.0.s8 %v9450_v58 }
 0xa8f   : > { %12963 = vmatpush3.bf16.msra.mxu1 %v16004_v56  ;;  %v9454_v5 = vsub.s32 %v9451_v45, %v16358_v25  ;;  %v13356_v56 = vld [vmem:[%s13963_s28 + $0x8] sm:$0xff] }
 0xa92   : > { %11966 = vmatmul.mubr.f32.vlgmr.msra.gmra.mrb[12].mxu1 %v9026_v35 }
 0xb65   : > { %v9438_v9 = vpop.f32.mrb[12].mxu1 }
 0xb66   : > { %v12973_v4 = vadd.f32 %v9664_v54, %v9438_v9  ;;  %v11967_v22 = vpop.f32.mrb[13].mxu1 }
 0xb68   : > { %v9665_v29 = vmul.f32 -1.442695, %v12973_v4 }
 0xb6a   : > { %13348 = vpow2.f32 %v9665_v29 }
 0xb74   : > { %v13349_v19 = vpop.eup %13348 }
 0xb75   : > { %v9445_v52 = vadd.f32 1.0, %v13349_v19 }
 0xb77   : > { %13350 = vrcp.f32 %v9445_v52 }
 0xb81   : > { %v13351_v10 = vpop.eup %13350 }
 0xb82   : > { %v9455_v26 = vrot.slane %v13351_v10, %v9454_v5 }
 0xb84   : > { %v9456_v20 = vcombine.high %v9455_v26, %v9455_v26  ;;  %v9463_v41 = vrot.slane %v9455_v26, %v9454_v5 }
 0xb86   : > { %v9470_v39 = vrot.slane %v9456_v20, %v9454_v5  ;;  %v9474_v24 = vrot.slane %v9463_v41, %v9473_v2 }
 0xb88   : > { %v9478_v63 = vrot.slane %v9470_v39, %v9473_v2  ;;  %v9481_v8 = vmul.f32 %v9474_v24, %v15844_v34  ;;  %v9482_v15 = vmul.f32 %v9474_v24, %v15842_v36  ;;  %v13357_v34 = vld [vmem:[%s13963_s28 + $0x10] sm:$0xff] }
 0xb8a   : > { %v9483_v33 = vmul.f32 %v9478_v63, %v15850_v0  ;;  %v9484_v31 = vmul.f32 %v9478_v63, %v15848_v46  ;;  %v9485_v62 = vadd.f32 %v13355_v57, %v9481_v8  ;;  %v9486_v7 = vadd.f32 %v13356_v56, %v9482_v15  ;;  %v13358_v0 = vld [vmem:[%s13963_s28 + $0x18] sm:$0xff] }
 0xb8c   : > { %v9487_v36 = vadd.f32 %v13357_v34, %v9483_v33  ;;  %v9488_v43 = vadd.f32 %v13358_v0, %v9484_v31  ;;  %9489 = vst [vmem:[%s584_s10] sm:$0xff] %v9485_v62  ;;  %9490 = vst [vmem:[%s584_s10 + $0x8] sm:$0xff] %v9486_v7 }
 0xb8e   : > { %9491 = vst [vmem:[%s584_s10 + $0x10] sm:$0xff] %v9487_v36  ;;  %9492 = vst [vmem:[%s584_s10 + $0x18] sm:$0xff] %v9488_v43 }
 0xb8f   : > { %13542 = shalt.err (!%p13539_p8)
}
 0xb90   : > { %s13543_s28 = scalar_lea.hbm %s16059_s4, 512  ;;  %s13547_s9 = scalar_lea.hbm %s16359_s16, 1024 }
 0xb91   : > { %p13544_p6 = scmp.ne.s32.totalorder %s16059_s4, %s13543_s28  ;;  %p13548_p3 = scmp.lt.u32.totalorder %s16059_s4, %s16359_s16 }
 0xb92   : > { %p13549_p5 = scmp.lt.u32.totalorder %s13547_s9, %s13543_s28  ;;  %p13551_p7 = scmp.lt.u32.totalorder %s13543_s28, %s16059_s4 }
 0xb93   : > { %p13545_p11 = pnand %p13544_p6, %p16360_p10 }
 0xb94   : > { %p13550_p9 = por %p13549_p5, %p13548_p3 }
 0xb95   : > { %p13546_p12 = pneg %p13545_p11 }
 0xb96   : > { %p13552_p4 = por %p13551_p7, %p13550_p9 }
 0xb98   : > { %p13553_p1 = pnand %p13552_p4, %p13546_p12 }
 0xb9a   : > { %13556 = shalt.err (!%p13553_p1)
}
 0xb9b   : > { %s13627_s30 = smov 128   ;;  %s13628_s14 = smov 8  }
 0xb9c   : > { %13260 = dma.vmem_to_hbm [thread:$0]  (%p16360_p10), %s16061_s17, 512, %s16059_s4, %s9494_s24, %s13627_s30, %s13627_s30, %s13628_s14  }
 0xb9d PF: > { %s9523_s11 = sand.u32 1, %s13595_s18   ;;  %p16361_p13 = scmp.ne.s32.totalorder %s16240_s12, 0 }
 0xb9e   : > { %p16362_p0 = scmp.ge.s32.totalorder %s13607_s21, 2  ;;  %s9524_s28 = scalar_lea.sflag [#allocation4], %s9523_s11 }
 0xba0   : > { %p13283_p2 = pnand %p16362_p0, %p16361_p13 }
 0xba2   : > { %13590 = dma.done.wait (!%p13283_p2), %s9524_s28, 512  }
 0xba3   : > { %13592 = vsyncadd (!%p13283_p2), %s9524_s28, 4294966784  ;;  %p31_p8 = scmp.ge.s32.totalorder %s13881_s26, 4   ;;  %s16363_s18 = smov %s13599_s19 }
 0xba4   : > { %s16364_s19 = smov %s13603_s20  ;;  %s16365_s20 = smov %s13893_s29 }
 0xba5   : > { %s16366_s21 = smov %s13881_s26  ;;  %33 = sbr.rel (!%p31_p8) target bundleno = 18 (0x12), region = 159 }
 0xbac   :  { %9529 = vsyncpa [#allocation3], 1 }
 0xbad   :  { %9531 = vsyncpa [#allocation3 + $0x1], 1 }
 0xbae   :  { %9532 = vsyncpa [#allocation6], 1 }
 0xbaf   :  { %9533 = vsyncpa [#allocation9], 1 }
 0xbb0   :  { %9534 = vsyncpa [#allocation12], 1 }
 0xbb1   :  { %9535 = vsyncpa [#allocation4], 1 }
 0xbb2   :  { %9537 = vsyncpa [#allocation4 + $0x1], 1 }

</bundles_post_ra>
